<compile_context>
chip_gen: v7x
topology: tpu7x:2x2x1
jax: 0.10.0
libtpu: 0.0.40
codegen_flags: <defaults>
</compile_context>

<pallas_src>
import functools

import jax
import jax.numpy as jnp
from jax.experimental import pallas as pl
from jax.experimental.pallas import tpu as pltpu

# ----------------------------------------------------------------------------
# Scaled-down synthetic config (SD15PreferenceModelConfig analogue).
# Real SD1.5 numbers in comments; small stand-ins keep the example tiny while
# preserving exact forward semantics.
# ----------------------------------------------------------------------------
GUIDANCE_SCALE = 7.5          # cfg.guidance_scale -> do_classifier_free_guidance=True
MULTI_SCALE = True            # cfg.multi_scale
MULTI_SCALE_CFG = False       # cfg.multi_scale_cfg
LOGIT_SCALE_INIT = 2.6592     # cfg.logit_scale_init_value (unused by forward())
TEXT_EMBED_DIM = 128          # stand-in for 768
PROJECTION_DIM = 128          # stand-in for 768
STAGE_CHANNELS = (32, 64, 128, 128)   # stand-in for SD1.5 (320, 640, 1280, 1280)
MID_CHANNELS = 128                    # stand-in for 1280
CONCAT_DIM = sum(STAGE_CHANNELS) + MID_CHANNELS  # 480, stand-in for 4800

LANE = 128
FUSED_VMEM_BUDGET = 48 << 20          # budget for the 1-launch fused path


# ----------------------------------------------------------------------------
# Small helpers
# ----------------------------------------------------------------------------
def _pad_to(n, m):
    return ((n + m - 1) // m) * m


def _nbytes(shape, dtype):
    n = 1
    for d in shape:
        n *= int(d)
    return n * jnp.dtype(dtype).itemsize


def _scoped_vmem_limit(double_buffered, single_buffered=()):
    """Size vmem_limit_bytes from resident blocks (x2 for double buffering),
    with 1.5x + 2 MiB headroom; clamped to [16 MiB, 64 MiB] (v7x physical)."""
    total = 0
    for shape, dtype in double_buffered:
        total += 2 * _nbytes(shape, dtype)
    for shape, dtype in single_buffered:
        total += _nbytes(shape, dtype)
    total = int(total * 1.5) + (2 << 20)
    return int(min(max(total, 16 << 20), 64 << 20))


def _first_block_spec(block_shape):
    """BlockSpec selecting the leading block (block 0 on every axis).  The
    block may be smaller than the array on the leading (batch) axis — that is
    how the CFG text-half is addressed without an XLA slice copy."""
    nd = len(block_shape)
    return pl.BlockSpec(block_shape, lambda i, _nd=nd: (0,) * _nd)


def _choose_tile(dim, target, granule):
    """Largest tile <= target that is a multiple of `granule` and divides `dim`;
    falls back to the full dim when it is not granule-divisible (small cases)."""
    if dim % granule != 0 or dim <= target:
        return dim
    t = (target // granule) * granule
    while dim % t != 0:
        t -= granule
    return max(t, granule)


# ----------------------------------------------------------------------------
# Streamed-pooling kernel (fallback path for very large feature maps):
# AdaptiveAvgPool2d((1,1)) as a gridded reduction over HW tiles.
#   x_ref   : (rows, c_tile, hw_tile) block of the NC(HW) feature map (bf16)
#   out_ref : (rows, c_tile) f32 means — resident across the HW axis, used
#             directly as the accumulator (no scratch needed, dtype is f32).
# ----------------------------------------------------------------------------
def _avg_pool_kernel(x_ref, out_ref, *, inv_hw):
    k = pl.program_id(1)

    @pl.when(k == 0)
    def _():
        out_ref[...] = jnp.zeros_like(out_ref)

    out_ref[...] += jnp.sum(x_ref[...].astype(jnp.float32), axis=-1)

    @pl.when(k == pl.num_programs(1) - 1)
    def _():
        out_ref[...] = out_ref[...] * inv_hw


def adaptive_avg_pool_pallas(x, rows=None):
    """AdaptiveAvgPool2d((1,1)).squeeze([2,3]) on the first `rows` batch rows.
    Accepts (N, C, H, W) or (N, C, HW); returns (rows, C) float32."""
    n, c = x.shape[0], x.shape[1]
    rows = n if rows is None else rows
    x = x.reshape(n, c, -1)                            # merges contiguous minor dims
    hw = x.shape[-1]

    c_tile = _choose_tile(c, 512, LANE)                # lane-dense output tiles
    hw_tile = _choose_tile(hw, 2048, LANE)             # streamed reduction tiles
    grid = (c // c_tile, hw // hw_tile)

    vmem_limit = _scoped_vmem_limit(
        double_buffered=[((rows, c_tile, hw_tile), x.dtype),
                         ((rows, c_tile), jnp.float32)])

    return pl.pallas_call(
        functools.partial(_avg_pool_kernel, inv_hw=1.0 / hw),
        grid=grid,
        out_shape=jax.ShapeDtypeStruct((rows, c), jnp.float32),
        in_specs=[pl.BlockSpec((rows, c_tile, hw_tile), lambda ci, k: (0, ci, k))],
        out_specs=pl.BlockSpec((rows, c_tile), lambda ci, k: (0, ci)),
        compiler_params=pltpu.CompilerParams(
            dimension_semantics=("parallel", "arbitrary"),
            vmem_limit_bytes=vmem_limit),
    )(x)


# ----------------------------------------------------------------------------
# Fused kernel: (in-kernel pooling) + CFG + multi-scale concat + projections.
# Each stage/mid ref is either a raw (rows, C, HW) feature map (pooled inside
# the kernel) or an already-pooled (rows, C) f32 vector from the fallback.
#   w_cat_ref   : (cat_pad, P)  lane-padded visual_projection.weight.T (bf16)
#   p_text_ref  : (n_p, D_t)    pooled text embedding, text half (bf16)
#   w_text_ref  : (D_t, P)      text_projection.weight.T (bf16)
#   img_ref     : (b, P)  f32   image_features
#   txt_ref     : (n_p, P) f32  text_features
#   cat_ref     : (b, cat_pad)  f32 VMEM scratch (128-aligned segment offsets)
# ----------------------------------------------------------------------------
def _fuse_project_kernel(s1_ref, s2_ref, s3_ref, s4_ref, mid_ref,
                         w_cat_ref, p_text_ref, w_text_ref,
                         img_ref, txt_ref, cat_ref,
                         *, guidance_scale, multi_scale_cfg, offsets):
    b = img_ref.shape[0]

    def pooled(ref):  # AdaptiveAvgPool2d((1,1)) when handed a raw feature map
        x = ref[...]
        if x.ndim == 3:
            return jnp.mean(x.astype(jnp.float32), axis=-1)
        return x.astype(jnp.float32)

    def cfg(p):       # classifier-free guidance: ucond + g * (text - ucond)
        text, ucond = p[0:b, :], p[b:2 * b, :]
        return ucond + guidance_scale * (text - ucond)

    # Concatenated pooled vector in a lane-padded VMEM scratch: every segment
    # offset is a multiple of 128, padded gaps stay zero (match zero weight rows).
    cat_ref[...] = jnp.zeros_like(cat_ref)
    for ref, off in zip((s1_ref, s2_ref, s3_ref, s4_ref), offsets[:4]):
        p = pooled(ref)
        if multi_scale_cfg:
            p = cfg(p)
        cat_ref[:, off:off + p.shape[-1]] = p
    pm = cfg(pooled(mid_ref))
    cat_ref[:, offsets[4]:offsets[4] + pm.shape[-1]] = pm

    # Single long-K matmul against the padded (cat_pad, proj) weight; padded
    # rows of the weight are zero so the result equals concat @ W^T exactly.
    img_ref[...] = jnp.dot(cat_ref[...].astype(jnp.bfloat16), w_cat_ref[...],
                           preferred_element_type=jnp.float32
                           ).astype(img_ref.dtype)
    # Text projection rides in the same kernel (amortizes call/DMA overhead).
    txt_ref[...] = jnp.dot(p_text_ref[...], w_text_ref[...],
                           preferred_element_type=jnp.float32
                           ).astype(txt_ref.dtype)


def preference_features_pallas(stage_feats, mid_feat, pooled_text,
                               w_text_t, w_cat_pad,
                               guidance_scale=GUIDANCE_SCALE,
                               multi_scale_cfg=MULTI_SCALE_CFG,
                               fused_vmem_budget=FUSED_VMEM_BUDGET):
    """stage_feats: 4 NCHW maps with batch 2*n_i; mid_feat: NCHW (batch 2*n_i)."""
    n_total = mid_feat.shape[0]
    n_i = n_total // 2
    n_p = pooled_text.shape[0]
    proj = w_cat_pad.shape[1]
    # With multi_scale_cfg=False only the text half of each stage is ever used;
    # address it via the BlockSpec leading-dim block (no HBM copy, half traffic).
    stage_rows = n_total if multi_scale_cfg else n_i

    # Segment table in PyTorch concat order: stage1..4, mid (mid needs both halves).
    entries = []
    for f in stage_feats:
        n, c = f.shape[0], f.shape[1]
        entries.append({"x": f.reshape(n, c, -1), "rows": stage_rows,
                        "c": c, "raw": True})
    n, c = mid_feat.shape[0], mid_feat.shape[1]
    entries.append({"x": mid_feat.reshape(n, c, -1), "rows": n_total,
                    "c": c, "raw": True})

    offsets, off = [], 0
    for e in entries:
        offsets.append(off)
        off += _pad_to(e["c"], LANE)
    cat_pad = off
    assert w_cat_pad.shape[0] == cat_pad, (w_cat_pad.shape, cat_pad)

    def vmem_estimate():
        blocks = []
        for e in entries:
            if e["raw"]:
                blocks.append(((e["rows"],) + e["x"].shape[1:], e["x"].dtype))
            else:
                blocks.append((e["x"].shape, e["x"].dtype))
        blocks += [(w_cat_pad.shape, w_cat_pad.dtype),
                   (pooled_text.shape, pooled_text.dtype),
                   (w_text_t.shape, w_text_t.dtype),
                   ((n_i, proj), jnp.float32), ((n_p, proj), jnp.float32)]
        return _scoped_vmem_limit(double_buffered=blocks,
                                  single_buffered=[((n_i, cat_pad), jnp.float32)])

    # Greedy fallback: stream-pool the largest raw maps until the single fused
    # call fits the VMEM budget (keeps the 1-launch path whenever possible).
    while vmem_estimate() > fused_vmem_budget:
        raw = [e for e in entries if e["raw"]]
        if not raw:
            break
        big = max(raw, key=lambda e: _nbytes((e["rows"],) + e["x"].shape[1:],
                                             e["x"].dtype))
        big["x"] = adaptive_avg_pool_pallas(big["x"], rows=big["rows"])
        big["raw"] = False

    args, in_specs = [], []
    for e in entries:
        args.append(e["x"])
        if e["raw"]:
            in_specs.append(_first_block_spec((e["rows"],) + e["x"].shape[1:]))
        else:
            in_specs.append(_first_block_spec(e["x"].shape))
    args += [w_cat_pad, pooled_text, w_text_t]
    in_specs += [_first_block_spec(w_cat_pad.shape),
                 _first_block_spec(pooled_text.shape),
                 _first_block_spec(w_text_t.shape)]

    out_shapes = (jax.ShapeDtypeStruct((n_i, proj), jnp.float32),
                  jax.ShapeDtypeStruct((n_p, proj), jnp.float32))

    kernel = functools.partial(_fuse_project_kernel,
                               guidance_scale=guidance_scale,
                               multi_scale_cfg=multi_scale_cfg,
                               offsets=tuple(offsets))
    img, txt = pl.pallas_call(
        kernel,
        grid=(1,),
        out_shape=out_shapes,
        in_specs=in_specs,
        out_specs=(_first_block_spec((n_i, proj)),
                   _first_block_spec((n_p, proj))),
        scratch_shapes=[pltpu.VMEM((n_i, cat_pad), jnp.float32)],
        compiler_params=pltpu.CompilerParams(
            dimension_semantics=("arbitrary",),
            vmem_limit_bytes=vmem_estimate()),
    )(*args)
    return txt, img


# ----------------------------------------------------------------------------
# Hoisted weight preparation (done once, outside forward()):
# transpose to (in_dim, proj), cast to bf16, and lane-pad every visual segment
# to a 128 multiple with zero rows so the in-kernel concat is 128-aligned.
# ----------------------------------------------------------------------------
def build_projection_weights(w_visual, w_text,
                             stage_channels=STAGE_CHANNELS,
                             mid_channels=MID_CHANNELS):
    w_t = jnp.asarray(w_visual).T                       # (concat_dim, proj)
    proj = w_t.shape[1]
    blocks, start = [], 0
    for c in tuple(stage_channels) + (mid_channels,):
        c_pad = _pad_to(c, LANE)
        blk = jnp.zeros((c_pad, proj), w_t.dtype).at[:c, :].set(
            w_t[start:start + c, :])
        blocks.append(blk)
        start += c
    w_cat_pad = jnp.concatenate(blocks, axis=0).astype(jnp.bfloat16)
    w_text_t = jnp.asarray(w_text).T.astype(jnp.bfloat16)
    return w_cat_pad, w_text_t


# ----------------------------------------------------------------------------
# Synthetic stand-ins for the pretrained sub-networks (plain JAX glue).
# ----------------------------------------------------------------------------
def stub_text_encoder(text_input_ids, seq_len, key):
    # TODO(synk): CLIP tokenizer / text encoder are pretrained networks with no
    #             in-scope Pallas equivalent; emit deterministic outputs instead.
    two_np = text_input_ids.shape[0]
    k1, k2 = jax.random.split(key)
    hidden = jax.random.normal(k1, (two_np, seq_len, TEXT_EMBED_DIM), jnp.float32)
    pooled = jax.random.normal(k2, (two_np, TEXT_EMBED_DIM), jnp.float32)
    return hidden, pooled


def stub_unet(noisy_latents, time_cond, encoder_hidden_states, key):
    # TODO(synk): SD1.5 UNet2DConditionModel / VAE / DDPMScheduler have no
    #             in-scope Pallas equivalent; emit deterministic bf16 feature
    #             maps (bf16 = the dtype the real UNet runs in; halves traffic).
    del time_cond, encoder_hidden_states
    two_ni = noisy_latents.shape[0]
    stage_hw = (8, 4, 2, 2)
    mid_hw = 2
    keys = jax.random.split(key, 5)
    down = [jax.random.normal(keys[i], (two_ni, c, hw, hw), jnp.bfloat16)
            for i, (c, hw) in enumerate(zip(STAGE_CHANNELS, stage_hw))]
    mid = jax.random.normal(keys[4], (two_ni, MID_CHANNELS, mid_hw, mid_hw),
                            jnp.bfloat16)
    return mid, down


# ----------------------------------------------------------------------------
# forward() analogue of SD15PreferenceModel.forward  (do_cfg = True path)
# ----------------------------------------------------------------------------
def sd15_preference_forward(text_input_ids, image_inputs, time_cond,
                            neg_prompt_ids, w_text_t, w_cat_pad, stub_key,
                            *, fused_vmem_budget=FUSED_VMEM_BUDGET):
    n_p = text_input_ids.shape[0]
    n_i = image_inputs.shape[0]
    k_text, k_unet = jax.random.split(stub_key)

    # ---- get_text_features ----
    # CFG: append negative prompts along the batch axis.
    text_inputs = jnp.concatenate(
        [text_input_ids, jnp.tile(neg_prompt_ids, (n_p, 1))], axis=0)
    encoder_hidden_states, pooled_output = stub_text_encoder(
        text_inputs, text_inputs.shape[1], k_text)
    # chunk(2, dim=0): only the text half feeds text_projection (tiny slice),
    # bf16 at the kernel boundary.
    pooled_text = pooled_output[:n_p].astype(jnp.bfloat16)

    # forward(): n_i == 2*n_p duplication branch (glue feeding the UNet stub)
    if n_i == 2 * n_p:
        ehs_text, ehs_ucond = jnp.split(encoder_hidden_states, 2, axis=0)
        encoder_hidden_states = jnp.concatenate(
            [ehs_text, ehs_text, ehs_ucond, ehs_ucond], axis=0)

    # ---- get_image_features ----
    noisy_latents = jnp.concatenate([image_inputs, image_inputs], axis=0)
    time_cond = jnp.concatenate([time_cond, time_cond], axis=0)
    mid_output, down_block_res_samples = stub_unet(
        noisy_latents, time_cond, encoder_hidden_states, k_unet)

    text_features, image_features = preference_features_pallas(
        down_block_res_samples, mid_output, pooled_text, w_text_t, w_cat_pad,
        fused_vmem_budget=fused_vmem_budget)
    return text_features, image_features


# ----------------------------------------------------------------------------
# Pure-JAX reference (same bf16 boundary casts, f32 accumulation).
# ----------------------------------------------------------------------------
def ref_text_features(pooled_output, w_text):
    n_p = pooled_output.shape[0] // 2
    p = pooled_output[:n_p].astype(jnp.bfloat16)
    w = jnp.asarray(w_text).T.astype(jnp.bfloat16)
    return jnp.dot(p, w, preferred_element_type=jnp.float32)


def ref_image_features(stage_feats, mid_feat, w_visual, g, multi_scale_cfg):
    b = mid_feat.shape[0] // 2

    def cfg(p):
        return p[b:] + g * (p[:b] - p[b:])

    pooled = [f.astype(jnp.float32).mean(axis=(2, 3)) for f in stage_feats]
    pm = cfg(mid_feat.astype(jnp.float32).mean(axis=(2, 3)))
    stages = [cfg(p) if multi_scale_cfg else p[:b] for p in pooled]
    concat = jnp.concatenate(stages + [pm], axis=-1).astype(jnp.bfloat16)
    w_t = jnp.asarray(w_visual).T.astype(jnp.bfloat16)
    return jnp.dot(concat, w_t, preferred_element_type=jnp.float32)


if __name__ == "__main__":
    key = jax.random.PRNGKey(0)
    k_ids, k_wv, k_wt, k_stub = jax.random.split(key, 4)

    # small shapes: 2 prompts, 2 images, seq=8, latent 4x16x16
    n_p, n_i, seq_len = 2, 2, 8
    text_input_ids = jax.random.randint(k_ids, (n_p, seq_len), 0, 1000, jnp.int32)
    neg_prompt_ids = jnp.zeros((1, seq_len), jnp.int32)
    image_inputs = jax.random.normal(key, (n_i, 4, 16, 16), jnp.float32)
    time_cond = jnp.array([10, 10], jnp.int32)

    # deterministic parameter init in PyTorch layout (nn.init.normal_(std=0.02));
    # transpose / bf16 cast / lane-padding are hoisted out of forward().
    w_visual = 0.02 * jax.random.normal(k_wv, (PROJECTION_DIM, CONCAT_DIM), jnp.float32)
    w_text = 0.02 * jax.random.normal(k_wt, (PROJECTION_DIM, TEXT_EMBED_DIM), jnp.float32)
    logit_scale = jnp.array(LOGIT_SCALE_INIT, jnp.float32)  # not used by forward()
    w_cat_pad, w_text_t = build_projection_weights(w_visual, w_text)

    # jitted forwards: default budget (single fused kernel) and a forced
    # budget=0 variant that exercises the streamed-pooling fallback path.
    fwd_fused = jax.jit(functools.partial(
        sd15_preference_forward, fused_vmem_budget=FUSED_VMEM_BUDGET))
    fwd_streamed = jax.jit(functools.partial(
        sd15_preference_forward, fused_vmem_budget=0))

    text_features, image_features = fwd_fused(
        text_input_ids, image_inputs, time_cond, neg_prompt_ids,
        w_text_t, w_cat_pad, k_stub)
    text_features_s, image_features_s = fwd_streamed(
        text_input_ids, image_inputs, time_cond, neg_prompt_ids,
        w_text_t, w_cat_pad, k_stub)
    jax.block_until_ready((text_features, image_features,
                           text_features_s, image_features_s))

    # correctness check against plain-JAX reference (same stub tensors)
    k_text, k_unet = jax.random.split(k_stub)
    all_ids = jnp.concatenate([text_input_ids, jnp.tile(neg_prompt_ids, (n_p, 1))], 0)
    _, pooled_ref = stub_text_encoder(all_ids, seq_len, k_text)
    noisy = jnp.concatenate([image_inputs, image_inputs], axis=0)
    mid_ref, down_ref = stub_unet(noisy, None, None, k_unet)
    tf_ref = ref_text_features(pooled_ref, w_text)
    if_ref = ref_image_features(down_ref, mid_ref, w_visual,
                                GUIDANCE_SCALE, MULTI_SCALE_CFG)

    assert text_features.shape == (n_p, PROJECTION_DIM)
    assert image_features.shape == (n_i, PROJECTION_DIM)
    assert jnp.allclose(text_features, tf_ref, atol=1e-2, rtol=1e-2)
    assert jnp.allclose(image_features, if_ref, atol=1e-2, rtol=1e-2)
    assert jnp.allclose(text_features_s, tf_ref, atol=1e-2, rtol=1e-2)
    assert jnp.allclose(image_features_s, if_ref, atol=1e-2, rtol=1e-2)

    print("KERNEL_OK")
</pallas_src>

<mosaic_0001>
module attributes {stable_mosaic.version = 11 : i64} {
  func.func @_fuse_project_kernel(%arg0: i32, %arg1: memref<2x32x64xbf16, #tpu.memory_space<vmem>>, %arg2: memref<2x64x16xbf16, #tpu.memory_space<vmem>>, %arg3: memref<2x128x4xbf16, #tpu.memory_space<vmem>>, %arg4: memref<2x128x4xbf16, #tpu.memory_space<vmem>>, %arg5: memref<4x128x4xbf16, #tpu.memory_space<vmem>>, %arg6: memref<640x128xbf16, #tpu.memory_space<vmem>>, %arg7: memref<2x128xbf16, #tpu.memory_space<vmem>>, %arg8: memref<128x128xbf16, #tpu.memory_space<vmem>>, %arg9: memref<2x128xf32, #tpu.memory_space<vmem>>, %arg10: memref<2x128xf32, #tpu.memory_space<vmem>>, %arg11: memref<2x640xf32, #tpu.memory_space<vmem>>) attributes {dimension_semantics = [#tpu.dimension_semantics<arbitrary>], iteration_bounds = array<i64: 1>, scalar_prefetch = 0 : i64, scratch_operands = 1 : i64, tpu.core_type = #tpu.core_type<tc>, window_params = [{transform_indices = @transform_0, window_bounds = array<i64: 2, 32, 64>}, {transform_indices = @transform_1, window_bounds = array<i64: 2, 64, 16>}, {transform_indices = @transform_2, window_bounds = array<i64: 2, 128, 4>}, {transform_indices = @transform_3, window_bounds = array<i64: 2, 128, 4>}, {pipeline_mode = #tpu.pipeline_mode<synchronous>, transform_indices = @transform_4, window_bounds = array<i64: 4, 128, 4>}, {pipeline_mode = #tpu.pipeline_mode<synchronous>, transform_indices = @transform_5, window_bounds = array<i64: 640, 128>}, {pipeline_mode = #tpu.pipeline_mode<synchronous>, transform_indices = @transform_6, window_bounds = array<i64: 2, 128>}, {pipeline_mode = #tpu.pipeline_mode<synchronous>, transform_indices = @transform_7, window_bounds = array<i64: 128, 128>}, {pipeline_mode = #tpu.pipeline_mode<synchronous>, transform_indices = @transform_8, window_bounds = array<i64: 2, 128>}, {pipeline_mode = #tpu.pipeline_mode<synchronous>, transform_indices = @transform_9, window_bounds = array<i64: 2, 128>}]} {
    %cst = arith.constant 0.000000e+00 : f32
    %0 = vector.broadcast %cst : f32 to vector<2x640xf32>
    %c0 = arith.constant 0 : index
    %c0_0 = arith.constant 0 : index
    %1 = vector.load %arg11[%c0, %c0_0] : memref<2x640xf32, #tpu.memory_space<vmem>>, vector<2x640xf32>
    tpu.vector_store %arg11[%c0, %c0_0], %0 {strides = array<i32>} : memref<2x640xf32, #tpu.memory_space<vmem>>, vector<2x640xf32>,
    %c0_1 = arith.constant 0 : index
    %c0_2 = arith.constant 0 : index
    %c0_3 = arith.constant 0 : index
    %2 = vector.load %arg1[%c0_1, %c0_2, %c0_3] : memref<2x32x64xbf16, #tpu.memory_space<vmem>>, vector<2x32x64xbf16>
    %3 = arith.extf %2 : vector<2x32x64xbf16> to vector<2x32x64xf32>
    %cst_4 = arith.constant dense<0.000000e+00> : vector<2x32xf32>
    %4 = vector.multi_reduction <add>, %3, %cst_4 [2] : vector<2x32x64xf32> to vector<2x32xf32>
    %cst_5 = arith.constant 6.400000e+01 : f32
    %5 = vector.broadcast %cst_5 : f32 to vector<2x32xf32>
    %6 = arith.divf %4, %5 : vector<2x32xf32>
    %c0_6 = arith.constant 0 : index
    %c0_7 = arith.constant 0 : index
    %7 = vector.load %arg11[%c0_6, %c0_7] : memref<2x640xf32, #tpu.memory_space<vmem>>, vector<2x32xf32>
    tpu.vector_store %arg11[%c0_6, %c0_7], %6 {strides = array<i32>} : memref<2x640xf32, #tpu.memory_space<vmem>>, vector<2x32xf32>,
    %c0_8 = arith.constant 0 : index
    %c0_9 = arith.constant 0 : index
    %c0_10 = arith.constant 0 : index
    %8 = vector.load %arg2[%c0_8, %c0_9, %c0_10] : memref<2x64x16xbf16, #tpu.memory_space<vmem>>, vector<2x64x16xbf16>
    %9 = arith.extf %8 : vector<2x64x16xbf16> to vector<2x64x16xf32>
    %cst_11 = arith.constant dense<0.000000e+00> : vector<2x64xf32>
    %10 = vector.multi_reduction <add>, %9, %cst_11 [2] : vector<2x64x16xf32> to vector<2x64xf32>
    %cst_12 = arith.constant 1.600000e+01 : f32
    %11 = vector.broadcast %cst_12 : f32 to vector<2x64xf32>
    %12 = arith.divf %10, %11 : vector<2x64xf32>
    %c0_13 = arith.constant 0 : index
    %c128 = arith.constant 128 : index
    %13 = vector.load %arg11[%c0_13, %c128] : memref<2x640xf32, #tpu.memory_space<vmem>>, vector<2x64xf32>
    tpu.vector_store %arg11[%c0_13, %c128], %12 {strides = array<i32>} : memref<2x640xf32, #tpu.memory_space<vmem>>, vector<2x64xf32>,
    %c0_14 = arith.constant 0 : index
    %c0_15 = arith.constant 0 : index
    %c0_16 = arith.constant 0 : index
    %14 = vector.load %arg3[%c0_14, %c0_15, %c0_16] : memref<2x128x4xbf16, #tpu.memory_space<vmem>>, vector<2x128x4xbf16>
    %15 = arith.extf %14 : vector<2x128x4xbf16> to vector<2x128x4xf32>
    %cst_17 = arith.constant dense<0.000000e+00> : vector<2x128xf32>
    %16 = vector.multi_reduction <add>, %15, %cst_17 [2] : vector<2x128x4xf32> to vector<2x128xf32>
    %cst_18 = arith.constant 4.000000e+00 : f32
    %17 = vector.broadcast %cst_18 : f32 to vector<2x128xf32>
    %18 = arith.divf %16, %17 : vector<2x128xf32>
    %c0_19 = arith.constant 0 : index
    %c256 = arith.constant 256 : index
    %19 = vector.load %arg11[%c0_19, %c256] : memref<2x640xf32, #tpu.memory_space<vmem>>, vector<2x128xf32>
    tpu.vector_store %arg11[%c0_19, %c256], %18 {strides = array<i32>} : memref<2x640xf32, #tpu.memory_space<vmem>>, vector<2x128xf32>,
    %c0_20 = arith.constant 0 : index
    %c0_21 = arith.constant 0 : index
    %c0_22 = arith.constant 0 : index
    %20 = vector.load %arg4[%c0_20, %c0_21, %c0_22] : memref<2x128x4xbf16, #tpu.memory_space<vmem>>, vector<2x128x4xbf16>
    %21 = arith.extf %20 : vector<2x128x4xbf16> to vector<2x128x4xf32>
    %cst_23 = arith.constant dense<0.000000e+00> : vector<2x128xf32>
    %22 = vector.multi_reduction <add>, %21, %cst_23 [2] : vector<2x128x4xf32> to vector<2x128xf32>
    %cst_24 = arith.constant 4.000000e+00 : f32
    %23 = vector.broadcast %cst_24 : f32 to vector<2x128xf32>
    %24 = arith.divf %22, %23 : vector<2x128xf32>
    %c0_25 = arith.constant 0 : index
    %c384 = arith.constant 384 : index
    %25 = vector.load %arg11[%c0_25, %c384] : memref<2x640xf32, #tpu.memory_space<vmem>>, vector<2x128xf32>
    tpu.vector_store %arg11[%c0_25, %c384], %24 {strides = array<i32>} : memref<2x640xf32, #tpu.memory_space<vmem>>, vector<2x128xf32>,
    %c0_26 = arith.constant 0 : index
    %c0_27 = arith.constant 0 : index
    %c0_28 = arith.constant 0 : index
    %26 = vector.load %arg5[%c0_26, %c0_27, %c0_28] : memref<4x128x4xbf16, #tpu.memory_space<vmem>>, vector<4x128x4xbf16>
    %27 = arith.extf %26 : vector<4x128x4xbf16> to vector<4x128x4xf32>
    %cst_29 = arith.constant dense<0.000000e+00> : vector<4x128xf32>
    %28 = vector.multi_reduction <add>, %27, %cst_29 [2] : vector<4x128x4xf32> to vector<4x128xf32>
    %cst_30 = arith.constant 4.000000e+00 : f32
    %29 = vector.broadcast %cst_30 : f32 to vector<4x128xf32>
    %30 = arith.divf %28, %29 : vector<4x128xf32>
    %31 = vector.extract_strided_slice %30 {offsets = [0, 0], sizes = [2, 128], strides = [1, 1]} : vector<4x128xf32> to vector<2x128xf32>
    %32 = vector.extract_strided_slice %30 {offsets = [2, 0], sizes = [2, 128], strides = [1, 1]} : vector<4x128xf32> to vector<2x128xf32>
    %33 = arith.subf %31, %32 : vector<2x128xf32>
    %cst_31 = arith.constant 7.500000e+00 : f32
    %34 = vector.broadcast %cst_31 : f32 to vector<2x128xf32>
    %35 = arith.mulf %34, %33 : vector<2x128xf32>
    %36 = arith.addf %32, %35 : vector<2x128xf32>
    %c0_32 = arith.constant 0 : index
    %c512 = arith.constant 512 : index
    %37 = vector.load %arg11[%c0_32, %c512] : memref<2x640xf32, #tpu.memory_space<vmem>>, vector<2x128xf32>
    tpu.vector_store %arg11[%c0_32, %c512], %36 {strides = array<i32>} : memref<2x640xf32, #tpu.memory_space<vmem>>, vector<2x128xf32>,
    %c0_33 = arith.constant 0 : index
    %c0_34 = arith.constant 0 : index
    %38 = vector.load %arg11[%c0_33, %c0_34] : memref<2x640xf32, #tpu.memory_space<vmem>>, vector<2x640xf32>
    %39 = arith.truncf %38 : vector<2x640xf32> to vector<2x640xbf16>
    %c0_35 = arith.constant 0 : index
    %c0_36 = arith.constant 0 : index
    %40 = vector.load %arg6[%c0_35, %c0_36] : memref<640x128xbf16, #tpu.memory_space<vmem>>, vector<640x128xbf16>
    %cst_37 = arith.constant dense<0.000000e+00> : vector<2x128xf32>
    %41 = tpu.matmul %39, %40, %cst_37 {dimension_numbers = #tpu.dot_dimension_numbers<[1], [0], [0], [1], [0, 0, 1, 1], [], []>} : vector<2x640xbf16>, vector<640x128xbf16>, vector<2x128xf32> -> vector<2x128xf32>
    %c0_38 = arith.constant 0 : index
    %c0_39 = arith.constant 0 : index
    %42 = vector.load %arg9[%c0_38, %c0_39] : memref<2x128xf32, #tpu.memory_space<vmem>>, vector<2x128xf32>
    tpu.vector_store %arg9[%c0_38, %c0_39], %41 {strides = array<i32>} : memref<2x128xf32, #tpu.memory_space<vmem>>, vector<2x128xf32>,
    %c0_40 = arith.constant 0 : index
    %c0_41 = arith.constant 0 : index
    %43 = vector.load %arg7[%c0_40, %c0_41] : memref<2x128xbf16, #tpu.memory_space<vmem>>, vector<2x128xbf16>
    %c0_42 = arith.constant 0 : index
    %c0_43 = arith.constant 0 : index
    %44 = vector.load %arg8[%c0_42, %c0_43] : memref<128x128xbf16, #tpu.memory_space<vmem>>, vector<128x128xbf16>
    %cst_44 = arith.constant dense<0.000000e+00> : vector<2x128xf32>
    %45 = tpu.matmul %43, %44, %cst_44 {dimension_numbers = #tpu.dot_dimension_numbers<[1], [0], [0], [1], [0, 0, 1, 1], [], []>} : vector<2x128xbf16>, vector<128x128xbf16>, vector<2x128xf32> -> vector<2x128xf32>
    %c0_45 = arith.constant 0 : index
    %c0_46 = arith.constant 0 : index
    %46 = vector.load %arg10[%c0_45, %c0_46] : memref<2x128xf32, #tpu.memory_space<vmem>>, vector<2x128xf32>
    tpu.vector_store %arg10[%c0_45, %c0_46], %45 {strides = array<i32>} : memref<2x128xf32, #tpu.memory_space<vmem>>, vector<2x128xf32>,
    return
  }
  func.func @transform_0(%arg0: i32) -> (i32, i32, i32) {
    %c0_i32 = arith.constant 0 : i32
    %c0_i32_0 = arith.constant 0 : i32
    %c0_i32_1 = arith.constant 0 : i32
    %c0_i32_2 = arith.constant 0 : i32
    return %c0_i32, %c0_i32_0, %c0_i32_1 : i32, i32, i32
  }
  func.func @transform_1(%arg0: i32) -> (i32, i32, i32) {
    %c0_i32 = arith.constant 0 : i32
    %c0_i32_0 = arith.constant 0 : i32
    %c0_i32_1 = arith.constant 0 : i32
    %c0_i32_2 = arith.constant 0 : i32
    return %c0_i32, %c0_i32_0, %c0_i32_1 : i32, i32, i32
  }
  func.func @transform_2(%arg0: i32) -> (i32, i32, i32) {
    %c0_i32 = arith.constant 0 : i32
    %c0_i32_0 = arith.constant 0 : i32
    %c0_i32_1 = arith.constant 0 : i32
    %c0_i32_2 = arith.constant 0 : i32
    return %c0_i32, %c0_i32_0, %c0_i32_1 : i32, i32, i32
  }
  func.func @transform_3(%arg0: i32) -> (i32, i32, i32) {
    %c0_i32 = arith.constant 0 : i32
    %c0_i32_0 = arith.constant 0 : i32
    %c0_i32_1 = arith.constant 0 : i32
    %c0_i32_2 = arith.constant 0 : i32
    return %c0_i32, %c0_i32_0, %c0_i32_1 : i32, i32, i32
  }
  func.func @transform_4(%arg0: i32) -> (i32, i32, i32) {
    %c0_i32 = arith.constant 0 : i32
    %c0_i32_0 = arith.constant 0 : i32
    %c0_i32_1 = arith.constant 0 : i32
    %c0_i32_2 = arith.constant 0 : i32
    return %c0_i32, %c0_i32_0, %c0_i32_1 : i32, i32, i32
  }
  func.func @transform_5(%arg0: i32) -> (i32, i32) {
    %c0_i32 = arith.constant 0 : i32
    %c0_i32_0 = arith.constant 0 : i32
    %c0_i32_1 = arith.constant 0 : i32
    return %c0_i32, %c0_i32_0 : i32, i32
  }
  func.func @transform_6(%arg0: i32) -> (i32, i32) {
    %c0_i32 = arith.constant 0 : i32
    %c0_i32_0 = arith.constant 0 : i32
    %c0_i32_1 = arith.constant 0 : i32
    return %c0_i32, %c0_i32_0 : i32, i32
  }
  func.func @transform_7(%arg0: i32) -> (i32, i32) {
    %c0_i32 = arith.constant 0 : i32
    %c0_i32_0 = arith.constant 0 : i32
    %c0_i32_1 = arith.constant 0 : i32
    return %c0_i32, %c0_i32_0 : i32, i32
  }
  func.func @transform_8(%arg0: i32) -> (i32, i32) {
    %c0_i32 = arith.constant 0 : i32
    %c0_i32_0 = arith.constant 0 : i32
    %c0_i32_1 = arith.constant 0 : i32
    return %c0_i32, %c0_i32_0 : i32, i32
  }
  func.func @transform_9(%arg0: i32) -> (i32, i32) {
    %c0_i32 = arith.constant 0 : i32
    %c0_i32_0 = arith.constant 0 : i32
    %c0_i32_1 = arith.constant 0 : i32
    return %c0_i32, %c0_i32_0 : i32, i32
  }
}

</mosaic_0001>

<bundles_post_ra>
// kernel: sd15_preference_forward.1
= control target key start
LH: loop header
LB: loop body
LE: loop exit
PB: predicated region body
PF: predicated region fallthrough
CT: control target
= control target key end

     0   :  { %15 = vsyncpa [#allocation4], 0  ;;  %vm52_vm0 = vcmask 523264   ;;  %vm568_vm1 = vcmask 130048   ;;  %vm1579_vm2 = vcmask 31744   ;;  %s13871_s0 = inlined_call_operand.vmem [shape: bf16[4,32,64], index: 0, kind: input, shape index: {}]   ;;  %s13872_s1 = inlined_call_operand.vmem [shape: bf16[4,64,16], index: 1, kind: input, shape index: {}]   ;;  %s13873_s2 = inlined_call_operand.vmem [shape: bf16[4,128,4], index: 2, kind: input, shape index: {}]   ;;  %s13874_s3 = inlined_call_operand.vmem [shape: bf16[4,128,4], index: 3, kind: input, shape index: {}]   ;;  %s13875_s4 = inlined_call_operand.vmem [shape: bf16[4,128,4], index: 4, kind: input, shape index: {}]   ;;  %s13876_s5 = inlined_call_operand.vmem [shape: bf16[640,128], index: 5, kind: input, shape index: {}]   ;;  %s13877_s6 = inlined_call_operand.vmem [shape: bf16[2,128], index: 6, kind: input, shape index: {}]   ;;  %s13878_s7 = inlined_call_operand.vmem [shape: bf16[128,128], index: 7, kind: input, shape index: {}]   ;;  %s13879_s8 = inlined_call_operand.hbm [shape: f32[2,128], index: 8, kind: output, shape index: {0}]   ;;  %s13880_s9 = inlined_call_operand.hbm [shape: f32[2,128], index: 9, kind: output, shape index: {1}]  }
   0x1   :  { %v8574_v0 = vld [vmem:[%s13871_s0 + $0x8] sm:$0xff]   ;;  %v8271_v1 = vld [vmem:[%s13871_s0] sm:$0xff]   ;;  %v8575_v6 = vld [vmem:[%s13871_s0 + $0x10] sm:$0xff]  }
   0x2   :  { %v8276_v2 = vunpack.c.l.bf16 %v8574_v0  ;;  %v8272_v3 = vunpack.c.l.bf16 %v8271_v1  ;;  %v8277_v4 = vunpack.c.h.bf16 %v8574_v0  ;;  %v8273_v5 = vunpack.c.h.bf16 %v8271_v1  ;;  %v8576_v13 = vld [vmem:[%s13871_s0 + $0x18] sm:$0xff]   ;;  %v8287_v18 = vld [vmem:[%s13872_s1] sm:$0xff]   ;;  %v8577_v23 = vld [vmem:[%s13872_s1 + $0x8] sm:$0xff]  }
   0x3   :  { %v8281_v11 = vunpack.c.h.bf16 %v8575_v6  ;;  %v8280_v12 = vunpack.c.l.bf16 %v8575_v6  ;;  %v8285_v16 = vunpack.c.h.bf16 %v8576_v13  ;;  %v8284_v17 = vunpack.c.l.bf16 %v8576_v13  ;;  %v8578_v26 = vld [vmem:[%s13872_s1 + $0x10] sm:$0xff]   ;;  %v8579_v29 = vld [vmem:[%s13872_s1 + $0x18] sm:$0xff]   ;;  %v8580_v34 = vld [vmem:[%s13872_s1 + $0x20] sm:$0xff]  }
   0x4   :  { %v59_v7 = vsel %vm52_vm0, %v8276_v2, 0.0  ;;  %v53_v8 = vsel %vm52_vm0, %v8272_v3, 0.0  ;;  %v62_v9 = vsel %vm52_vm0, %v8277_v4, 0.0  ;;  %v56_v10 = vsel %vm52_vm0, %v8273_v5, 0.0  ;;  %v8581_v39 = vld [vmem:[%s13872_s1 + $0x28] sm:$0xff]   ;;  %v8582_v44 = vld [vmem:[%s13872_s1 + $0x30] sm:$0xff]  }
   0x5   :  { %60 = vadd.xlane.f32.xlu1 %v59_v7  ;;  %54 = vadd.xlane.f32.xlu0 %v53_v8  ;;  %v68_v14 = vsel %vm52_vm0, %v8281_v11, 0.0  ;;  %v65_v15 = vsel %vm52_vm0, %v8280_v12, 0.0  ;;  %v8288_v19 = vunpack.c.l.bf16 %v8287_v18  ;;  %v8289_v20 = vunpack.c.h.bf16 %v8287_v18  ;;  %v8583_v53 = vld [vmem:[%s13872_s1 + $0x38] sm:$0xff]   ;;  %v8319_v58 = vld [vmem:[%s13873_s2] sm:$0xff]   ;;  %v8584_v63 = vld [vmem:[%s13873_s2 + $0x8] sm:$0xff]  }
   0x6   :  { %v74_v21 = vsel %vm52_vm0, %v8285_v16, 0.0  ;;  %v71_v22 = vsel %vm52_vm0, %v8284_v17, 0.0  ;;  %v8293_v27 = vunpack.c.h.bf16 %v8577_v23  ;;  %v8292_v28 = vunpack.c.l.bf16 %v8577_v23  ;;  %v8585_v4 = vld [vmem:[%s13873_s2 + $0x10] sm:$0xff]  }
   0x7   :  { %v569_v24 = vsel %vm568_vm1, %v8288_v19, 0.0  ;;  %v572_v25 = vsel %vm568_vm1, %v8289_v20, 0.0  ;;  %v8297_v32 = vunpack.c.h.bf16 %v8578_v26  ;;  %v8296_v33 = vunpack.c.l.bf16 %v8578_v26 }
   0x8   :  { %v578_v30 = vsel %vm568_vm1, %v8293_v27, 0.0  ;;  %v575_v31 = vsel %vm568_vm1, %v8292_v28, 0.0  ;;  %v8301_v37 = vunpack.c.h.bf16 %v8579_v29  ;;  %v8300_v38 = vunpack.c.l.bf16 %v8579_v29 }
   0x9   :  { %63 = vadd.xlane.f32.xlu1 %v62_v9  ;;  %57 = vadd.xlane.f32.xlu0 %v56_v10  ;;  %v584_v35 = vsel %vm568_vm1, %v8297_v32, 0.0  ;;  %v581_v36 = vsel %vm568_vm1, %v8296_v33, 0.0  ;;  %v8305_v42 = vunpack.c.h.bf16 %v8580_v34  ;;  %v8304_v43 = vunpack.c.l.bf16 %v8580_v34  ;;  %v8586_v9 = vld [vmem:[%s13873_s2 + $0x18] sm:$0xff]   ;;  %v8587_v10 = vld [vmem:[%s13873_s2 + $0x20] sm:$0xff]  }
   0xa   :  { %v590_v40 = vsel %vm568_vm1, %v8301_v37, 0.0  ;;  %v587_v41 = vsel %vm568_vm1, %v8300_v38, 0.0  ;;  %v8309_v47 = vunpack.c.h.bf16 %v8581_v39  ;;  %v8308_v48 = vunpack.c.l.bf16 %v8581_v39 }
   0xb   :  { %v596_v45 = vsel %vm568_vm1, %v8305_v42, 0.0  ;;  %v593_v46 = vsel %vm568_vm1, %v8304_v43, 0.0  ;;  %v8313_v51 = vunpack.c.h.bf16 %v8582_v44  ;;  %v8312_v52 = vunpack.c.l.bf16 %v8582_v44 }
   0xc   :  { %v602_v49 = vsel %vm568_vm1, %v8309_v47, 0.0  ;;  %v599_v50 = vsel %vm568_vm1, %v8308_v48, 0.0  ;;  %v8317_v56 = vunpack.c.h.bf16 %v8583_v53  ;;  %v8316_v57 = vunpack.c.l.bf16 %v8583_v53 }
   0xd   :  { %69 = vadd.xlane.f32.xlu1 %v68_v14  ;;  %66 = vadd.xlane.f32.xlu0 %v65_v15  ;;  %v608_v54 = vsel %vm568_vm1, %v8313_v51, 0.0  ;;  %v605_v55 = vsel %vm568_vm1, %v8312_v52, 0.0  ;;  %v8320_v61 = vunpack.c.l.bf16 %v8319_v58  ;;  %v8321_v62 = vunpack.c.h.bf16 %v8319_v58  ;;  %v8588_v15 = vld [vmem:[%s13873_s2 + $0x28] sm:$0xff]  }
   0xe   :  { %v614_v59 = vsel %vm568_vm1, %v8317_v56, 0.0  ;;  %v611_v60 = vsel %vm568_vm1, %v8316_v57, 0.0  ;;  %v8325_v2 = vunpack.c.h.bf16 %v8584_v63  ;;  %v8324_v3 = vunpack.c.l.bf16 %v8584_v63 }
   0xf   :  { %v1580_v0 = vsel %vm1579_vm2, %v8320_v61, 0.0  ;;  %v1583_v1 = vsel %vm1579_vm2, %v8321_v62, 0.0  ;;  %v8329_v7 = vunpack.c.h.bf16 %v8585_v4  ;;  %v8328_v8 = vunpack.c.l.bf16 %v8585_v4 }
  0x10   :  { %v1589_v5 = vsel %vm1579_vm2, %v8325_v2, 0.0  ;;  %v1586_v6 = vsel %vm1579_vm2, %v8324_v3, 0.0  ;;  %v8333_v13 = vunpack.c.h.bf16 %v8586_v9  ;;  %v8332_v14 = vunpack.c.l.bf16 %v8586_v9 }
  0x11   :  { %75 = vadd.xlane.f32.xlu1 %v74_v21  ;;  %72 = vadd.xlane.f32.xlu0 %v71_v22  ;;  %v1595_v11 = vsel %vm1579_vm2, %v8329_v7, 0.0  ;;  %v1592_v12 = vsel %vm1579_vm2, %v8328_v8, 0.0  ;;  %v8337_v18 = vunpack.c.h.bf16 %v8587_v10  ;;  %v8336_v19 = vunpack.c.l.bf16 %v8587_v10 }
  0x12   :  { %v1601_v16 = vsel %vm1579_vm2, %v8333_v13, 0.0  ;;  %v1598_v17 = vsel %vm1579_vm2, %v8332_v14, 0.0 }
  0x15   :  { %570 = vadd.xlane.f32.xlu1 %v569_v24  ;;  %573 = vadd.xlane.f32.xlu0 %v572_v25 }
  0x19   :  { %579 = vadd.xlane.f32.xlu1 %v578_v30  ;;  %576 = vadd.xlane.f32.xlu0 %v575_v31 }
  0x1d   :  { %585 = vadd.xlane.f32.xlu1 %v584_v35  ;;  %582 = vadd.xlane.f32.xlu0 %v581_v36 }
  0x21   :  { %591 = vadd.xlane.f32.xlu1 %v590_v40  ;;  %588 = vadd.xlane.f32.xlu0 %v587_v41 }
  0x25   :  { %597 = vadd.xlane.f32.xlu1 %v596_v45  ;;  %594 = vadd.xlane.f32.xlu0 %v593_v46 }
  0x29   :  { %603 = vadd.xlane.f32.xlu1 %v602_v49  ;;  %600 = vadd.xlane.f32.xlu0 %v599_v50 }
  0x2d   :  { %609 = vadd.xlane.f32.xlu1 %v608_v54  ;;  %606 = vadd.xlane.f32.xlu0 %v605_v55 }
  0x31   :  { %615 = vadd.xlane.f32.xlu1 %v614_v59  ;;  %612 = vadd.xlane.f32.xlu0 %v611_v60 }
  0x35   :  { %1581 = vadd.xlane.f32.xlu1 %v1580_v0  ;;  %1584 = vadd.xlane.f32.xlu0 %v1583_v1 }
  0x39   :  { %1590 = vadd.xlane.f32.xlu1 %v1589_v5  ;;  %1587 = vadd.xlane.f32.xlu0 %v1586_v6 }
  0x3d   :  { %1596 = vadd.xlane.f32.xlu1 %v1595_v11  ;;  %1593 = vadd.xlane.f32.xlu0 %v1592_v12 }
  0x41   :  { %1602 = vadd.xlane.f32.xlu1 %v1601_v16  ;;  %1599 = vadd.xlane.f32.xlu0 %v1598_v17 }
  0x42   :  { %16 = vsyncpa [#allocation6], 0  ;;  %v1607_v20 = vsel %vm1579_vm2, %v8337_v18, 0.0  ;;  %v1604_v21 = vsel %vm1579_vm2, %v8336_v19, 0.0  ;;  %v8341_v22 = vunpack.c.h.bf16 %v8588_v15  ;;  %v8340_v23 = vunpack.c.l.bf16 %v8588_v15  ;;  %v8589_v24 = vld [vmem:[%s13873_s2 + $0x30] sm:$0xff]   ;;  %v8590_v29 = vld [vmem:[%s13873_s2 + $0x38] sm:$0xff]  }
  0x43   :  { %v8345_v27 = vunpack.c.h.bf16 %v8589_v24  ;;  %v8344_v28 = vunpack.c.l.bf16 %v8589_v24  ;;  %v8349_v32 = vunpack.c.h.bf16 %v8590_v29  ;;  %v8348_v33 = vunpack.c.l.bf16 %v8590_v29  ;;  %v8591_v34 = vld [vmem:[%s13873_s2 + $0x40] sm:$0xff]   ;;  %v8592_v39 = vld [vmem:[%s13873_s2 + $0x48] sm:$0xff]   ;;  %v8593_v44 = vld [vmem:[%s13873_s2 + $0x50] sm:$0xff]  }
  0x44   :  { %v1613_v25 = vsel %vm1579_vm2, %v8341_v22, 0.0  ;;  %v1610_v26 = vsel %vm1579_vm2, %v8340_v23, 0.0  ;;  %v8353_v37 = vunpack.c.h.bf16 %v8591_v34  ;;  %v8352_v38 = vunpack.c.l.bf16 %v8591_v34  ;;  %v8594_v49 = vld [vmem:[%s13873_s2 + $0x58] sm:$0xff]   ;;  %v8595_v54 = vld [vmem:[%s13873_s2 + $0x60] sm:$0xff]   ;;  %v8596_v59 = vld [vmem:[%s13873_s2 + $0x68] sm:$0xff]  }
  0x45   :  { %1608 = vadd.xlane.f32.xlu1 %v1607_v20  ;;  %1605 = vadd.xlane.f32.xlu0 %v1604_v21  ;;  %v1619_v30 = vsel %vm1579_vm2, %v8345_v27, 0.0  ;;  %v1616_v31 = vsel %vm1579_vm2, %v8344_v28, 0.0  ;;  %v1625_v35 = vsel %vm1579_vm2, %v8349_v32, 0.0  ;;  %v1622_v36 = vsel %vm1579_vm2, %v8348_v33, 0.0  ;;  %v8597_v0 = vld [vmem:[%s13873_s2 + $0x70] sm:$0xff]   ;;  %v8598_v5 = vld [vmem:[%s13873_s2 + $0x78] sm:$0xff]  }
  0x46   :  { %v1631_v40 = vsel %vm1579_vm2, %v8353_v37, 0.0  ;;  %v1628_v41 = vsel %vm1579_vm2, %v8352_v38, 0.0  ;;  %v8357_v42 = vunpack.c.h.bf16 %v8592_v39  ;;  %v8356_v43 = vunpack.c.l.bf16 %v8592_v39  ;;  %v8383_v10 = vld [vmem:[%s13874_s3] sm:$0xff]   ;;  %v8599_v15 = vld [vmem:[%s13874_s3 + $0x8] sm:$0xff]   ;;  %v8600_v20 = vld [vmem:[%s13874_s3 + $0x10] sm:$0xff]  }
  0x47   :  { %v8361_v47 = vunpack.c.h.bf16 %v8593_v44  ;;  %v8360_v48 = vunpack.c.l.bf16 %v8593_v44  ;;  %v8365_v52 = vunpack.c.h.bf16 %v8594_v49  ;;  %v8364_v53 = vunpack.c.l.bf16 %v8594_v49 }
  0x48   :  { %v1637_v45 = vsel %vm1579_vm2, %v8357_v42, 0.0  ;;  %v1634_v46 = vsel %vm1579_vm2, %v8356_v43, 0.0  ;;  %v8369_v57 = vunpack.c.h.bf16 %v8595_v54  ;;  %v8368_v58 = vunpack.c.l.bf16 %v8595_v54 }
  0x49   :  { %1614 = vadd.xlane.f32.xlu1 %v1613_v25  ;;  %1611 = vadd.xlane.f32.xlu0 %v1610_v26  ;;  %v1643_v50 = vsel %vm1579_vm2, %v8361_v47, 0.0  ;;  %v1640_v51 = vsel %vm1579_vm2, %v8360_v48, 0.0  ;;  %v1649_v55 = vsel %vm1579_vm2, %v8365_v52, 0.0  ;;  %v1646_v56 = vsel %vm1579_vm2, %v8364_v53, 0.0  ;;  %v8601_v25 = vld [vmem:[%s13874_s3 + $0x18] sm:$0xff]  }
  0x4a   :  { %v1655_v60 = vsel %vm1579_vm2, %v8369_v57, 0.0  ;;  %v1652_v61 = vsel %vm1579_vm2, %v8368_v58, 0.0  ;;  %v8373_v62 = vunpack.c.h.bf16 %v8596_v59  ;;  %v8372_v63 = vunpack.c.l.bf16 %v8596_v59 }
  0x4b   :  { %v8377_v3 = vunpack.c.h.bf16 %v8597_v0  ;;  %v8376_v4 = vunpack.c.l.bf16 %v8597_v0  ;;  %v8381_v8 = vunpack.c.h.bf16 %v8598_v5  ;;  %v8380_v9 = vunpack.c.l.bf16 %v8598_v5 }
  0x4c   :  { %v1661_v1 = vsel %vm1579_vm2, %v8373_v62, 0.0  ;;  %v1658_v2 = vsel %vm1579_vm2, %v8372_v63, 0.0  ;;  %v8384_v13 = vunpack.c.l.bf16 %v8383_v10  ;;  %v8385_v14 = vunpack.c.h.bf16 %v8383_v10  ;;  %v8608_v62 = vld [vmem:[%s13874_s3 + $0x50] sm:$0xff]   ;;  %v8609_v10 = vld [vmem:[%s13874_s3 + $0x58] sm:$0xff]  }
  0x4d   :  { %1620 = vadd.xlane.f32.xlu1 %v1619_v30  ;;  %1617 = vadd.xlane.f32.xlu0 %v1616_v31  ;;  %v1667_v6 = vsel %vm1579_vm2, %v8377_v3, 0.0  ;;  %v1664_v7 = vsel %vm1579_vm2, %v8376_v4, 0.0  ;;  %v1673_v11 = vsel %vm1579_vm2, %v8381_v8, 0.0  ;;  %v1670_v12 = vsel %vm1579_vm2, %v8380_v9, 0.0  ;;  %v8602_v30 = vld [vmem:[%s13874_s3 + $0x20] sm:$0xff]  }
  0x4e   :  { %v3525_v16 = vsel %vm1579_vm2, %v8384_v13, 0.0  ;;  %v3528_v17 = vsel %vm1579_vm2, %v8385_v14, 0.0  ;;  %v8389_v18 = vunpack.c.h.bf16 %v8599_v15  ;;  %v8388_v19 = vunpack.c.l.bf16 %v8599_v15 }
  0x4f   :  { %v8393_v23 = vunpack.c.h.bf16 %v8600_v20  ;;  %v8392_v24 = vunpack.c.l.bf16 %v8600_v20  ;;  %v8397_v28 = vunpack.c.h.bf16 %v8601_v25  ;;  %v8396_v29 = vunpack.c.l.bf16 %v8601_v25  ;;  %v8612_v25 = vld [vmem:[%s13874_s3 + $0x70] sm:$0xff]  }
  0x50   :  { %v3534_v21 = vsel %vm1579_vm2, %v8389_v18, 0.0  ;;  %v3531_v22 = vsel %vm1579_vm2, %v8388_v19, 0.0  ;;  %v8401_v33 = vunpack.c.h.bf16 %v8602_v30  ;;  %v8400_v34 = vunpack.c.l.bf16 %v8602_v30  ;;  %v8613_v30 = vld [vmem:[%s13874_s3 + $0x78] sm:$0xff]  }
  0x51   :  { %1626 = vadd.xlane.f32.xlu1 %v1625_v35  ;;  %1623 = vadd.xlane.f32.xlu0 %v1622_v36  ;;  %v3540_v26 = vsel %vm1579_vm2, %v8393_v23, 0.0  ;;  %v3537_v27 = vsel %vm1579_vm2, %v8392_v24, 0.0  ;;  %v3546_v31 = vsel %vm1579_vm2, %v8397_v28, 0.0  ;;  %v3543_v32 = vsel %vm1579_vm2, %v8396_v29, 0.0  ;;  %v8603_v35 = vld [vmem:[%s13874_s3 + $0x28] sm:$0xff]  }
  0x52   :  { %v3552_v36 = vsel %vm1579_vm2, %v8401_v33, 0.0  ;;  %v3549_v37 = vsel %vm1579_vm2, %v8400_v34, 0.0  ;;  %v8405_v38 = vunpack.c.h.bf16 %v8603_v35  ;;  %v8404_v39 = vunpack.c.l.bf16 %v8603_v35 }
  0x53   :  { %v8856_v63 = vmov 269488144   ;;  %v8425_v5 = vunpack.c.h.bf16 %v8608_v62  ;;  %v8424_v9 = vunpack.c.l.bf16 %v8608_v62  ;;  %v8858_v13 = vmov 1414812756  }
  0x54   :  { %v3555_v42 = vsel %vm1579_vm2, %v8404_v39, 0.0  ;;  %v95_v0 = vunpack.c.l.s4 %v8856_v63  ;;  %v109_v14 = vunpack.c.l.s4 %v8858_v13  ;;  %v8859_v15 = vmov 1987475062  }
  0x55   :  { %1632 = vadd.xlane.f32.xlu1 %v1631_v40  ;;  %1629 = vadd.xlane.f32.xlu0 %v1628_v41  ;;  %v8604_v40 = vld [vmem:[%s13874_s3 + $0x30] sm:$0xff]   ;;  %v3558_v41 = vsel %vm1579_vm2, %v8405_v38, 0.0  ;;  %v3588_v19 = vsel %vm1579_vm2, %v8425_v5, 0.0  ;;  %v8429_v20 = vunpack.c.h.bf16 %v8609_v10  ;;  %v3585_v23 = vsel %vm1579_vm2, %v8424_v9, 0.0 }
  0x56   :  { %v8409_v43 = vunpack.c.h.bf16 %v8604_v40  ;;  %v8408_v44 = vunpack.c.l.bf16 %v8604_v40  ;;  %v8428_v24 = vunpack.c.l.bf16 %v8609_v10  ;;  %v110_v28 = vunpack.c.0.s8 %v109_v14 }
  0x57   :  { %v8860_v35 = vmov 1983009808   ;;  %v3594_v39 = vsel %vm1579_vm2, %v8429_v20, 0.0  ;;  %v8615_v20 = vld [vmem:[%s13875_s4 + $0x10] sm:$0xff]   ;;  %vm489_vm3 = vcmask 130112   ;;  %vm496_vm4 = vcmask 195712  }
  0x58   :  { %v3561_v47 = vsel %vm1579_vm2, %v8408_v44, 0.0  ;;  %v8445_v44 = vunpack.c.h.bf16 %v8613_v30  ;;  %vm1442_vm5 = vcmask 326912   ;;  %vm503_vm6 = vcmask 261312  }
  0x59   :  { %1638 = vadd.xlane.f32.xlu1 %v1637_v45  ;;  %1635 = vadd.xlane.f32.xlu0 %v1634_v46  ;;  %v8605_v45 = vld [vmem:[%s13874_s3 + $0x38] sm:$0xff]   ;;  %v3564_v46 = vsel %vm1579_vm2, %v8409_v43, 0.0  ;;  %v3591_v43 = vsel %vm1579_vm2, %v8428_v24, 0.0  ;;  %v8631_v24 = vld [vmem:[%s13875_s4 + $0x90] sm:$0xff]   ;;  %vm1449_vm7 = vcmask 392512   ;;  %vm1456_vm8 = vcmask 458112  }
  0x5a   :  { %v8413_v48 = vunpack.c.h.bf16 %v8605_v45  ;;  %v8412_v49 = vunpack.c.l.bf16 %v8605_v45  ;;  %v8444_v45 = vunpack.c.l.bf16 %v8613_v30  ;;  %vm14031_vm9 = vcmask 1041409  }
  0x5b   :  { %vm1463_vm10 = vcmask 523712   ;;  %vm534_vm11 = vcmask 254976   ;;  %vm1513_vm12 = vcmask 517120   ;;  %vm3321_vm13 = vcmask 589312  }
  0x5c   :  { %v3567_v52 = vsel %vm1579_vm2, %v8412_v49, 0.0  ;;  %vm3328_vm14 = vcmask 654912   ;;  %vm3335_vm15 = vcmask 720512   ;;  %vm3342_vm0 = vcmask 786112  }
  0x5d   :  { %1644 = vadd.xlane.f32.xlu1 %v1643_v50  ;;  %1641 = vadd.xlane.f32.xlu0 %v1640_v51  ;;  %v8606_v50 = vld [vmem:[%s13874_s3 + $0x40] sm:$0xff]   ;;  %v3570_v51 = vsel %vm1579_vm2, %v8413_v48, 0.0  ;;  %vm3349_vm1 = vcmask 851712  }
  0x5e   :  { %v8417_v53 = vunpack.c.h.bf16 %v8606_v50  ;;  %v8416_v54 = vunpack.c.l.bf16 %v8606_v50 }
  0x60   :  { %v3576_v58 = vsel %vm1579_vm2, %v8417_v53, 0.0 }
  0x61   :  { %1650 = vadd.xlane.f32.xlu1 %v1649_v55  ;;  %1647 = vadd.xlane.f32.xlu0 %v1646_v56  ;;  %v8607_v55 = vld [vmem:[%s13874_s3 + $0x48] sm:$0xff]  }
  0x62   :  { %v8421_v59 = vunpack.c.h.bf16 %v8607_v55 }
  0x64   :  { %v3582_v4 = vsel %vm1579_vm2, %v8421_v59, 0.0  ;;  %v8614_v59 = vld [vmem:[%s13875_s4 + $0x8] sm:$0xff]  }
  0x65   :  { %1656 = vadd.xlane.f32.xlu1 %v1655_v60  ;;  %1653 = vadd.xlane.f32.xlu0 %v1652_v61  ;;  %v3573_v60 = vsel %vm1579_vm2, %v8416_v54, 0.0  ;;  %v8420_v61 = vunpack.c.l.bf16 %v8607_v55  ;;  %v8453_v30 = vunpack.c.h.bf16 %v8614_v59 }
  0x67   :  { %v3579_v8 = vsel %vm1579_vm2, %v8420_v61, 0.0 }
  0x69   :  { %1662 = vadd.xlane.f32.xlu1 %v1661_v1  ;;  %1659 = vadd.xlane.f32.xlu0 %v1658_v2  ;;  %v13881_v1 = vlaneseq }
  0x6d   :  { %1668 = vadd.xlane.f32.xlu1 %v1667_v6  ;;  %1665 = vadd.xlane.f32.xlu0 %v1664_v7  ;;  %v8857_v6 = vmov 842150450  }
  0x6e   :  { %v102_v7 = vunpack.c.l.s4 %v8857_v6  ;;  %v8630_v6 = vld [vmem:[%s13875_s4 + $0x88] sm:$0xff]  }
  0x71   :  { %1674 = vadd.xlane.f32.xlu1 %v1673_v11  ;;  %1671 = vadd.xlane.f32.xlu0 %v1670_v12  ;;  %v96_v11 = vunpack.c.0.s8 %v95_v0  ;;  %v9121_v12 = vshrl.u32 %v13881_v1, 7 }
  0x73   :  { %14032 = vst [vmem:[#allocation9_spill] sm:$0xff] %v9121_v12  ;;  %v9160_v49 = vsub.s32 %v110_v28, %v9121_v12 }
  0x75   :  { %3526 = vadd.xlane.f32.xlu1 %v3525_v16  ;;  %3529 = vadd.xlane.f32.xlu0 %v3528_v17  ;;  %v116_v16 = vunpack.c.l.s4 %v8859_v15 }
  0x77   :  { %v117_v29 = vunpack.c.0.s8 %v116_v16  ;;  %v8452_v16 = vunpack.c.l.bf16 %v8614_v59 }
  0x79   :  { %3535 = vadd.xlane.f32.xlu1 %v3534_v21  ;;  %3532 = vadd.xlane.f32.xlu0 %v3531_v22  ;;  %v8610_v21 = vld [vmem:[%s13874_s3 + $0x60] sm:$0xff]   ;;  %v8611_v22 = vld [vmem:[%s13874_s3 + $0x68] sm:$0xff]   ;;  %v9163_v50 = vsub.s32 %v117_v29, %v9121_v12 }
  0x7a   :  { %v8432_v33 = vunpack.c.l.bf16 %v8610_v21  ;;  %v8437_v34 = vunpack.c.h.bf16 %v8611_v22  ;;  %v8436_v40 = vunpack.c.l.bf16 %v8611_v22  ;;  %v8516_v22 = vunpack.c.l.bf16 %v8630_v6 }
  0x7c   :  { %v3597_v54 = vsel %vm1579_vm2, %v8432_v33, 0.0  ;;  %v3606_v55 = vsel %vm1579_vm2, %v8437_v34, 0.0  ;;  %v3603_v63 = vsel %vm1579_vm2, %v8436_v40, 0.0 }
  0x7d   :  { %3541 = vadd.xlane.f32.xlu1 %v3540_v26  ;;  %3538 = vadd.xlane.f32.xlu0 %v3537_v27  ;;  %v9139_v26 = vsub.s32 %v96_v11, %v9121_v12  ;;  %v103_v27 = vunpack.c.0.s8 %v102_v7  ;;  %v9190_v7 = vsel %vm1579_vm2, %v8445_v44, 0.0  ;;  %v8622_v11 = vld [vmem:[%s13875_s4 + $0x48] sm:$0xff]  }
  0x7f   :  { %v9157_v48 = vsub.s32 %v103_v27, %v9121_v12 }
  0x81   :  { %3547 = vadd.xlane.f32.xlu1 %v3546_v31  ;;  %3544 = vadd.xlane.f32.xlu0 %v3543_v32  ;;  %v8447_v31 = vld [vmem:[%s13875_s4] sm:$0xff]   ;;  %v8433_v32 = vunpack.c.h.bf16 %v8610_v21 }
  0x83   :  { %v3600_v53 = vsel %vm1579_vm2, %v8433_v32, 0.0  ;;  %v8517_v32 = vunpack.c.h.bf16 %v8630_v6 }
  0x85   :  { %3553 = vadd.xlane.f32.xlu1 %v3552_v36  ;;  %3550 = vadd.xlane.f32.xlu0 %v3549_v37  ;;  %v321_v36 = vunpack.c.l.s4 %v8860_v35  ;;  %v8456_v35 = vunpack.c.l.bf16 %v8615_v20  ;;  %v9264_v59 = vsel %vm1579_vm2, %v8517_v32, 0.0 }
  0x87   :  { %v9273_v6 = vsel %vm1579_vm2, %v8456_v35, 0.0 }
  0x89   :  { %3559 = vadd.xlane.f32.xlu1 %v3558_v41  ;;  %3556 = vadd.xlane.f32.xlu0 %v3555_v42  ;;  %v8441_v41 = vunpack.c.h.bf16 %v8612_v25  ;;  %v8440_v42 = vunpack.c.l.bf16 %v8612_v25 }
  0x8b   :  { %v3612_v0 = vsel %vm1579_vm2, %v8441_v41, 0.0  ;;  %v9233_v41 = vsel %vm1579_vm2, %v8452_v16, 0.0  ;;  %v8521_v16 = vunpack.c.h.bf16 %v8631_v24 }
  0x8d   :  { %3565 = vadd.xlane.f32.xlu1 %v3564_v46  ;;  %3562 = vadd.xlane.f32.xlu0 %v3561_v47  ;;  %v8449_v46 = vunpack.c.h.bf16 %v8447_v31  ;;  %v8629_v47 = vld [vmem:[%s13875_s4 + $0x80] sm:$0xff]  }
  0x8e   :  { %v8512_v5 = vunpack.c.l.bf16 %v8629_v47  ;;  %v8513_v21 = vunpack.c.h.bf16 %v8629_v47 }
  0x8f   :  { %v9196_v9 = vsel %vm1579_vm2, %v8449_v46, 0.0 }
  0x90   :  { %v9221_v29 = vsel %vm1579_vm2, %v8512_v5, 0.0  ;;  %v9239_v44 = vsel %vm1579_vm2, %v8513_v21, 0.0  ;;  %v8632_v5 = vld [vmem:[%s13875_s4 + $0x98] sm:$0xff]  }
  0x91   :  { %3571 = vadd.xlane.f32.xlu1 %v3570_v51  ;;  %3568 = vadd.xlane.f32.xlu0 %v3567_v52  ;;  %v8448_v51 = vunpack.c.l.bf16 %v8447_v31  ;;  %v8621_v52 = vld [vmem:[%s13875_s4 + $0x40] sm:$0xff]   ;;  %v8484_v31 = vunpack.c.l.bf16 %v8622_v11  ;;  %v8640_v21 = vld [vmem:[%s13875_s4 + $0xd8] sm:$0xff]  }
  0x92   :  { %v9102_v56 = vpop.xlane.xlu1 %60  ;;  %v9104_v57 = vpop.xlane.xlu0 %54  ;;  %v8480_v10 = vunpack.c.l.bf16 %v8621_v52  ;;  %v8481_v15 = vunpack.c.h.bf16 %v8621_v52  ;;  %v8616_v52 = vld [vmem:[%s13875_s4 + $0x18] sm:$0xff]  }
  0x93   :  { %v9202_v13 = vsel %vm1579_vm2, %v8448_v51, 0.0  ;;  %v8639_v51 = vld [vmem:[%s13875_s4 + $0xd0] sm:$0xff]  }
  0x94   :  { %v9224_v33 = vsel %vm1579_vm2, %v8480_v10, 0.0  ;;  %v9230_v40 = vsel %vm1579_vm2, %v8481_v15, 0.0  ;;  %v8553_v32 = vunpack.c.h.bf16 %v8639_v51 }
  0x95   :  { %3577 = vadd.xlane.f32.xlu1 %v3576_v58  ;;  %3574 = vadd.xlane.f32.xlu0 %v3573_v60  ;;  %v8637_v58 = vld [vmem:[%s13875_s4 + $0xc0] sm:$0xff]   ;;  %v322_v60 = vunpack.c.0.s8 %v321_v36  ;;  %v8485_v36 = vunpack.c.h.bf16 %v8622_v11 }
  0x96   :  { %v9111_v2 = vpop.xlane.xlu1 %63  ;;  %v9113_v3 = vpop.xlane.xlu0 %57  ;;  %v8544_v14 = vunpack.c.l.bf16 %v8637_v58 }
  0x97   :  { %v9214_v25 = vsub.s32 %v322_v60, %v9121_v12  ;;  %v8457_v60 = vunpack.c.h.bf16 %v8615_v20  ;;  %v9276_v10 = vsel %vm1579_vm2, %v8485_v36, 0.0  ;;  %v8460_v20 = vunpack.c.l.bf16 %v8616_v52 }
  0x99   :  { %3583 = vadd.xlane.f32.xlu1 %v3582_v4  ;;  %3580 = vadd.xlane.f32.xlu0 %v3579_v8  ;;  %v9184_v4 = vsel %vm1579_vm2, %v8440_v42, 0.0  ;;  %v9193_v8 = vsel %vm1579_vm2, %v8444_v45, 0.0  ;;  %v8520_v42 = vunpack.c.l.bf16 %v8631_v24  ;;  %v9242_v45 = vsel %vm1579_vm2, %v8516_v22, 0.0  ;;  %v8617_v22 = vld [vmem:[%s13875_s4 + $0x20] sm:$0xff]  }
  0x9a   :  { %v9123_v17 = vpop.xlane.xlu1 %69  ;;  %v9125_v18 = vpop.xlane.xlu0 %66  ;;  %v8633_v24 = vld [vmem:[%s13875_s4 + $0xa0] sm:$0xff]   ;;  %v9302_v36 = vsel %vm1579_vm2, %v8457_v60, 0.0  ;;  %v8464_v1 = vunpack.c.l.bf16 %v8617_v22 }
  0x9b   :  { %v9282_v15 = vsel %vm1579_vm2, %v8520_v42, 0.0  ;;  %v8528_v60 = vunpack.c.l.bf16 %v8633_v24 }
  0x9c   :  { %14033 = vst [vmem:[#allocation10_spill] sm:$0xff] %v9282_v15  ;;  %v9314_v15 = vsel %vm1579_vm2, %v8460_v20, 0.0  ;;  %v8618_v20 = vld [vmem:[%s13875_s4 + $0x28] sm:$0xff]  }
  0x9d   :  { %3589 = vadd.xlane.f32.xlu1 %v3588_v19  ;;  %3586 = vadd.xlane.f32.xlu0 %v3585_v23  ;;  %v8638_v19 = vld [vmem:[%s13875_s4 + $0xc8] sm:$0xff]   ;;  %v8545_v23 = vunpack.c.h.bf16 %v8637_v58  ;;  %v9261_v58 = vsel %vm1579_vm2, %v8484_v31, 0.0  ;;  %v8524_v31 = vunpack.c.l.bf16 %v8632_v5  ;;  %14037 = vst [vmem:[#allocation14_spill] sm:$0xff] %v9314_v15  ;;  %v8469_v15 = vunpack.c.h.bf16 %v8618_v20 }
  0x9e   :  { %v9147_v37 = vpop.xlane.xlu1 %75  ;;  %v9149_v38 = vpop.xlane.xlu0 %72  ;;  %v8548_v34 = vunpack.c.l.bf16 %v8638_v19  ;;  %v8549_v47 = vunpack.c.h.bf16 %v8638_v19  ;;  %v8552_v19 = vunpack.c.l.bf16 %v8639_v51  ;;  %v8556_v51 = vunpack.c.l.bf16 %v8640_v21 }
  0x9f   :  { %v9245_v46 = vsel %vm1579_vm2, %v8545_v23, 0.0 }
  0xa0   :  { %v9291_v23 = vsel %vm1579_vm2, %v8549_v47, 0.0  ;;  %v8525_v47 = vunpack.c.h.bf16 %v8632_v5 }
  0xa1   :  { %3595 = vadd.xlane.f32.xlu1 %v3594_v39  ;;  %3592 = vadd.xlane.f32.xlu0 %v3591_v43  ;;  %v9227_v39 = vsel %vm1579_vm2, %v8544_v14, 0.0  ;;  %v8623_v43 = vld [vmem:[%s13875_s4 + $0x50] sm:$0xff]   ;;  %v8624_v14 = vld [vmem:[%s13875_s4 + $0x58] sm:$0xff]   ;;  %14034 = vst [vmem:[#allocation11_spill] sm:$0xff] %v9291_v23  ;;  %v9308_v23 = vsel %vm1579_vm2, %v8521_v16, 0.0  ;;  %v8557_v16 = vunpack.c.h.bf16 %v8640_v21 }
  0xa2   :  { %v9177_v61 = vpop.xlane.xlu1 %570  ;;  %v9179_v62 = vpop.xlane.xlu0 %573  ;;  %v8488_v11 = vunpack.c.l.bf16 %v8623_v43  ;;  %v8492_v42 = vunpack.c.l.bf16 %v8624_v14  ;;  %v8493_v12 = vunpack.c.h.bf16 %v8624_v14  ;;  %14035 = vst [vmem:[#allocation12_spill] sm:$0xff] %v9308_v23  ;;  %v9327_v14 = vsel %vm1579_vm2, %v8553_v32, 0.0 }
  0xa3   :  { %14040 = vst [vmem:[#allocation17_spill] sm:$0xff] %v9327_v14  ;;  %v9347_v21 = vsel %vm1579_vm2, %v8525_v47, 0.0  ;;  %v8465_v14 = vunpack.c.h.bf16 %v8617_v22  ;;  %v9365_v22 = vsel %vm1579_vm2, %v8528_v60, 0.0  ;;  %v8529_v47 = vunpack.c.h.bf16 %v8633_v24 }
  0xa4   :  { %v9344_v32 = vsel %vm1579_vm2, %v8492_v42, 0.0  ;;  %14043 = vst [vmem:[#allocation20_spill] sm:$0xff] %v9347_v21  ;;  %v8626_v42 = vld [vmem:[%s13875_s4 + $0x68] sm:$0xff]   ;;  %14047 = vst [vmem:[#allocation24_spill] sm:$0xff] %v9365_v22 }
  0xa5   :  { %3601 = vadd.xlane.f32.xlu1 %v3600_v53  ;;  %3598 = vadd.xlane.f32.xlu0 %v3597_v54  ;;  %14042 = vst [vmem:[#allocation19_spill] sm:$0xff] %v9344_v32  ;;  %v8468_v32 = vunpack.c.l.bf16 %v8618_v20  ;;  %v9410_v20 = vmul.f32 0.015625, %v9104_v57  ;;  %v9429_v57 = vsel %vm1579_vm2, %v8469_v15, 0.0  ;;  %v9450_v15 = vld [vmem:[%s13875_s4 + $0x70] sm:$0xff]  }
  0xa6   :  { %v9216_v27 = vpop.xlane.xlu1 %579  ;;  %v9218_v28 = vpop.xlane.xlu0 %576  ;;  %14053 = vst [vmem:[#allocation30_spill] sm:$0xff] %v9429_v57 }
  0xa9   :  { %3607 = vadd.xlane.f32.xlu1 %v3606_v55  ;;  %3604 = vadd.xlane.f32.xlu0 %v3603_v63  ;;  %v9258_v55 = vsel %vm1579_vm2, %v8453_v30, 0.0  ;;  %v9270_v63 = vsel %vm1579_vm2, %v8548_v34, 0.0  ;;  %v8489_v30 = vunpack.c.h.bf16 %v8623_v43  ;;  %v9305_v43 = vsel %vm1579_vm2, %v8488_v11, 0.0 }
  0xaa   :  { %v9253_v53 = vpop.xlane.xlu1 %585  ;;  %v9255_v54 = vpop.xlane.xlu0 %582  ;;  %v9324_v11 = vsel %vm1579_vm2, %v8524_v31, 0.0 }
  0xab   :  { %v9321_v5 = vsel %vm1579_vm2, %v8489_v30, 0.0  ;;  %14039 = vst [vmem:[#allocation16_spill] sm:$0xff] %v9324_v11  ;;  %v8634_v11 = vld [vmem:[%s13875_s4 + $0xa8] sm:$0xff]  }
  0xac   :  { %14038 = vst [vmem:[#allocation15_spill] sm:$0xff] %v9321_v5  ;;  %v9356_v5 = vsel %vm1579_vm2, %v8464_v1, 0.0  ;;  %v9375_v1 = vld [vmem:[%s13875_s4 + $0x30] sm:$0xff]   ;;  %v8532_v22 = vunpack.c.l.bf16 %v8634_v11  ;;  %v8533_v23 = vunpack.c.h.bf16 %v8634_v11 }
  0xad   :  { %3613 = vadd.xlane.f32.xlu1 %v3612_v0  ;;  %3610 = vadd.xlane.f32.xlu0 %v9184_v4  ;;  %v8461_v0 = vunpack.c.h.bf16 %v8616_v52  ;;  %v9311_v4 = vsel %vm1579_vm2, %v8552_v19, 0.0  ;;  %v8625_v52 = vld [vmem:[%s13875_s4 + $0x60] sm:$0xff]   ;;  %14045 = vst [vmem:[#allocation22_spill] sm:$0xff] %v9356_v5  ;;  %v9407_v11 = vld [vmem:[%s13875_s4 + $0xb0] sm:$0xff]  }
  0xae   :  { %v9297_v34 = vpop.xlane.xlu1 %591  ;;  %v9299_v35 = vpop.xlane.xlu0 %588  ;;  %14036 = vst [vmem:[#allocation13_spill] sm:$0xff] %v9311_v4  ;;  %v8641_v19 = vld [vmem:[%s13875_s4 + $0xe0] sm:$0xff]   ;;  %v8497_v60 = vunpack.c.h.bf16 %v8625_v52  ;;  %v8500_v4 = vunpack.c.l.bf16 %v8626_v42 }
  0xaf   :  { %v9341_v31 = vsel %vm1579_vm2, %v8461_v0, 0.0  ;;  %v9359_v0 = vsel %vm1579_vm2, %v8493_v12, 0.0  ;;  %v8560_v21 = vunpack.c.l.bf16 %v8641_v19  ;;  %v9379_v12 = vsel %vm1579_vm2, %v8557_v16, 0.0 }
  0xb0   :  { %14041 = vst [vmem:[#allocation18_spill] sm:$0xff] %v9341_v31  ;;  %14046 = vst [vmem:[#allocation23_spill] sm:$0xff] %v9359_v0  ;;  %v8496_v31 = vunpack.c.l.bf16 %v8625_v52  ;;  %v8561_v24 = vunpack.c.h.bf16 %v8641_v19  ;;  %v8472_v52 = vunpack.c.l.bf16 %v9375_v1  ;;  %v8501_v19 = vunpack.c.h.bf16 %v8626_v42 }
  0xb1   :  { %3619 = vadd.xlane.f32.xlu1 %v9190_v7  ;;  %3616 = vadd.xlane.f32.xlu0 %v9193_v8  ;;  %v9353_v8 = vsel %vm1579_vm2, %v8556_v51, 0.0  ;;  %v9370_v51 = vld [vmem:[%s13875_s4 + $0xe8] sm:$0xff]   ;;  %14048 = vst [vmem:[#allocation25_spill] sm:$0xff] %v9379_v12  ;;  %v9396_v12 = vsel %vm1579_vm2, %v8529_v47, 0.0 }
  0xb2   :  { %v9336_v7 = vpop.xlane.xlu1 %597  ;;  %v9338_v30 = vpop.xlane.xlu0 %594  ;;  %14044 = vst [vmem:[#allocation21_spill] sm:$0xff] %v9353_v8  ;;  %v9387_v8 = vsel %vm1579_vm2, %v8465_v14, 0.0  ;;  %v8564_v16 = vunpack.c.l.bf16 %v9370_v51  ;;  %v9402_v14 = vsel %vm1579_vm2, %v8468_v32, 0.0  ;;  %v79_v32 = vmul.f32 0.015625, %v9113_v3 }
  0xb3   :  { %v9441_v3 = vsel %vm1579_vm2, %v8472_v52, 0.0 }
  0xb4   :  { %14057 = vst [vmem:[#allocation34_spill] sm:$0xff] %v9441_v3  ;;  %v9462_v3 = vmul.f32 0.015625, %v9111_v2  ;;  %v135_v2 = vrot.slane %v79_v32, %v9157_v48  ;;  %v142_v57 = vrot.slane %v79_v32, %v9160_v49 }
  0xb5   :  { %5521 = vadd.xlane.f32.xlu1 %v9196_v9  ;;  %5518 = vadd.xlane.f32.xlu0 %v9202_v13  ;;  %v9390_v9 = vsel %vm1579_vm2, %v8496_v31, 0.0  ;;  %v80_v13 = vmul.f32 0.015625, %v9102_v56  ;;  %v9414_v56 = vsel %vm1579_vm2, %v8497_v60, 0.0  ;;  %v9417_v31 = vsel %vm1579_vm2, %v8532_v22, 0.0 }
  0xb6   :  { %v9382_v0 = vpop.xlane.xlu1 %603  ;;  %v9384_v5 = vpop.xlane.xlu0 %600  ;;  %14050 = vst [vmem:[#allocation27_spill] sm:$0xff] %v9414_v56  ;;  %14051 = vst [vmem:[#allocation28_spill] sm:$0xff] %v9417_v31  ;;  %v9435_v22 = vsel %vm1579_vm2, %v8533_v23, 0.0  ;;  %v9438_v60 = vsel %vm1579_vm2, %v8564_v16, 0.0 }
  0xb7   :  { %14049 = vst [vmem:[#allocation26_spill] sm:$0xff] %v9384_v5  ;;  %v9399_v5 = vsel %vm1579_vm2, %v8560_v21, 0.0  ;;  %v9420_v21 = vsel %vm1579_vm2, %v8561_v24, 0.0  ;;  %14055 = vst [vmem:[#allocation32_spill] sm:$0xff] %v9435_v22  ;;  %v8536_v24 = vunpack.c.l.bf16 %v9407_v11  ;;  %v163_v23 = vrot.slane %v80_v13, %v9157_v48 }
  0xb8   :  { %14052 = vst [vmem:[#allocation29_spill] sm:$0xff] %v9420_v21  ;;  %14056 = vst [vmem:[#allocation33_spill] sm:$0xff] %v9438_v60  ;;  %v170_v16 = vrot.slane %v80_v13, %v9160_v49  ;;  %v8565_v60 = vunpack.c.h.bf16 %v9370_v51  ;;  %v177_v52 = vrot.slane %v80_v13, %v9163_v50  ;;  %v9481_v21 = vmul.f32 0.015625, %v9123_v17  ;;  %v9498_v17 = vld [vmem:[%s13875_s4 + $0xf0] sm:$0xff]  }
  0xb9   :  { %5614 = vadd.xlane.f32.xlu1 %v9221_v29  ;;  %5566 = vadd.xlane.f32.xlu0 %v9224_v33  ;;  %v9432_v29 = vsel %vm1579_vm2, %v8500_v4, 0.0  ;;  %v9444_v33 = vsel %vm1579_vm2, %v8501_v19, 0.0  ;;  %v156_v4 = vrot.slane %v80_v13, %v9139_v26  ;;  %v8473_v19 = vunpack.c.h.bf16 %v9375_v1 }
  0xba   :  { %v9424_v42 = vpop.xlane.xlu1 %609  ;;  %v9426_v47 = vpop.xlane.xlu0 %606  ;;  %14054 = vst [vmem:[#allocation31_spill] sm:$0xff] %v9432_v29  ;;  %14058 = vst [vmem:[#allocation35_spill] sm:$0xff] %v9444_v33  ;;  %v128_v29 = vrot.slane %v79_v32, %v9139_v26  ;;  %v8504_v33 = vunpack.c.l.bf16 %v9450_v15  ;;  %v9487_v31 = vsel %vm1579_vm2, %v8565_v60, 0.0  ;;  %v8861_v1 = vmov 0  }
  0xbb   :  { %14059 = vst [vmem:[#allocation36_spill] sm:$0xff] %v9487_v31  ;;  %8757 = vset.pattern.permute.xlu1 %v8861_v1  ;;  %8758 = vset.pattern.permute.xlu0 %v8861_v1  ;;  %v9502_v60 = vcombine.low %v170_v16, %v177_v52  ;;  %v8568_v31 = vunpack.c.l.bf16 %v9498_v17  ;;  %v8505_v22 = vunpack.c.h.bf16 %v9450_v15 }
  0xbc   :  { %v9520_v16 = vsel %vm1579_vm2, %v8504_v33, 0.0  ;;  %v335_v52 = vcombine.low %v128_v29, %v135_v2  ;;  %v9573_v33 = vmul.f32 0.0625, %v9177_v61  ;;  %v8569_v61 = vunpack.c.h.bf16 %v9498_v17 }
  0xbd   :  { %5662 = vadd.xlane.f32.xlu1 %v9227_v39  ;;  %5569 = vadd.xlane.f32.xlu0 %v9230_v40  ;;  %v149_v39 = vrot.slane %v79_v32, %v9163_v50  ;;  %v9484_v40 = vsel %vm1579_vm2, %v8536_v24, 0.0  ;;  %v9492_v32 = vmul.f32 0.015625, %v9125_v18  ;;  %v9500_v24 = vcombine.low %v156_v4, %v163_v23  ;;  %14061 = vst [vmem:[#allocation38_spill] sm:$0xff] %v9520_v16 }
  0xbe   :  { %v9469_v51 = vpop.xlane.xlu1 %615  ;;  %v9471_v13 = vpop.xlane.xlu0 %612  ;;  %v8537_v4 = vunpack.c.h.bf16 %v9407_v11  ;;  %v9517_v23 = vsel %vm1579_vm2, %v8473_v19, 0.0  ;;  %v9527_v18 = vmul.f32 0.015625, %v9147_v37  ;;  %v9533_v11 = vld [vmem:[%s13875_s4 + $0x38] sm:$0xff]   ;;  %v9542_v19 = vmul.f32 0.015625, %v9149_v38 }
  0xbf   :  { %14060 = vst [vmem:[#allocation37_spill] sm:$0xff] %v9517_v23  ;;  %v336_v1 = vcombine.low %v142_v57, %v149_v39  ;;  %v343_v2 = vrot.slane %v335_v52, %v9214_v25  ;;  %v9576_v15 = vsel %vm1579_vm2, %v8568_v31, 0.0  ;;  %v9585_v39 = vmul.f32 0.0625, %v9179_v62 }
  0xc0   :  { %v9557_v38 = vsel %vm1579_vm2, %v8537_v4, 0.0  ;;  %14063 = vst [vmem:[#allocation40_spill] sm:$0xff] %v9576_v15  ;;  %v9614_v15 = vmul.f32 0.0625, %v9216_v27  ;;  %v9630_v27 = vmul.f32 0.0625, %v9218_v28 }
  0xc1   :  { %5524 = vadd.xlane.f32.xlu1 %v9233_v41  ;;  %5617 = vadd.xlane.f32.xlu0 %v9239_v44  ;;  %14062 = vst [vmem:[#allocation39_spill] sm:$0xff] %v9557_v38  ;;  %v9564_v44 = vld [vmem:[%s13875_s4 + $0xb8] sm:$0xff]  }
  0xc2   :  { %v9511_v41 = vpop.xlane.xlu1 %1581  ;;  %v9513_v56 = vpop.xlane.xlu0 %1584  ;;  %v8540_v62 = vunpack.c.l.bf16 %v9564_v44 }
  0xc4   :  { %v9645_v28 = vsel %vm1579_vm2, %v8540_v62, 0.0 }
  0xc5   :  { %5620 = vadd.xlane.f32.xlu1 %v9242_v45  ;;  %5665 = vadd.xlane.f32.xlu0 %v9245_v46  ;;  %v8476_v45 = vunpack.c.l.bf16 %v9533_v11  ;;  %v350_v46 = vrot.slane %v336_v1, %v9214_v25  ;;  %14067 = vst [vmem:[#allocation44_spill] sm:$0xff] %v9645_v28 }
  0xc6   :  { %v9552_v29 = vpop.xlane.xlu1 %1590  ;;  %v9554_v57 = vpop.xlane.xlu0 %1587 }
  0xc7   :  { %v9601_v1 = vsel %vm1579_vm2, %v8476_v45, 0.0  ;;  %v9607_v31 = vcombine.low %v343_v2, %v350_v46  ;;  %v9619_v45 = vld [vmem:[%s13875_s4 + $0x78] sm:$0xff]   ;;  %v8477_v46 = vunpack.c.h.bf16 %v9533_v11  ;;  %v14069_v11 = vrot.slane %v9462_v3, %v9157_v48 }
  0xc8   :  { %14064 = vst [vmem:[#allocation41_spill] sm:$0xff] %v9601_v1  ;;  %v8508_v37 = vunpack.c.l.bf16 %v9619_v45 }
  0xc9   :  { %5527 = vadd.xlane.f32.xlu1 %v9258_v55  ;;  %5572 = vadd.xlane.f32.xlu0 %v9261_v58  ;;  %v9604_v55 = vsel %vm1579_vm2, %v8505_v22, 0.0  ;;  %14066 = vst [vmem:[#allocation43_spill] sm:$0xff] %v9607_v31  ;;  %v360_v22 = vrot.slane %v9500_v24, %v9214_v25  ;;  %v367_v24 = vrot.slane %v9502_v60, %v9214_v25  ;;  %v9659_v31 = vmul.f32 0.0625, %v9253_v53 }
  0xca   :  { %v9595_v52 = vpop.xlane.xlu1 %1596  ;;  %v9597_v4 = vpop.xlane.xlu0 %1593  ;;  %14065 = vst [vmem:[#allocation42_spill] sm:$0xff] %v9604_v55  ;;  %v14070_v60 = vrot.slane %v9462_v3, %v9139_v26  ;;  %v9695_v53 = vsel %vm1579_vm2, %v8477_v46, 0.0  ;;  %v9712_v46 = vmul.f32 0.0625, %v9297_v34 }
  0xcb   :  { %14071 = vst [vmem:[#allocation46_spill] sm:$0xff] %v9695_v53 }
  0xcc   :  { %v369_v62 = vcombine.low %v14070_v60, %v14069_v11  ;;  %v14073_v11 = vrot.slane %v9462_v3, %v9163_v50 }
  0xcd   :  { %5623 = vadd.xlane.f32.xlu1 %v9264_v59  ;;  %5668 = vadd.xlane.f32.xlu0 %v9270_v63  ;;  %v9648_v59 = vsel %vm1579_vm2, %v8569_v61, 0.0  ;;  %v9664_v61 = vld [vmem:[%s13875_s4 + $0xf8] sm:$0xff]  }
  0xce   :  { %v9640_v2 = vpop.xlane.xlu1 %1602  ;;  %v9642_v58 = vpop.xlane.xlu0 %1599  ;;  %14068 = vst [vmem:[#allocation45_spill] sm:$0xff] %v9648_v59  ;;  %v9679_v59 = vmul.f32 0.0625, %v9255_v54  ;;  %v8541_v54 = vunpack.c.h.bf16 %v9564_v44  ;;  %v8572_v28 = vunpack.c.l.bf16 %v9664_v61 }
  0xd1   :  { %5530 = vadd.xlane.f32.xlu1 %v9273_v6  ;;  %5575 = vadd.xlane.f32.xlu0 %v9276_v10  ;;  %v9698_v6 = vsel %vm1579_vm2, %v8508_v37, 0.0  ;;  %v14074_v10 = vrot.slane %v9462_v3, %v9160_v49  ;;  %v9714_v37 = vcombine.low %v360_v22, %v367_v24  ;;  %v377_v3 = vrot.slane %v369_v62, %v9214_v25 }
  0xd2   :  { %v9689_v63 = vpop.xlane.xlu1 %1608  ;;  %v9691_v17 = vpop.xlane.xlu0 %1605  ;;  %14072 = vst [vmem:[#allocation47_spill] sm:$0xff] %v9698_v6  ;;  %v14077_v6 = vld [vmem:[#allocation11_spill] sm:$0xff]  ;;  %v14079_v22 = vrot.slane %v9492_v32, %v9157_v48  ;;  %v14080_v24 = vrot.slane %v9492_v32, %v9139_v26  ;;  %v9759_v62 = vsel %vm1579_vm2, %v8572_v28, 0.0  ;;  %v14085_v28 = vrot.slane %v9492_v32, %v9160_v49 }
  0xd3   :  { %v370_v60 = vcombine.low %v14074_v10, %v14073_v11  ;;  %14075 = vst [vmem:[#allocation48_spill] sm:$0xff] %v9714_v37  ;;  %v9723_v11 = vmul.f32 0.0625, %v9299_v35  ;;  %v14076_v10 = vld [vmem:[#allocation10_spill] sm:$0xff]  ;;  %v9738_v35 = vsel %vm1579_vm2, %v8541_v54, 0.0  ;;  %14081 = vst [vmem:[#allocation11_spill] sm:$0xff] %v9759_v62 }
  0xd4   :  { %14078 = vst [vmem:[#allocation10_spill] sm:$0xff] %v9738_v35  ;;  %v14088_v54 = vld [vmem:[#allocation26_spill] sm:$0xff]  ;;  %v14099_v35 = vld [vmem:[#allocation15_spill] sm:$0xff] }
  0xd5   :  { %5626 = vadd.xlane.f32.xlu1 %v14076_v10  ;;  %5671 = vadd.xlane.f32.xlu0 %v14077_v6  ;;  %v8509_v10 = vunpack.c.h.bf16 %v9619_v45  ;;  %v384_v34 = vrot.slane %v370_v60, %v9214_v25  ;;  %v9749_v6 = vcombine.low %v14080_v24, %v14079_v22  ;;  %v9756_v45 = vmul.f32 0.0625, %v9336_v7 }
  0xd6   :  { %v9733_v53 = vpop.xlane.xlu1 %1614  ;;  %v9735_v55 = vpop.xlane.xlu0 %1611  ;;  %v9768_v24 = vmul.f32 0.0625, %v9338_v30  ;;  %v8573_v30 = vunpack.c.h.bf16 %v9664_v61  ;;  %v14084_v7 = vrot.slane %v9492_v32, %v9163_v50  ;;  %v9816_v61 = vmul.f32 0.0625, %v14088_v54 }
  0xd7   :  { %v9784_v22 = vsel %vm1579_vm2, %v8509_v10, 0.0  ;;  %v9801_v10 = vmul.f32 0.0625, %v9382_v0  ;;  %v14089_v0 = vld [vmem:[#allocation12_spill] sm:$0xff] }
  0xd8   :  { %14082 = vst [vmem:[#allocation49_spill] sm:$0xff] %v9784_v22  ;;  %v387_v60 = vcombine.low %v14085_v28, %v14084_v7  ;;  %v14090_v7 = vld [vmem:[#allocation13_spill] sm:$0xff]  ;;  %v9831_v54 = vsel %vm1579_vm2, %v8573_v30, 0.0  ;;  %v14092_v28 = vrot.slane %v9410_v20, %v9163_v50  ;;  %v14096_v30 = vrot.slane %v9481_v21, %v9163_v50 }
  0xd9   :  { %5533 = vadd.xlane.f32.xlu1 %v9302_v36  ;;  %5578 = vadd.xlane.f32.xlu0 %v9305_v43  ;;  %v9786_v36 = vcombine.low %v377_v3, %v384_v34  ;;  %v394_v43 = vrot.slane %v9749_v6, %v9214_v25  ;;  %v14086_v3 = vrot.slane %v9410_v20, %v9157_v48  ;;  %vm3356_vm2 = vcmask 917312  }
  0xda   :  { %v9778_v37 = vpop.xlane.xlu1 %1620  ;;  %v9780_v44 = vpop.xlane.xlu0 %1617  ;;  %v14087_v34 = vrot.slane %v9410_v20, %v9139_v26  ;;  %14091 = vst [vmem:[#allocation26_spill] sm:$0xff] %v9831_v54 }
  0xdb   :  { %14083 = vst [vmem:[#allocation50_spill] sm:$0xff] %v9786_v36 }
  0xdc   :  { %v318_v32 = vcombine.low %v14087_v34, %v14086_v3  ;;  %v14093_v3 = vrot.slane %v9410_v20, %v9160_v49  ;;  %v14094_v34 = vrot.slane %v9481_v21, %v9157_v48 }
  0xdd   :  { %5629 = vadd.xlane.f32.xlu1 %v14089_v0  ;;  %5674 = vadd.xlane.f32.xlu0 %v14090_v7  ;;  %v401_v0 = vrot.slane %v387_v60, %v9214_v25  ;;  %v14095_v7 = vrot.slane %v9481_v21, %v9139_v26  ;;  %v14097_v60 = vrot.slane %v9481_v21, %v9160_v49 }
  0xde   :  { %v9826_v6 = vpop.xlane.xlu1 %1626  ;;  %v9828_v22 = vpop.xlane.xlu0 %1623  ;;  %v319_v36 = vcombine.low %v14093_v3, %v14092_v28  ;;  %v9857_v28 = vmul.f32 0.0625, %v9424_v42  ;;  %v326_v3 = vrot.slane %v318_v32, %v9214_v25  ;;  %v14100_v21 = vrot.slane %v9573_v33, %v9157_v48 }
  0xdf   :  { %v403_v62 = vcombine.low %v14095_v7, %v14094_v34  ;;  %v404_v54 = vcombine.low %v14097_v60, %v14096_v30  ;;  %v9867_v30 = vmul.f32 0.0625, %v9426_v47  ;;  %v14098_v60 = vld [vmem:[#allocation14_spill] sm:$0xff]  ;;  %v14101_v47 = vrot.slane %v9573_v33, %v9139_v26 }
  0xe0   :  { %v14103_v42 = vrot.slane %v9573_v33, %v9160_v49  ;;  %v333_v1 = vrot.slane %v319_v36, %v9214_v25 }
  0xe1   :  { %5536 = vadd.xlane.f32.xlu1 %v14098_v60  ;;  %5581 = vadd.xlane.f32.xlu0 %v14099_v35  ;;  %v1098_v7 = vcombine.low %v14101_v47, %v14100_v21  ;;  %v14102_v60 = vrot.slane %v9573_v33, %v9163_v50  ;;  %v411_v38 = vrot.slane %v403_v62, %v9214_v25  ;;  %v9901_v47 = vmul.f32 0.0625, %v9469_v51 }
  0xe2   :  { %v9875_v34 = vpop.xlane.xlu1 %1632  ;;  %v9877_v20 = vpop.xlane.xlu0 %1629  ;;  %v418_v16 = vrot.slane %v404_v54, %v9214_v25  ;;  %v9903_v33 = vcombine.low %v394_v43, %v401_v0  ;;  %v9912_v54 = vmul.f32 0.0625, %v9471_v13  ;;  %v14106_v0 = vld [vmem:[#allocation17_spill] sm:$0xff]  ;;  %v9931_v51 = vcombine.low %v326_v3, %v333_v1  ;;  %v14110_v3 = vld [vmem:[#allocation18_spill] sm:$0xff] }
  0xe3   :  { %v1099_v32 = vcombine.low %v14103_v42, %v14102_v60  ;;  %v14105_v60 = vld [vmem:[#allocation16_spill] sm:$0xff]  ;;  %v1106_v36 = vrot.slane %v1098_v7, %v9214_v25  ;;  %v14111_v7 = vld [vmem:[#allocation19_spill] sm:$0xff]  ;;  %v14113_v1 = vrot.slane %v9542_v19, %v9157_v48  ;;  %v14116_v13 = vrot.slane %v9542_v19, %v9160_v49 }
  0xe4   :  { %14104 = vst [vmem:[#allocation12_spill] sm:$0xff] %v9903_v33  ;;  %14107 = vst [vmem:[#allocation13_spill] sm:$0xff] %v9931_v51  ;;  %v9933_v23 = vcombine.low %v411_v38, %v418_v16  ;;  %v9950_v38 = vmul.f32 0.25, %v9513_v56  ;;  %v14114_v56 = vrot.slane %v9542_v19, %v9139_v26  ;;  %v10029_v51 = vmul.f32 0.25, %v9595_v52 }
  0xe5   :  { %5632 = vadd.xlane.f32.xlu1 %v14105_v60  ;;  %5677 = vadd.xlane.f32.xlu0 %v14106_v0  ;;  %v1113_v62 = vrot.slane %v1099_v32, %v9214_v25  ;;  %v9929_v60 = vmul.f32 0.25, %v9511_v41 }
  0xe6   :  { %v9920_v35 = vpop.xlane.xlu1 %1638  ;;  %v9922_v42 = vpop.xlane.xlu0 %1635  ;;  %14108 = vst [vmem:[#allocation14_spill] sm:$0xff] %v9933_v23  ;;  %14109 = vst [vmem:[#allocation15_spill] sm:$0xff] %v9950_v38  ;;  %v420_v16 = vcombine.low %v14114_v56, %v14113_v1  ;;  %v14119_v1 = vrot.slane %v9614_v15, %v9163_v50  ;;  %v14120_v56 = vrot.slane %v9614_v15, %v9160_v49  ;;  %v10001_v23 = vmul.f32 0.25, %v9552_v29  ;;  %v14129_v38 = vld [vmem:[#allocation23_spill] sm:$0xff] }
  0xe7   :  { %v9960_v41 = vcombine.low %v1106_v36, %v1113_v62  ;;  %v14117_v36 = vrot.slane %v9614_v15, %v9157_v48  ;;  %v14118_v62 = vrot.slane %v9614_v15, %v9139_v26 }
  0xe8   :  { %v428_v15 = vrot.slane %v420_v16, %v9214_v25 }
  0xe9   :  { %5539 = vadd.xlane.f32.xlu1 %v14110_v3  ;;  %5584 = vadd.xlane.f32.xlu0 %v14111_v7  ;;  %14112 = vst [vmem:[#allocation16_spill] sm:$0xff] %v9960_v41  ;;  %v14115_v3 = vrot.slane %v9542_v19, %v9163_v50  ;;  %v1149_v21 = vcombine.low %v14118_v62, %v14117_v36  ;;  %v14125_v62 = vld [vmem:[#allocation21_spill] sm:$0xff] }
  0xea   :  { %v9956_v32 = vpop.xlane.xlu1 %1644  ;;  %v9958_v0 = vpop.xlane.xlu0 %1641  ;;  %v1150_v41 = vcombine.low %v14120_v56, %v14119_v1  ;;  %v14121_v19 = vrot.slane %v9527_v18, %v9157_v48  ;;  %v14126_v56 = vrot.slane %v9527_v18, %v9163_v50 }
  0xeb   :  { %v421_v7 = vcombine.low %v14116_v13, %v14115_v3  ;;  %v14122_v13 = vrot.slane %v9527_v18, %v9139_v26 }
  0xec   :  { %v1164_v36 = vrot.slane %v1150_v41, %v9214_v25  ;;  %v14131_v41 = vrot.slane %v9659_v31, %v9157_v48 }
  0xed   :  { %v437_v3 = vcombine.low %v14122_v13, %v14121_v19  ;;  %v10010_v19 = vmul.f32 0.25, %v9554_v57  ;;  %v14124_v13 = vld [vmem:[#allocation20_spill] sm:$0xff]  ;;  %5680 = vadd.xlane.f32.xlu0 %v14125_v62  ;;  %v435_v1 = vrot.slane %v421_v7, %v9214_v25  ;;  %v14127_v57 = vrot.slane %v9527_v18, %v9160_v49 }
  0xee   :  { %5635 = vadd.xlane.f32.xlu1 %v14124_v13  ;;  %v10016_v29 = vpop.xlane.xlu1 %1650  ;;  %v10018_v43 = vpop.xlane.xlu0 %1647  ;;  %v1157_v62 = vrot.slane %v1149_v21, %v9214_v25 }
  0xef   :  { %14123 = vst [vmem:[#allocation17_spill] sm:$0xff] %v10010_v19  ;;  %v438_v13 = vcombine.low %v14127_v57, %v14126_v56  ;;  %v445_v33 = vrot.slane %v437_v3, %v9214_v25  ;;  %v10049_v3 = vmul.f32 0.25, %v9597_v4  ;;  %v14128_v56 = vld [vmem:[#allocation22_spill] sm:$0xff]  ;;  %v10059_v52 = vcombine.low %v428_v15, %v435_v1 }
  0xf0   :  { %v14132_v4 = vrot.slane %v9659_v31, %v9139_v26  ;;  %v10070_v7 = vcombine.low %v1157_v62, %v1164_v36  ;;  %v14135_v15 = vrot.slane %v9659_v31, %v9160_v49  ;;  %v14139_v62 = vld [vmem:[#allocation25_spill] sm:$0xff] }
  0xf1   :  { %5587 = vadd.xlane.f32.xlu0 %v14129_v38  ;;  %14130 = vst [vmem:[#allocation18_spill] sm:$0xff] %v10059_v52  ;;  %v452_v21 = vrot.slane %v438_v13, %v9214_v25  ;;  %v14134_v38 = vrot.slane %v9659_v31, %v9163_v50  ;;  %v14136_v13 = vrot.slane %v9585_v39, %v9157_v48 }
  0xf2   :  { %5542 = vadd.xlane.f32.xlu1 %v14128_v56  ;;  %v10055_v18 = vpop.xlane.xlu1 %1656  ;;  %v10057_v16 = vpop.xlane.xlu0 %1653  ;;  %v1183_v56 = vcombine.low %v14132_v4, %v14131_v41  ;;  %14133 = vst [vmem:[#allocation19_spill] sm:$0xff] %v10070_v7  ;;  %v14137_v52 = vrot.slane %v9585_v39, %v9139_v26  ;;  %v10091_v4 = vmul.f32 0.25, %v9640_v2  ;;  %v10120_v41 = vmul.f32 0.25, %v9689_v63 }
  0xf3   :  { %v1184_v1 = vcombine.low %v14135_v15, %v14134_v38  ;;  %v10100_v15 = vmul.f32 0.25, %v9642_v58  ;;  %v10110_v31 = vcombine.low %v445_v33, %v452_v21  ;;  %v14142_v58 = vrot.slane %v9585_v39, %v9160_v49 }
  0xf4   :  { %v1115_v19 = vcombine.low %v14137_v52, %v14136_v13  ;;  %v14138_v13 = vld [vmem:[#allocation24_spill] sm:$0xff]  ;;  %v1191_v38 = vrot.slane %v1183_v56, %v9214_v25  ;;  %v14141_v52 = vrot.slane %v9585_v39, %v9163_v50  ;;  %v14143_v33 = vrot.slane %v9712_v46, %v9157_v48 }
  0xf5   :  { %5683 = vadd.xlane.f32.xlu0 %v14139_v62  ;;  %14140 = vst [vmem:[#allocation20_spill] sm:$0xff] %v10110_v31  ;;  %v1198_v62 = vrot.slane %v1184_v1, %v9214_v25  ;;  %v14144_v21 = vrot.slane %v9712_v46, %v9139_v26  ;;  %v14150_v7 = vrot.slane %v9630_v27, %v9163_v50 }
  0xf6   :  { %5638 = vadd.xlane.f32.xlu1 %v14138_v13  ;;  %v10106_v2 = vpop.xlane.xlu1 %1662  ;;  %v10108_v57 = vpop.xlane.xlu0 %1659  ;;  %v1116_v13 = vcombine.low %v14142_v58, %v14141_v52  ;;  %v1123_v36 = vrot.slane %v1115_v19, %v9214_v25  ;;  %v14145_v52 = vrot.slane %v9712_v46, %v9163_v50 }
  0xf7   :  { %v1217_v56 = vcombine.low %v14144_v21, %v14143_v33  ;;  %v10145_v33 = vmul.f32 0.25, %v9691_v17  ;;  %v14146_v17 = vrot.slane %v9712_v46, %v9160_v49  ;;  %v14148_v21 = vrot.slane %v9630_v27, %v9139_v26 }
  0xf8   :  { %v1130_v19 = vrot.slane %v1116_v13, %v9214_v25  ;;  %v10170_v39 = vcombine.low %v1191_v38, %v1198_v62  ;;  %v14151_v46 = vrot.slane %v9630_v27, %v9160_v49  ;;  %v10186_v38 = vmul.f32 0.25, %v9733_v53 }
  0xf9   :  { %5590 = vadd.xlane.f32.xlu0 %v9390_v9  ;;  %v1218_v58 = vcombine.low %v14146_v17, %v14145_v52  ;;  %v1225_v13 = vrot.slane %v1217_v56, %v9214_v25 }
  0xfa   :  { %5545 = vadd.xlane.f32.xlu1 %v9387_v8  ;;  %v10151_v63 = vpop.xlane.xlu1 %1668  ;;  %v10153_v1 = vpop.xlane.xlu0 %1665  ;;  %v14147_v8 = vrot.slane %v9630_v27, %v9157_v48  ;;  %14149 = vst [vmem:[#allocation21_spill] sm:$0xff] %v10170_v39  ;;  %v1133_v52 = vcombine.low %v14151_v46, %v14150_v7  ;;  %v10195_v7 = vmul.f32 0.25, %v9735_v55  ;;  %v10205_v62 = vcombine.low %v1123_v36, %v1130_v19 }
  0xfb   :  { %v1232_v56 = vrot.slane %v1218_v58, %v9214_v25  ;;  %v10210_v55 = vmul.f32 0.25, %v9778_v37  ;;  %v14153_v46 = vrot.slane %v9756_v45, %v9157_v48  ;;  %v14155_v36 = vrot.slane %v9756_v45, %v9163_v50 }
  0xfc   :  { %v1132_v9 = vcombine.low %v14148_v21, %v14147_v8  ;;  %14152 = vst [vmem:[#allocation22_spill] sm:$0xff] %v10205_v62  ;;  %v14156_v19 = vrot.slane %v9756_v45, %v9160_v49  ;;  %v14188_v39 = vrot.slane %v9768_v24, %v9163_v50 }
  0xfd   :  { %5686 = vadd.xlane.f32.xlu0 %v9399_v5  ;;  %v14154_v5 = vrot.slane %v9756_v45, %v9139_v26 }
  0xfe   :  { %5641 = vadd.xlane.f32.xlu1 %v9396_v12  ;;  %v10201_v53 = vpop.xlane.xlu1 %1674  ;;  %v10203_v21 = vpop.xlane.xlu0 %1671  ;;  %v1140_v27 = vrot.slane %v1132_v9, %v9214_v25  ;;  %v1147_v12 = vrot.slane %v1133_v52, %v9214_v25  ;;  %v1252_v58 = vcombine.low %v14156_v19, %v14155_v36  ;;  %v10240_v36 = vmul.f32 0.25, %v9780_v44  ;;  %v14157_v52 = vld [vmem:[#allocation27_spill] sm:$0xff] }
  0xff   :  { %v1251_v8 = vcombine.low %v14154_v5, %v14153_v46  ;;  %v10250_v46 = vcombine.low %v1225_v13, %v1232_v56  ;;  %v14159_v5 = vrot.slane %v9679_v59, %v9157_v48  ;;  %v14160_v44 = vrot.slane %v9679_v59, %v9139_v26 }
 0x100   :  { %v14162_v19 = vrot.slane %v9679_v59, %v9160_v49  ;;  %v10266_v17 = vcombine.low %v1140_v27, %v1147_v12  ;;  %v1266_v56 = vrot.slane %v1252_v58, %v9214_v25  ;;  %v10286_v58 = vmul.f32 0.25, %v9828_v22 }
 0x101   :  { %5593 = vadd.xlane.f32.xlu0 %v14157_v52  ;;  %14158 = vst [vmem:[#allocation23_spill] sm:$0xff] %v10250_v46  ;;  %v1166_v45 = vcombine.low %v14160_v44, %v14159_v5  ;;  %v1259_v13 = vrot.slane %v1251_v8, %v9214_v25  ;;  %v14165_v5 = vld [vmem:[#allocation29_spill] sm:$0xff]  ;;  %v14166_v12 = vrot.slane %v9801_v10, %v9157_v48  ;;  %v10305_v9 = vmul.f32 0.25, %v9875_v34 }
 0x102   :  { %5548 = vadd.xlane.f32.xlu1 %v9402_v14  ;;  %v10246_v31 = vpop.xlane.xlu1 %3526  ;;  %v10248_v37 = vpop.xlane.xlu0 %3529  ;;  %v14161_v14 = vrot.slane %v9679_v59, %v9163_v50  ;;  %14163 = vst [vmem:[#allocation24_spill] sm:$0xff] %v10266_v17  ;;  %v10277_v59 = vmul.f32 0.25, %v9826_v6  ;;  %v14167_v22 = vrot.slane %v9801_v10, %v9139_v26  ;;  %v14172_v17 = vrot.slane %v9723_v11, %v9139_v26 }
 0x103   :  { %v1174_v27 = vrot.slane %v1166_v45, %v9214_v25  ;;  %v14170_v45 = vrot.slane %v9801_v10, %v9160_v49 }
 0x104   :  { %v1167_v52 = vcombine.low %v14162_v19, %v14161_v14  ;;  %v14164_v19 = vld [vmem:[#allocation28_spill] sm:$0xff]  ;;  %v10307_v14 = vcombine.low %v1259_v13, %v1266_v56  ;;  %v14175_v56 = vld [vmem:[#allocation31_spill] sm:$0xff] }
 0x105   :  { %5689 = vadd.xlane.f32.xlu0 %v14165_v5  ;;  %v14169_v5 = vrot.slane %v9801_v10, %v9163_v50 }
 0x106   :  { %5644 = vadd.xlane.f32.xlu1 %v14164_v19  ;;  %v10292_v6 = vpop.xlane.xlu1 %3535  ;;  %v10294_v44 = vpop.xlane.xlu0 %3532  ;;  %v1181_v8 = vrot.slane %v1167_v52, %v9214_v25  ;;  %v1285_v19 = vcombine.low %v14167_v22, %v14166_v12  ;;  %14168 = vst [vmem:[#allocation25_spill] sm:$0xff] %v10307_v14  ;;  %v14171_v52 = vrot.slane %v9723_v11, %v9157_v48  ;;  %v10405_v14 = vmul.f32 0.25, %v9956_v32  ;;  %v14192_v32 = vld [vmem:[#allocation35_spill] sm:$0xff] }
 0x107   :  { %v1286_v46 = vcombine.low %v14170_v45, %v14169_v5  ;;  %v10336_v5 = vmul.f32 0.25, %v9877_v20  ;;  %v14174_v45 = vld [vmem:[#allocation30_spill] sm:$0xff]  ;;  %v14178_v20 = vrot.slane %v9723_v11, %v9160_v49 }
 0x108   :  { %v1200_v62 = vcombine.low %v14172_v17, %v14171_v52  ;;  %v10346_v12 = vcombine.low %v1174_v27, %v1181_v8  ;;  %v1293_v22 = vrot.slane %v1285_v19, %v9214_v25  ;;  %v14177_v17 = vrot.slane %v9723_v11, %v9163_v50  ;;  %v14182_v52 = vld [vmem:[#allocation32_spill] sm:$0xff] }
 0x109   :  { %14173 = vst [vmem:[#allocation27_spill] sm:$0xff] %v10336_v5  ;;  %5596 = vadd.xlane.f32.xlu0 %v14175_v56  ;;  %v1300_v56 = vrot.slane %v1286_v46, %v9214_v25  ;;  %v14179_v27 = vrot.slane %v9857_v28, %v9157_v48  ;;  %v14180_v8 = vrot.slane %v9857_v28, %v9139_v26  ;;  %v10372_v46 = vmul.f32 0.25, %v9920_v35 }
 0x10a   :  { %5551 = vadd.xlane.f32.xlu1 %v14174_v45  ;;  %v10342_v10 = vpop.xlane.xlu1 %3541  ;;  %v10344_v34 = vpop.xlane.xlu0 %3538  ;;  %14176 = vst [vmem:[#allocation28_spill] sm:$0xff] %v10346_v12  ;;  %v1201_v45 = vcombine.low %v14178_v20, %v14177_v17  ;;  %v1208_v13 = vrot.slane %v1200_v62, %v9214_v25  ;;  %v14183_v17 = vld [vmem:[#allocation33_spill] sm:$0xff]  ;;  %v14184_v20 = vrot.slane %v9857_v28, %v9163_v50 }
 0x10b   :  { %v1319_v19 = vcombine.low %v14180_v8, %v14179_v27  ;;  %v10381_v8 = vmul.f32 0.25, %v9922_v42  ;;  %v14185_v42 = vrot.slane %v9857_v28, %v9160_v49  ;;  %v14187_v11 = vrot.slane %v9768_v24, %v9139_v26 }
 0x10c   :  { %v1215_v62 = vrot.slane %v1201_v45, %v9214_v25  ;;  %v10407_v5 = vcombine.low %v1293_v22, %v1300_v56  ;;  %v14189_v28 = vrot.slane %v9768_v24, %v9160_v49 }
 0x10d   :  { %14181 = vst [vmem:[#allocation29_spill] sm:$0xff] %v10381_v8  ;;  %5692 = vadd.xlane.f32.xlu0 %v14183_v17  ;;  %v1320_v27 = vcombine.low %v14185_v42, %v14184_v20  ;;  %v1327_v45 = vrot.slane %v1319_v19, %v9214_v25  ;;  %v10467_v8 = vmul.f32 0.25, %v10016_v29 }
 0x10e   :  { %5647 = vadd.xlane.f32.xlu1 %v14182_v52  ;;  %v10387_v35 = vpop.xlane.xlu1 %3547  ;;  %v10389_v12 = vpop.xlane.xlu0 %3544  ;;  %v14186_v52 = vrot.slane %v9768_v24, %v9157_v48  ;;  %v1235_v20 = vcombine.low %v14189_v28, %v14188_v39  ;;  %v10431_v39 = vmul.f32 0.25, %v9958_v0  ;;  %v10441_v56 = vcombine.low %v1208_v13, %v1215_v62 }
 0x10f   :  { %v1334_v19 = vrot.slane %v1320_v27, %v9214_v25  ;;  %v14193_v28 = vrot.slane %v9901_v47, %v9157_v48  ;;  %v14195_v13 = vrot.slane %v9901_v47, %v9163_v50  ;;  %v14196_v62 = vrot.slane %v9901_v47, %v9160_v49 }
 0x110   :  { %v1234_v17 = vcombine.low %v14187_v11, %v14186_v52  ;;  %14190 = vst [vmem:[#allocation30_spill] sm:$0xff] %v10431_v39  ;;  %v14191_v52 = vld [vmem:[#allocation34_spill] sm:$0xff] }
 0x111   :  { %5599 = vadd.xlane.f32.xlu0 %v14192_v32  ;;  %v14194_v32 = vrot.slane %v9901_v47, %v9139_v26  ;;  %v1354_v27 = vcombine.low %v14196_v62, %v14195_v13  ;;  %v10476_v13 = vmul.f32 0.25, %v10018_v43  ;;  %v14201_v43 = vrot.slane %v9816_v61, %v9139_v26 }
 0x112   :  { %5554 = vadd.xlane.f32.xlu1 %v14191_v52  ;;  %v10437_v22 = vpop.xlane.xlu1 %3553  ;;  %v10439_v42 = vpop.xlane.xlu0 %3550  ;;  %v1242_v24 = vrot.slane %v1234_v17, %v9214_v25  ;;  %v1249_v52 = vrot.slane %v1235_v20, %v9214_v25  ;;  %v14198_v20 = vld [vmem:[#allocation36_spill] sm:$0xff]  ;;  %v14203_v62 = vrot.slane %v9816_v61, %v9160_v49  ;;  %v10501_v17 = vmul.f32 0.25, %v10055_v18 }
 0x113   :  { %v1353_v11 = vcombine.low %v14194_v32, %v14193_v28  ;;  %14197 = vst [vmem:[#allocation31_spill] sm:$0xff] %v10476_v13  ;;  %v10486_v28 = vcombine.low %v1327_v45, %v1334_v19  ;;  %v14200_v32 = vrot.slane %v9816_v61, %v9157_v48  ;;  %v1368_v19 = vrot.slane %v1354_v27, %v9214_v25  ;;  %v14206_v27 = vld [vmem:[#allocation37_spill] sm:$0xff] }
 0x114   :  { %v10503_v39 = vcombine.low %v1242_v24, %v1249_v52  ;;  %v10522_v52 = vmul.f32 0.25, %v10057_v16  ;;  %v14208_v24 = vrot.slane %v9929_v60, %v9157_v48  ;;  %v14209_v16 = vrot.slane %v9929_v60, %v9139_v26 }
 0x115   :  { %5695 = vadd.xlane.f32.xlu0 %v14198_v20  ;;  %14199 = vst [vmem:[#allocation32_spill] sm:$0xff] %v10486_v28  ;;  %v1268_v47 = vcombine.low %v14201_v43, %v14200_v32  ;;  %v1361_v45 = vrot.slane %v1353_v11, %v9214_v25  ;;  %v14214_v13 = vrot.slane %v9867_v30, %v9139_v26 }
 0x116   :  { %5650 = vadd.xlane.f32.xlu1 %v9484_v40  ;;  %v10482_v29 = vpop.xlane.xlu1 %3559  ;;  %v10484_v0 = vpop.xlane.xlu0 %3556  ;;  %v14202_v40 = vrot.slane %v9816_v61, %v9163_v50  ;;  %14204 = vst [vmem:[#allocation33_spill] sm:$0xff] %v10503_v39  ;;  %14205 = vst [vmem:[#allocation34_spill] sm:$0xff] %v10522_v52  ;;  %v14225_v52 = vld [vmem:[#allocation42_spill] sm:$0xff] }
 0x117   :  { %v1276_v18 = vrot.slane %v1268_v47, %v9214_v25  ;;  %v10542_v28 = vcombine.low %v1361_v45, %v1368_v19  ;;  %v14212_v47 = vrot.slane %v9929_v60, %v9160_v49  ;;  %v14217_v19 = vld [vmem:[#allocation40_spill] sm:$0xff] }
 0x118   :  { %v1269_v20 = vcombine.low %v14203_v62, %v14202_v40  ;;  %v14207_v40 = vld [vmem:[#allocation38_spill] sm:$0xff] }
 0x119   :  { %5602 = vadd.xlane.f32.xlu0 %v14207_v40  ;;  %14210 = vst [vmem:[#allocation35_spill] sm:$0xff] %v10542_v28  ;;  %v14211_v40 = vrot.slane %v9929_v60, %v9163_v50 }
 0x11a   :  { %5557 = vadd.xlane.f32.xlu1 %v14206_v27  ;;  %v10528_v43 = vpop.xlane.xlu1 %3565  ;;  %v10530_v61 = vpop.xlane.xlu0 %3562  ;;  %v1283_v11 = vrot.slane %v1269_v20, %v9214_v25  ;;  %v2637_v27 = vcombine.low %v14209_v16, %v14208_v24  ;;  %v14213_v20 = vrot.slane %v9867_v30, %v9157_v48  ;;  %v10563_v16 = vmul.f32 0.25, %v10106_v2 }
 0x11b   :  { %v2638_v32 = vcombine.low %v14212_v47, %v14211_v40  ;;  %v10572_v47 = vmul.f32 0.25, %v10108_v57  ;;  %v14220_v57 = vrot.slane %v9867_v30, %v9160_v49  ;;  %v10592_v24 = vmul.f32 0.25, %v10151_v63 }
 0x11c   :  { %v1302_v39 = vcombine.low %v14214_v13, %v14213_v20  ;;  %v14216_v20 = vld [vmem:[#allocation39_spill] sm:$0xff]  ;;  %v10582_v60 = vcombine.low %v1276_v18, %v1283_v11  ;;  %v2645_v40 = vrot.slane %v2637_v27, %v9214_v25  ;;  %v14219_v13 = vrot.slane %v9867_v30, %v9163_v50 }
 0x11d   :  { %14215 = vst [vmem:[#allocation36_spill] sm:$0xff] %v10572_v47  ;;  %5698 = vadd.xlane.f32.xlu0 %v14217_v19  ;;  %v2652_v19 = vrot.slane %v2638_v32, %v9214_v25  ;;  %v14221_v18 = vrot.slane %v10001_v23, %v9157_v48  ;;  %v14222_v11 = vrot.slane %v10001_v23, %v9139_v26 }
 0x11e   :  { %5653 = vadd.xlane.f32.xlu1 %v14216_v20  ;;  %v10578_v2 = vpop.xlane.xlu1 %3571  ;;  %v10580_v62 = vpop.xlane.xlu0 %3568  ;;  %14218 = vst [vmem:[#allocation37_spill] sm:$0xff] %v10582_v60  ;;  %v1303_v20 = vcombine.low %v14220_v57, %v14219_v13  ;;  %v1310_v45 = vrot.slane %v1302_v39, %v9214_v25  ;;  %v14226_v13 = vrot.slane %v10001_v23, %v9163_v50 }
 0x11f   :  { %v2688_v27 = vcombine.low %v14222_v11, %v14221_v18  ;;  %v10617_v18 = vmul.f32 0.25, %v10153_v1  ;;  %v14224_v11 = vld [vmem:[#allocation41_spill] sm:$0xff]  ;;  %v14227_v57 = vrot.slane %v10001_v23, %v9160_v49  ;;  %v14228_v1 = vrot.slane %v9912_v54, %v9157_v48 }
 0x120   :  { %v1317_v39 = vrot.slane %v1303_v20, %v9214_v25  ;;  %v10642_v20 = vcombine.low %v2645_v40, %v2652_v19  ;;  %v14230_v23 = vrot.slane %v9912_v54, %v9163_v50  ;;  %v10658_v40 = vmul.f32 0.25, %v10201_v53 }
 0x121   :  { %14223 = vst [vmem:[#allocation38_spill] sm:$0xff] %v10617_v18  ;;  %5605 = vadd.xlane.f32.xlu0 %v14225_v52  ;;  %v2689_v30 = vcombine.low %v14227_v57, %v14226_v13  ;;  %v2696_v60 = vrot.slane %v2688_v27, %v9214_v25  ;;  %v14231_v13 = vrot.slane %v9912_v54, %v9160_v49 }
 0x122   :  { %5560 = vadd.xlane.f32.xlu1 %v14224_v11  ;;  %v10623_v32 = vpop.xlane.xlu1 %3577  ;;  %v14229_v11 = vrot.slane %v9912_v54, %v9139_v26  ;;  %v10640_v47 = vpop.xlane.xlu0 %3574  ;;  %14232 = vst [vmem:[#allocation39_spill] sm:$0xff] %v10658_v40  ;;  %v10675_v52 = vcombine.low %v1310_v45, %v1317_v39  ;;  %v10680_v54 = vmul.f32 0.25, %v10246_v31  ;;  %v14239_v45 = vrot.slane %v10029_v51, %v9163_v50  ;;  %v14243_v31 = vld [vmem:[#allocation47_spill] sm:$0xff] }
 0x123   :  { %v1337_v57 = vcombine.low %v14231_v13, %v14230_v23  ;;  %v10667_v23 = vmul.f32 0.25, %v10203_v21  ;;  %v14234_v13 = vld [vmem:[#allocation44_spill] sm:$0xff]  ;;  %v2703_v19 = vrot.slane %v2689_v30, %v9214_v25  ;;  %v14240_v30 = vrot.slane %v10029_v51, %v9160_v49 }
 0x124   :  { %v1336_v63 = vcombine.low %v14229_v11, %v14228_v1  ;;  %v14235_v11 = vld [vmem:[#allocation45_spill] sm:$0xff]  ;;  %14236 = vst [vmem:[#allocation41_spill] sm:$0xff] %v10680_v54  ;;  %v14237_v1 = vrot.slane %v10029_v51, %v9157_v48 }
 0x125   :  { %14233 = vst [vmem:[#allocation40_spill] sm:$0xff] %v10667_v23  ;;  %5701 = vadd.xlane.f32.xlu0 %v14235_v11  ;;  %v14238_v11 = vrot.slane %v10029_v51, %v9139_v26  ;;  %v10720_v39 = vcombine.low %v2696_v60, %v2703_v19 }
 0x126   :  { %5656 = vadd.xlane.f32.xlu1 %v14234_v13  ;;  %v10673_v53 = vpop.xlane.xlu1 %3583  ;;  %v1344_v27 = vrot.slane %v1336_v63, %v9214_v25  ;;  %v10682_v21 = vpop.xlane.xlu0 %3580  ;;  %v1351_v13 = vrot.slane %v1337_v57, %v9214_v25  ;;  %v2723_v63 = vcombine.low %v14240_v30, %v14239_v45  ;;  %v10712_v45 = vmul.f32 0.25, %v10248_v37  ;;  %v14242_v30 = vld [vmem:[#allocation46_spill] sm:$0xff] }
 0x127   :  { %v2722_v28 = vcombine.low %v14238_v11, %v14237_v1  ;;  %14244 = vst [vmem:[#allocation44_spill] sm:$0xff] %v10720_v39  ;;  %v14245_v1 = vld [vmem:[#allocation15_spill] sm:$0xff] }
 0x128   :  { %14241 = vst [vmem:[#allocation42_spill] sm:$0xff] %v10712_v45  ;;  %v14246_v11 = vrot.slane %v14245_v1, %v9157_v48  ;;  %v14247_v51 = vrot.slane %v14245_v1, %v9139_v26  ;;  %v14248_v37 = vrot.slane %v14245_v1, %v9163_v50  ;;  %v10738_v60 = vcombine.low %v1344_v27, %v1351_v13  ;;  %v14260_v45 = vld [vmem:[#allocation17_spill] sm:$0xff] }
 0x129   :  { %5608 = vadd.xlane.f32.xlu0 %v14243_v31  ;;  %v2730_v19 = vrot.slane %v2722_v28, %v9214_v25  ;;  %v2737_v39 = vrot.slane %v2723_v63, %v9214_v25  ;;  %v10758_v63 = vmul.f32 0.25, %v10294_v44  ;;  %v14254_v28 = vrot.slane %v10091_v4, %v9157_v48 }
 0x12a   :  { %5563 = vadd.xlane.f32.xlu1 %v14242_v30  ;;  %v10718_v18 = vpop.xlane.xlu1 %3589  ;;  %v2654_v40 = vcombine.low %v14247_v51, %v14246_v11  ;;  %v14249_v30 = vrot.slane %v14245_v1, %v9160_v49  ;;  %v10736_v23 = vpop.xlane.xlu0 %3586  ;;  %v14253_v1 = vld [vmem:[#allocation11_spill] sm:$0xff]  ;;  %v14255_v44 = vrot.slane %v10091_v4, %v9139_v26  ;;  %v14261_v54 = vrot.slane %v14260_v45, %v9157_v48 }
 0x12b   :  { %14251 = vst [vmem:[#allocation46_spill] sm:$0xff] %v10758_v63  ;;  %v10779_v51 = vcombine.low %v2730_v19, %v2737_v39  ;;  %v14264_v39 = vld [vmem:[#allocation49_spill] sm:$0xff] }
 0x12c   :  { %v2655_v57 = vcombine.low %v14249_v30, %v14248_v37  ;;  %v10749_v37 = vmul.f32 0.25, %v10292_v6  ;;  %v14252_v30 = vld [vmem:[#allocation10_spill] sm:$0xff]  ;;  %v2662_v27 = vrot.slane %v2654_v40, %v9214_v25  ;;  %v2756_v13 = vcombine.low %v14255_v44, %v14254_v28 }
 0x12d   :  { %5704 = vadd.xlane.f32.xlu0 %v14253_v1  ;;  %14257 = vst [vmem:[#allocation15_spill] sm:$0xff] %v10779_v51  ;;  %v14258_v1 = vrot.slane %v10091_v4, %v9163_v50  ;;  %v14259_v40 = vrot.slane %v10091_v4, %v9160_v49  ;;  %v14262_v28 = vrot.slane %v14260_v45, %v9139_v26 }
 0x12e   :  { %14250 = vst [vmem:[#allocation45_spill] sm:$0xff] %v10749_v37  ;;  %5659 = vadd.xlane.f32.xlu1 %v14252_v30  ;;  %v10764_v6 = vpop.xlane.xlu1 %3595  ;;  %v2669_v31 = vrot.slane %v2655_v57, %v9214_v25  ;;  %v10775_v30 = vmul.f32 0.25, %v10342_v10  ;;  %v10777_v11 = vpop.xlane.xlu0 %3592 }
 0x12f   :  { %v2757_v57 = vcombine.low %v14259_v40, %v14258_v1  ;;  %v2671_v44 = vcombine.low %v14262_v28, %v14261_v54  ;;  %v10808_v28 = vmul.f32 0.25, %v10344_v34  ;;  %v2764_v1 = vrot.slane %v2756_v13, %v9214_v25 }
 0x130   :  { %14256 = vst [vmem:[#allocation47_spill] sm:$0xff] %v10775_v30  ;;  %v10815_v4 = vcombine.low %v2662_v27, %v2669_v31  ;;  %v14266_v40 = vrot.slane %v14260_v45, %v9163_v50  ;;  %v14267_v54 = vrot.slane %v14260_v45, %v9160_v49  ;;  %v14268_v31 = vrot.slane %v10120_v41, %v9157_v48  ;;  %v14272_v45 = vld [vmem:[#allocation26_spill] sm:$0xff] }
 0x131   :  { %14263 = vst [vmem:[#allocation10_spill] sm:$0xff] %v10808_v28  ;;  %5611 = vadd.xlane.f32.xlu0 %v14264_v39  ;;  %v2771_v39 = vrot.slane %v2757_v57, %v9214_v25  ;;  %v2679_v10 = vrot.slane %v2671_v44, %v9214_v25  ;;  %v14269_v27 = vrot.slane %v10120_v41, %v9139_v26  ;;  %v10843_v57 = vmul.f32 0.25, %v10387_v35 }
 0x132   :  { %v10813_v19 = vpop.xlane.xlu1 %3601  ;;  %14265 = vst [vmem:[#allocation11_spill] sm:$0xff] %v10815_v4  ;;  %v2672_v37 = vcombine.low %v14267_v54, %v14266_v40  ;;  %v10826_v51 = vpop.xlane.xlu0 %3598  ;;  %v14273_v44 = vrot.slane %v10120_v41, %v9163_v50  ;;  %v14274_v34 = vrot.slane %v10120_v41, %v9160_v49  ;;  %v14278_v41 = vrot.slane %v10049_v3, %v9163_v50 }
 0x133   :  { %v2790_v13 = vcombine.low %v14269_v27, %v14268_v31  ;;  %14270 = vst [vmem:[#allocation17_spill] sm:$0xff] %v10843_v57  ;;  %v10852_v27 = vmul.f32 0.25, %v10389_v12  ;;  %v14275_v12 = vrot.slane %v10049_v3, %v9157_v48  ;;  %v14276_v31 = vrot.slane %v10049_v3, %v9139_v26 }
 0x134   :  { %v2686_v35 = vrot.slane %v2672_v37, %v9214_v25  ;;  %v2791_v30 = vcombine.low %v14274_v34, %v14273_v44  ;;  %v10877_v37 = vcombine.low %v2764_v1, %v2771_v39  ;;  %v14279_v34 = vrot.slane %v10049_v3, %v9160_v49 }
 0x135   :  { %14271 = vst [vmem:[#allocation49_spill] sm:$0xff] %v10852_v27  ;;  %5707 = vadd.xlane.f32.xlu0 %v14272_v45  ;;  %v2705_v40 = vcombine.low %v14276_v31, %v14275_v12  ;;  %v10873_v45 = vmul.f32 0.25, %v10437_v22  ;;  %v2798_v63 = vrot.slane %v2790_v13, %v9214_v25  ;;  %v10901_v12 = vmul.f32 0.25, %v10439_v42  ;;  %v14287_v22 = vld [vmem:[#allocation43_spill] sm:$0xff] }
 0x136   :  { %v10857_v54 = vpop.xlane.xlu1 %3607  ;;  %v10875_v28 = vpop.xlane.xlu0 %3604  ;;  %v2706_v44 = vcombine.low %v14279_v34, %v14278_v41  ;;  %v10907_v31 = vcombine.low %v2679_v10, %v2686_v35  ;;  %v2805_v1 = vrot.slane %v2791_v30, %v9214_v25  ;;  %v14281_v42 = vrot.slane %v10186_v38, %v9157_v48 }
 0x137   :  { %14277 = vst [vmem:[#allocation26_spill] sm:$0xff] %v10873_v45  ;;  %14280 = vst [vmem:[#allocation51_spill] sm:$0xff] %v10901_v12  ;;  %v2713_v4 = vrot.slane %v2705_v40, %v9214_v25  ;;  %v14282_v41 = vrot.slane %v10186_v38, %v9139_v26  ;;  %v14283_v10 = vrot.slane %v10186_v38, %v9163_v50  ;;  %v10935_v57 = vmul.f32 0.25, %v10482_v29 }
 0x138   :  { %v2720_v3 = vrot.slane %v2706_v44, %v9214_v25  ;;  %v14284_v30 = vrot.slane %v10186_v38, %v9160_v49  ;;  %v10951_v29 = vcombine.low %v2798_v63, %v2805_v1  ;;  %v14288_v35 = vrot.slane %v10100_v15, %v9157_v48 }
 0x139   :  { %v2824_v13 = vcombine.low %v14282_v41, %v14281_v42  ;;  %14285 = vst [vmem:[#allocation52_spill] sm:$0xff] %v10935_v57  ;;  %v14289_v41 = vrot.slane %v10100_v15, %v9139_v26  ;;  %v14291_v38 = vrot.slane %v10100_v15, %v9160_v49  ;;  %v10966_v45 = vmul.f32 0.25, %v10528_v43 }
 0x13a   :  { %v10905_v34 = vpop.xlane.xlu1 %3613  ;;  %v10913_v39 = vpop.xlane.xlu0 %3610  ;;  %v2825_v40 = vcombine.low %v14284_v30, %v14283_v10  ;;  %v10944_v10 = vmul.f32 0.25, %v10484_v0  ;;  %v14290_v0 = vrot.slane %v10100_v15, %v9163_v50  ;;  %v10970_v63 = vcombine.low %v2713_v4, %v2720_v3  ;;  %v14294_v15 = vld [vmem:[#allocation48_spill] sm:$0xff] }
 0x13b   :  { %v2739_v42 = vcombine.low %v14289_v41, %v14288_v35  ;;  %14292 = vst [vmem:[#allocation43_spill] sm:$0xff] %v10966_v45  ;;  %v2832_v1 = vrot.slane %v2824_v13, %v9214_v25  ;;  %v14295_v41 = vrot.slane %v10210_v55, %v9157_v48  ;;  %v14296_v3 = vrot.slane %v10210_v55, %v9139_v26 }
 0x13c   :  { %14286 = vst [vmem:[#allocation53_spill] sm:$0xff] %v10944_v10  ;;  %v2740_v30 = vcombine.low %v14291_v38, %v14290_v0  ;;  %v2839_v12 = vrot.slane %v2825_v40, %v9214_v25  ;;  %v10989_v40 = vmul.f32 0.25, %v10530_v61  ;;  %v14299_v57 = vrot.slane %v10145_v33, %v9157_v48 }
 0x13d   :  { %v2747_v43 = vrot.slane %v2739_v42, %v9214_v25  ;;  %v2858_v4 = vcombine.low %v14296_v3, %v14295_v41  ;;  %v14298_v42 = vrot.slane %v10210_v55, %v9160_v49  ;;  %v14300_v41 = vrot.slane %v10145_v33, %v9139_v26 }
 0x13e   :  { %v10948_v44 = vpop.xlane.xlu1 %3619  ;;  %14293 = vst [vmem:[#allocation54_spill] sm:$0xff] %v10989_v40  ;;  %v2754_v35 = vrot.slane %v2740_v30, %v9214_v25  ;;  %v11008_v38 = vcombine.low %v2832_v1, %v2839_v12  ;;  %v11029_v10 = vmul.f32 0.25, %v10578_v2  ;;  %v14303_v1 = vld [vmem:[#allocation50_spill] sm:$0xff]  ;;  %v14322_v27 = vrot.slane %v10305_v9, %v9139_v26 }
 0x13f   :  { %458 = vperm.xlu1 %8757, %v14287_v22   ;;  %v10968_v22 = vpop.xlane.xlu0 %3616  ;;  %v2773_v3 = vcombine.low %v14300_v41, %v14299_v57  ;;  %v2866_v61 = vrot.slane %v2858_v4, %v9214_v25  ;;  %v14305_v57 = vrot.slane %v10145_v33, %v9160_v49 }
 0x140   :  { %14301 = vst [vmem:[#allocation48_spill] sm:$0xff] %v11029_v10  ;;  %v11045_v2 = vcombine.low %v2747_v43, %v2754_v35  ;;  %v14306_v35 = vrot.slane %v10277_v59, %v9157_v48  ;;  %v14307_v43 = vrot.slane %v10277_v59, %v9139_v26 }
 0x142   :  { %v10993_v0 = vpop.xlane.xlu1 %5521  ;;  %v2892_v4 = vcombine.low %v14307_v43, %v14306_v35  ;;  %v11082_v43 = vmul.f32 0.25, %v10640_v47  ;;  %v14312_v47 = vrot.slane %v10195_v7, %v9157_v48  ;;  %v14313_v35 = vrot.slane %v10195_v7, %v9139_v26 }
 0x143   :  { %461 = vperm.xlu1 %8757, %v14294_v15   ;;  %v11006_v13 = vpop.xlane.xlu0 %5518  ;;  %v14297_v15 = vrot.slane %v10210_v55, %v9163_v50  ;;  %v14304_v55 = vrot.slane %v10145_v33, %v9163_v50 }
 0x144   :  { %14308 = vst [vmem:[#allocation50_spill] sm:$0xff] %v11082_v43  ;;  %v2807_v33 = vcombine.low %v14313_v35, %v14312_v47  ;;  %v2900_v40 = vrot.slane %v2892_v4, %v9214_v25  ;;  %v14321_v35 = vrot.slane %v10305_v9, %v9157_v48  ;;  %v14326_v43 = vld [vmem:[#allocation18_spill] sm:$0xff] }
 0x145   :  { %v2859_v30 = vcombine.low %v14298_v42, %v14297_v15  ;;  %v11038_v42 = vmul.f32 0.25, %v10580_v62  ;;  %v2774_v15 = vcombine.low %v14305_v57, %v14304_v55  ;;  %v11055_v62 = vmul.f32 0.25, %v10623_v32  ;;  %v14309_v55 = vld [vmem:[#allocation12_spill] sm:$0xff] }
 0x146   :  { %v11042_v12 = vpop.xlane.xlu1 %5614  ;;  %v14311_v57 = vrot.slane %v10277_v59, %v9160_v49 }
 0x147   :  { %14302 = vst [vmem:[#allocation55_spill] sm:$0xff] %v11038_v42  ;;  %464 = vperm.xlu1 %8757, %v14303_v1   ;;  %v11057_v45 = vpop.xlane.xlu0 %5566  ;;  %v2873_v41 = vrot.slane %v2859_v30, %v9214_v25  ;;  %v2781_v1 = vrot.slane %v2773_v3, %v9214_v25  ;;  %v2788_v30 = vrot.slane %v2774_v15, %v9214_v25 }
 0x148   :  { %v14310_v3 = vrot.slane %v10277_v59, %v9163_v50  ;;  %v14314_v59 = vrot.slane %v10195_v7, %v9163_v50  ;;  %v2815_v42 = vrot.slane %v2807_v33, %v9214_v25 }
 0x149   :  { %v11106_v15 = vcombine.low %v2866_v61, %v2873_v41  ;;  %v11122_v61 = vmul.f32 0.25, %v10673_v53  ;;  %v14317_v41 = vld [vmem:[#allocation13_spill] sm:$0xff]  ;;  %v14319_v53 = vld [vmem:[#allocation14_spill] sm:$0xff] }
 0x14a   :  { %v11086_v32 = vpop.xlane.xlu1 %5662  ;;  %v2893_v10 = vcombine.low %v14311_v57, %v14310_v3  ;;  %v14315_v3 = vrot.slane %v10195_v7, %v9160_v49  ;;  %v11144_v7 = vmul.f32 0.25, %v10718_v18 }
 0x14b   :  { %467 = vperm.xlu1 %8757, %v14309_v55   ;;  %v11104_v55 = vpop.xlane.xlu0 %5569  ;;  %14316 = vst [vmem:[#allocation12_spill] sm:$0xff] %v11122_v61  ;;  %455 = vperm.xlu0 %8758, %v14317_v41   ;;  %v11139_v41 = vcombine.low %v2781_v1, %v2788_v30  ;;  %v14323_v1 = vrot.slane %v10305_v9, %v9163_v50 }
 0x14c   :  { %v2808_v57 = vcombine.low %v14315_v3, %v14314_v59  ;;  %v11132_v3 = vmul.f32 0.25, %v10682_v21  ;;  %v2907_v4 = vrot.slane %v2893_v10, %v9214_v25  ;;  %14320 = vst [vmem:[#allocation14_spill] sm:$0xff] %v11144_v7  ;;  %v14324_v10 = vrot.slane %v10305_v9, %v9160_v49 }
 0x14d   :  { %v14327_v30 = vrot.slane %v10240_v36, %v9157_v48  ;;  %v14336_v61 = vrot.slane %v10372_v46, %v9157_v48 }
 0x14e   :  { %14318 = vst [vmem:[#allocation13_spill] sm:$0xff] %v11132_v3  ;;  %v11136_v47 = vpop.xlane.xlu1 %5524  ;;  %v2822_v21 = vrot.slane %v2808_v57, %v9214_v25  ;;  %v2927_v33 = vcombine.low %v14324_v10, %v14323_v1  ;;  %v11177_v10 = vmul.f32 0.25, %v10736_v23  ;;  %v14329_v23 = vrot.slane %v10240_v36, %v9163_v50 }
 0x14f   :  { %470 = vperm.xlu1 %8757, %v14319_v53   ;;  %v11146_v59 = vpop.xlane.xlu0 %5617  ;;  %v2926_v53 = vcombine.low %v14322_v27, %v14321_v35  ;;  %v14325_v27 = vld [vmem:[#allocation16_spill] sm:$0xff]  ;;  %v14328_v35 = vrot.slane %v10240_v36, %v9139_v26  ;;  %v14330_v1 = vrot.slane %v10240_v36, %v9160_v49 }
 0x150   :  { %1371 = vperm.xlu0 %8758, %v14325_v27   ;;  %v11184_v27 = vcombine.low %v2900_v40, %v2907_v4  ;;  %v11202_v40 = vcombine.low %v2815_v42, %v2822_v21  ;;  %v2941_v3 = vrot.slane %v2927_v33, %v9214_v25  ;;  %v11223_v33 = vmul.f32 0.25, %v10777_v11  ;;  %v14335_v36 = vld [vmem:[#allocation20_spill] sm:$0xff] }
 0x151   :  { %v2841_v9 = vcombine.low %v14328_v35, %v14327_v30  ;;  %v2842_v57 = vcombine.low %v14330_v1, %v14329_v23  ;;  %v2934_v4 = vrot.slane %v2926_v53, %v9214_v25  ;;  %v11213_v1 = vmul.f32 0.25, %v10764_v6  ;;  %v14333_v23 = vld [vmem:[#allocation19_spill] sm:$0xff] }
 0x152   :  { %v11181_v18 = vpop.xlane.xlu1 %5620  ;;  %14331 = vst [vmem:[#allocation16_spill] sm:$0xff] %v11202_v40  ;;  %14334 = vst [vmem:[#allocation19_spill] sm:$0xff] %v11223_v33  ;;  %v14337_v30 = vrot.slane %v10372_v46, %v9139_v26  ;;  %v14338_v53 = vrot.slane %v10372_v46, %v9163_v50  ;;  %v14339_v11 = vrot.slane %v10372_v46, %v9160_v49  ;;  %v11273_v46 = vmul.f32 0.25, %v10826_v51 }
 0x153   :  { %473 = vperm.xlu1 %8757, %v14326_v43   ;;  %v11200_v43 = vpop.xlane.xlu0 %5665  ;;  %14332 = vst [vmem:[#allocation18_spill] sm:$0xff] %v11213_v1  ;;  %v2849_v6 = vrot.slane %v2841_v9, %v9214_v25  ;;  %v11245_v9 = vmul.f32 0.25, %v10813_v19  ;;  %v11249_v7 = vcombine.low %v2934_v4, %v2941_v3  ;;  %v14344_v4 = vld [vmem:[#allocation21_spill] sm:$0xff]  ;;  %v14346_v3 = vld [vmem:[#allocation22_spill] sm:$0xff]  ;;  %v14348_v51 = vrot.slane %v10286_v58, %v9163_v50 }
 0x154   :  { %1380 = vperm.xlu0 %8758, %v14333_v23   ;;  %v2856_v23 = vrot.slane %v2842_v57, %v9214_v25  ;;  %v2960_v42 = vcombine.low %v14337_v30, %v14336_v61  ;;  %v2961_v21 = vcombine.low %v14339_v11, %v14338_v53  ;;  %v14342_v61 = vrot.slane %v10286_v58, %v9157_v48 }
 0x155   :  { %14340 = vst [vmem:[#allocation20_spill] sm:$0xff] %v11245_v9  ;;  %14341 = vst [vmem:[#allocation56_spill] sm:$0xff] %v11249_v7  ;;  %v14343_v30 = vrot.slane %v10286_v58, %v9139_v26  ;;  %v14349_v19 = vrot.slane %v10286_v58, %v9160_v49  ;;  %v11308_v58 = vmul.f32 0.25, %v10857_v54  ;;  %v14355_v54 = vld [vmem:[#allocation24_spill] sm:$0xff] }
 0x156   :  { %v11225_v35 = vpop.xlane.xlu1 %5527  ;;  %14345 = vst [vmem:[#allocation21_spill] sm:$0xff] %v11273_v46  ;;  %v2968_v11 = vrot.slane %v2960_v42, %v9214_v25  ;;  %v14351_v42 = vrot.slane %v10405_v14, %v9139_v26 }
 0x157   :  { %476 = vperm.xlu1 %8757, %v14335_v36   ;;  %v11247_v57 = vpop.xlane.xlu0 %5572  ;;  %v2875_v40 = vcombine.low %v14343_v30, %v14342_v61  ;;  %v2975_v36 = vrot.slane %v2961_v21, %v9214_v25  ;;  %v2876_v1 = vcombine.low %v14349_v19, %v14348_v51  ;;  %14352 = vst [vmem:[#allocation57_spill] sm:$0xff] %v11308_v58  ;;  %v14358_v51 = vld [vmem:[#allocation27_spill] sm:$0xff] }
 0x158   :  { %1386 = vperm.xlu0 %8758, %v14344_v4   ;;  %v11280_v4 = vcombine.low %v2849_v6, %v2856_v23  ;;  %v14350_v6 = vrot.slane %v10405_v14, %v9157_v48  ;;  %v14357_v23 = vrot.slane %v10405_v14, %v9160_v49  ;;  %v14361_v61 = vrot.slane %v14358_v51, %v9163_v50 }
 0x15a   :  { %v11277_v53 = vpop.xlane.xlu1 %5623  ;;  %14347 = vst [vmem:[#allocation22_spill] sm:$0xff] %v11280_v4  ;;  %v2994_v21 = vcombine.low %v14351_v42, %v14350_v6  ;;  %v11318_v42 = vmul.f32 0.25, %v10875_v28  ;;  %v14359_v6 = vrot.slane %v14358_v51, %v9157_v48  ;;  %v14360_v28 = vrot.slane %v14358_v51, %v9139_v26 }
 0x15b   :  { %1374 = vperm.xlu1 %8757, %v14346_v3   ;;  %v11286_v30 = vpop.xlane.xlu0 %5668  ;;  %v2883_v3 = vrot.slane %v2875_v40, %v9214_v25  ;;  %v14353_v40 = vld [vmem:[#allocation23_spill] sm:$0xff]  ;;  %v11344_v4 = vmul.f32 0.25, %v10905_v34  ;;  %v11359_v34 = vmul.f32 0.25, %v10913_v39  ;;  %v14367_v39 = vld [vmem:[#allocation28_spill] sm:$0xff] }
 0x15c   :  { %1392 = vperm.xlu0 %8758, %v14353_v40   ;;  %14354 = vst [vmem:[#allocation23_spill] sm:$0xff] %v11318_v42  ;;  %v14356_v40 = vrot.slane %v10405_v14, %v9163_v50  ;;  %v2909_v9 = vcombine.low %v14360_v28, %v14359_v6  ;;  %v11348_v14 = vcombine.low %v2968_v11, %v2975_v36  ;;  %v14377_v28 = vld [vmem:[#allocation29_spill] sm:$0xff] }
 0x15d   :  { %14363 = vst [vmem:[#allocation24_spill] sm:$0xff] %v11344_v4  ;;  %14365 = vst [vmem:[#allocation58_spill] sm:$0xff] %v11359_v34  ;;  %v14385_v4 = vld [vmem:[#allocation32_spill] sm:$0xff] }
 0x15e   :  { %v11322_v33 = vpop.xlane.xlu1 %5530  ;;  %v2995_v19 = vcombine.low %v14357_v23, %v14356_v40  ;;  %14364 = vst [vmem:[#allocation27_spill] sm:$0xff] %v11348_v14  ;;  %v2890_v23 = vrot.slane %v2876_v1, %v9214_v25  ;;  %v3002_v40 = vrot.slane %v2994_v21, %v9214_v25  ;;  %v2917_v36 = vrot.slane %v2909_v9, %v9214_v25 }
 0x15f   :  { %1377 = vperm.xlu1 %8757, %v14355_v54   ;;  %v14362_v54 = vrot.slane %v14358_v51, %v9160_v49  ;;  %v11346_v7 = vpop.xlane.xlu0 %5575  ;;  %v14366_v51 = vld [vmem:[#allocation25_spill] sm:$0xff]  ;;  %v14369_v21 = vrot.slane %v10467_v8, %v9157_v48  ;;  %v14372_v9 = vrot.slane %v10467_v8, %v9160_v49 }
 0x160   :  { %1398 = vperm.xlu0 %8758, %v14366_v51   ;;  %v3009_v51 = vrot.slane %v2995_v19, %v9214_v25  ;;  %v11382_v11 = vcombine.low %v2883_v3, %v2890_v23  ;;  %v14371_v19 = vrot.slane %v10467_v8, %v9163_v50 }
 0x161   :  { %v2910_v46 = vcombine.low %v14362_v54, %v14361_v61  ;;  %v14370_v54 = vrot.slane %v10467_v8, %v9139_v26  ;;  %v14378_v8 = vrot.slane %v14377_v28, %v9157_v48 }
 0x162   :  { %v11372_v61 = vpop.xlane.xlu1 %5626  ;;  %14368 = vst [vmem:[#allocation25_spill] sm:$0xff] %v11382_v11  ;;  %v14400_v11 = vld [vmem:[#allocation31_spill] sm:$0xff] }
 0x163   :  { %1383 = vperm.xlu1 %8757, %v14367_v39   ;;  %v2924_v6 = vrot.slane %v2910_v46, %v9214_v25  ;;  %v11380_v1 = vpop.xlane.xlu0 %5671  ;;  %v3028_v39 = vcombine.low %v14370_v54, %v14369_v21  ;;  %v3029_v46 = vcombine.low %v14372_v9, %v14371_v19  ;;  %v11412_v19 = vmul.f32 0.25, %v10948_v44 }
 0x164   :  { %1404 = vperm.xlu0 %8758, %v10407_v5   ;;  %v11415_v9 = vmul.f32 0.25, %v10968_v22  ;;  %v11420_v5 = vcombine.low %v3002_v40, %v3009_v51  ;;  %v14379_v54 = vrot.slane %v14377_v28, %v9139_v26  ;;  %v14382_v40 = vrot.slane %v14377_v28, %v9160_v49 }
 0x165   :  { %14373 = vst [vmem:[#allocation28_spill] sm:$0xff] %v11412_v19  ;;  %v11422_v23 = vcombine.low %v2917_v36, %v2924_v6  ;;  %v3036_v22 = vrot.slane %v3028_v39, %v9214_v25  ;;  %v3043_v21 = vrot.slane %v3029_v46, %v9214_v25  ;;  %v14383_v36 = vrot.slane %v10501_v17, %v9157_v48 }
 0x166   :  { %14374 = vst [vmem:[#allocation59_spill] sm:$0xff] %v11415_v9  ;;  %v11417_v3 = vpop.xlane.xlu1 %5533  ;;  %14375 = vst [vmem:[#allocation60_spill] sm:$0xff] %v11420_v5  ;;  %v2943_v58 = vcombine.low %v14379_v54, %v14378_v8  ;;  %v14384_v51 = vrot.slane %v10501_v17, %v9139_v26  ;;  %v5709_v54 = vmul.f32 0.25, %v11006_v13  ;;  %v5741_v39 = vmul.f32 0.25, %v11042_v12  ;;  %v14393_v12 = vld [vmem:[#allocation33_spill] sm:$0xff]  ;;  %v14399_v5 = vld [vmem:[#allocation35_spill] sm:$0xff] }
 0x167   :  { %1389 = vperm.xlu1 %8757, %v10441_v56   ;;  %14376 = vst [vmem:[#allocation61_spill] sm:$0xff] %v11422_v23  ;;  %v11430_v44 = vpop.xlane.xlu0 %5578  ;;  %v14381_v56 = vrot.slane %v14377_v28, %v9163_v50  ;;  %v14386_v46 = vrot.slane %v10501_v17, %v9163_v50  ;;  %v14387_v28 = vrot.slane %v10501_v17, %v9160_v49 }
 0x168   :  { %14380 = vst [vmem:[#allocation29_spill] sm:$0xff] %v11430_v44  ;;  %v3062_v8 = vcombine.low %v14384_v51, %v14383_v36  ;;  %1410 = vperm.xlu0 %8758, %v14385_v4   ;;  %v2951_v4 = vrot.slane %v2943_v58, %v9214_v25  ;;  %v5773_v19 = vsub.f32 %v5709_v54, %v5741_v39  ;;  %v5757_v44 = vmul.f32 0.25, %v11086_v32  ;;  %v14405_v32 = vld [vmem:[#allocation37_spill] sm:$0xff] }
 0x169   :  { %v2944_v6 = vcombine.low %v14382_v40, %v14381_v56  ;;  %v3063_v56 = vcombine.low %v14387_v28, %v14386_v46  ;;  %v14388_v40 = vld [vmem:[#allocation30_spill] sm:$0xff]  ;;  %v14396_v28 = vrot.slane %v10563_v16, %v9139_v26  ;;  %v14401_v14 = vrot.slane %v14400_v11, %v9157_v48 }
 0x16a   :  { %v14389_v34 = vrot.slane %v14388_v40, %v9157_v48  ;;  %v14390_v42 = vrot.slane %v14388_v40, %v9139_v26  ;;  %v14391_v17 = vrot.slane %v14388_v40, %v9163_v50  ;;  %v14392_v51 = vrot.slane %v14388_v40, %v9160_v49  ;;  %v11479_v13 = vpop.xlane.xlu1 %5629 }
 0x16b   :  { %1395 = vperm.xlu1 %8757, %v14393_v12   ;;  %v11483_v23 = vpop.xlane.xlu0 %5674  ;;  %v2958_v40 = vrot.slane %v2944_v6, %v9214_v25  ;;  %v14398_v12 = vrot.slane %v10563_v16, %v9160_v49  ;;  %v3077_v6 = vrot.slane %v3063_v56, %v9214_v25  ;;  %v14404_v54 = vrot.slane %v14400_v11, %v9160_v49 }
 0x16c   :  { %v2977_v36 = vcombine.low %v14390_v42, %v14389_v34  ;;  %v2978_v46 = vcombine.low %v14392_v51, %v14391_v17  ;;  %14394 = vst [vmem:[#allocation32_spill] sm:$0xff] %v11483_v23  ;;  %v3070_v17 = vrot.slane %v3062_v8, %v9214_v25  ;;  %v14395_v51 = vrot.slane %v10563_v16, %v9157_v48 }
 0x16d   :  { %v14397_v34 = vrot.slane %v10563_v16, %v9163_v50  ;;  %1416 = vperm.xlu0 %8758, %v14399_v5   ;;  %v5725_v23 = vmul.f32 0.25, %v11057_v45  ;;  %v14403_v5 = vrot.slane %v14400_v11, %v9163_v50 }
 0x16e   :  { %v3096_v42 = vcombine.low %v14396_v28, %v14395_v51  ;;  %v2985_v8 = vrot.slane %v2977_v36, %v9214_v25  ;;  %v14402_v28 = vrot.slane %v14400_v11, %v9139_v26  ;;  %v2992_v16 = vrot.slane %v2978_v46, %v9214_v25  ;;  %v11522_v45 = vpop.xlane.xlu1 %5536 }
 0x16f   :  { %v3097_v58 = vcombine.low %v14398_v12, %v14397_v34  ;;  %v3012_v56 = vcombine.low %v14404_v54, %v14403_v5  ;;  %1401 = vperm.xlu1 %8757, %v14405_v32   ;;  %v11525_v46 = vcombine.low %v3036_v22, %v3043_v21  ;;  %v11527_v12 = vpop.xlane.xlu0 %5581  ;;  %v14408_v5 = vrot.slane %v10592_v24, %v9157_v48 }
 0x170   :  { %v3011_v51 = vcombine.low %v14402_v28, %v14401_v14  ;;  %v5710_v14 = vmul.f32 0.25, %v10993_v0  ;;  %14407 = vst [vmem:[#allocation33_spill] sm:$0xff] %v11527_v12  ;;  %v3104_v28 = vrot.slane %v3096_v42, %v9214_v25  ;;  %v14409_v54 = vrot.slane %v10592_v24, %v9139_v26 }
 0x171   :  { %14406 = vst [vmem:[#allocation30_spill] sm:$0xff] %v11525_v46  ;;  %v3111_v11 = vrot.slane %v3097_v58, %v9214_v25  ;;  %v14410_v0 = vrot.slane %v10592_v24, %v9163_v50  ;;  %v14411_v21 = vrot.slane %v10592_v24, %v9160_v49  ;;  %v5805_v32 = vmul.f32 7.5, %v5773_v19  ;;  %3182 = vperm.xlu0 %8758, %v10642_v20   ;;  %v14412_v24 = vld [vmem:[#allocation34_spill] sm:$0xff] }
 0x172   :  { %v3130_v36 = vcombine.low %v14409_v54, %v14408_v5  ;;  %v11544_v42 = vcombine.low %v2951_v4, %v2958_v40  ;;  %v11546_v58 = vcombine.low %v3070_v17, %v3077_v6  ;;  %v3019_v34 = vrot.slane %v3011_v51, %v9214_v25  ;;  %v11553_v12 = vpop.xlane.xlu1 %5632  ;;  %v14417_v17 = vld [vmem:[#allocation39_spill] sm:$0xff] }
 0x173   :  { %v3131_v22 = vcombine.low %v14411_v21, %v14410_v0  ;;  %v5789_v9 = vsub.f32 %v5725_v23, %v5757_v44  ;;  %v5742_v46 = vmul.f32 0.25, %v11146_v59  ;;  %v11550_v5 = vcombine.low %v2985_v8, %v2992_v16  ;;  %1407 = vperm.xlu1 %8757, %v10675_v52   ;;  %v11581_v21 = vpop.xlane.xlu0 %5677 }
 0x174   :  { %v3026_v54 = vrot.slane %v3012_v56, %v9214_v25  ;;  %v14413_v20 = vrot.slane %v14412_v24, %v9157_v48  ;;  %v14414_v19 = vrot.slane %v14412_v24, %v9139_v26  ;;  %v14415_v23 = vrot.slane %v14412_v24, %v9163_v50 }
 0x175   :  { %v14416_v59 = vrot.slane %v14412_v24, %v9160_v49  ;;  %v14418_v6 = vrot.slane %v14417_v17, %v9157_v48  ;;  %v14419_v52 = vrot.slane %v14417_v17, %v9139_v26  ;;  %v14420_v51 = vrot.slane %v14417_v17, %v9163_v50 }
 0x176   :  { %v3045_v4 = vcombine.low %v14414_v19, %v14413_v20  ;;  %v14421_v16 = vrot.slane %v14417_v17, %v9160_v49  ;;  %v5743_v0 = vmul.f32 0.25, %v11181_v18  ;;  %v11583_v24 = vcombine.low %v3104_v28, %v3111_v11 }
 0x177   :  { %v3046_v40 = vcombine.low %v14416_v59, %v14415_v23  ;;  %v3164_v8 = vcombine.low %v14419_v52, %v14418_v6  ;;  %v3138_v20 = vrot.slane %v3130_v36, %v9214_v25  ;;  %v3145_v19 = vrot.slane %v3131_v22, %v9214_v25  ;;  %v14424_v6 = vld [vmem:[#allocation44_spill] sm:$0xff]  ;;  %1413 = vperm.xlu1 %8757, %v10738_v60  }
 0x178   :  { %v3165_v56 = vcombine.low %v14421_v16, %v14420_v51  ;;  %14422 = vst [vmem:[#allocation35_spill] sm:$0xff] %v11583_v24  ;;  %v11587_v23 = vadd.f32 %v5805_v32, %v5741_v39  ;;  %v5726_v59 = vmul.f32 0.25, %v11104_v55  ;;  %3191 = vperm.xlu0 %8758, %v14424_v6   ;;  %v14425_v52 = vld [vmem:[#allocation36_spill] sm:$0xff]  ;;  %v5821_v39 = vmul.f32 7.5, %v5789_v9  ;;  %v11606_v16 = vpop.xlane.xlu1 %5539 }
 0x179   :  { %v14426_v17 = vrot.slane %v14425_v52, %v9157_v48  ;;  %v14427_v18 = vrot.slane %v14425_v52, %v9139_v26  ;;  %v14428_v28 = vrot.slane %v14425_v52, %v9163_v50  ;;  %v14429_v36 = vrot.slane %v14425_v52, %v9160_v49 }
 0x17a   :  { %14423 = vst [vmem:[#allocation31_spill] sm:$0xff] %v11587_v23  ;;  %v5711_v22 = vmul.f32 0.25, %v11136_v47  ;;  %v5774_v55 = vsub.f32 %v5710_v14, %v5742_v46  ;;  %v11604_v32 = vcombine.low %v3019_v34, %v3026_v54  ;;  %v3053_v6 = vrot.slane %v3045_v4, %v9214_v25  ;;  %v14430_v47 = vld [vmem:[#allocation41_spill] sm:$0xff] }
 0x17b   :  { %v3079_v51 = vcombine.low %v14427_v18, %v14426_v17  ;;  %v3080_v11 = vcombine.low %v14429_v36, %v14428_v28  ;;  %v3060_v17 = vrot.slane %v3046_v40, %v9214_v25  ;;  %v3172_v18 = vrot.slane %v3164_v8, %v9214_v25  ;;  %v11613_v28 = vpop.xlane.xlu0 %5584 }
 0x17c   :  { %v3179_v24 = vrot.slane %v3165_v56, %v9214_v25  ;;  %v5775_v52 = vsub.f32 %v5711_v22, %v5743_v0  ;;  %v11615_v9 = vcombine.low %v3138_v20, %v3145_v19  ;;  %v14431_v34 = vrot.slane %v14430_v47, %v9157_v48  ;;  %v14435_v20 = vld [vmem:[#allocation15_spill] sm:$0xff] }
 0x17d   :  { %v14432_v14 = vrot.slane %v14430_v47, %v9139_v26  ;;  %v14433_v54 = vrot.slane %v14430_v47, %v9163_v50  ;;  %v14434_v4 = vrot.slane %v14430_v47, %v9160_v49  ;;  %v5758_v56 = vmul.f32 0.25, %v11200_v43  ;;  %3197 = vperm.xlu0 %8758, %v14435_v20   ;;  %v14437_v43 = vld [vmem:[#allocation11_spill] sm:$0xff] }
 0x17e   :  { %v3087_v19 = vrot.slane %v3079_v51, %v9214_v25  ;;  %v3094_v36 = vrot.slane %v3080_v11, %v9214_v25  ;;  %v5806_v47 = vmul.f32 7.5, %v5774_v55  ;;  %3185 = vperm.xlu1 %8757, %v14437_v43   ;;  %v11646_v20 = vcombine.low %v3053_v6, %v3060_v17  ;;  %v14438_v11 = vld [vmem:[#allocation38_spill] sm:$0xff] }
 0x17f   :  { %v4581_v60 = vcombine.low %v14432_v14, %v14431_v34  ;;  %v4582_v40 = vcombine.low %v14434_v4, %v14433_v54  ;;  %v11639_v14 = vadd.f32 %v5821_v39, %v5757_v44  ;;  %v11643_v4 = vpop.xlane.xlu1 %5635  ;;  %v11648_v51 = vcombine.low %v3172_v18, %v3179_v24  ;;  %v11656_v55 = vpop.xlane.xlu0 %5680 }
 0x180   :  { %v14439_v8 = vrot.slane %v14438_v11, %v9157_v48  ;;  %v14440_v34 = vrot.slane %v14438_v11, %v9139_v26  ;;  %v5807_v39 = vmul.f32 7.5, %v5775_v52  ;;  %v14441_v6 = vrot.slane %v14438_v11, %v9163_v50  ;;  %v14443_v52 = vld [vmem:[#allocation45_spill] sm:$0xff] }
 0x181   :  { %14436 = vst [vmem:[#allocation37_spill] sm:$0xff] %v11639_v14  ;;  %v4589_v54 = vrot.slane %v4581_v60, %v9214_v25  ;;  %v4596_v22 = vrot.slane %v4582_v40, %v9214_v25  ;;  %v14442_v24 = vrot.slane %v14438_v11, %v9160_v49  ;;  %v5790_v18 = vsub.f32 %v5726_v59, %v5758_v56 }
 0x182   :  { %v3113_v44 = vcombine.low %v14440_v34, %v14439_v8  ;;  %v5744_v43 = vmul.f32 0.25, %v11277_v53  ;;  %3203 = vperm.xlu0 %8758, %v10877_v37   ;;  %v11668_v8 = vcombine.low %v3087_v19, %v3094_v36  ;;  %v14444_v34 = vrot.slane %v14443_v52, %v9157_v48  ;;  %3188 = vperm.xlu1 %8757, %v10907_v31  }
 0x183   :  { %v3114_v17 = vcombine.low %v14442_v24, %v14441_v6  ;;  %v14445_v60 = vrot.slane %v14443_v52, %v9139_v26  ;;  %v11682_v59 = vadd.f32 %v5806_v47, %v5742_v46  ;;  %v5712_v19 = vmul.f32 0.25, %v11225_v35  ;;  %v11687_v36 = vpop.xlane.xlu1 %5542  ;;  %v11700_v53 = vpop.xlane.xlu0 %5587 }
 0x184   :  { %v3121_v6 = vrot.slane %v3113_v44, %v9214_v25  ;;  %v14447_v24 = vrot.slane %v14443_v52, %v9163_v50  ;;  %v11697_v46 = vadd.f32 %v5807_v39, %v5743_v0  ;;  %v5727_v47 = vmul.f32 0.25, %v11247_v57  ;;  %v14450_v39 = vld [vmem:[#allocation40_spill] sm:$0xff] }
 0x185   :  { %v4632_v40 = vcombine.low %v14445_v60, %v14444_v34  ;;  %14446 = vst [vmem:[#allocation34_spill] sm:$0xff] %v11682_v59  ;;  %v14448_v34 = vrot.slane %v14443_v52, %v9160_v49  ;;  %v11702_v35 = vcombine.low %v4589_v54, %v4596_v22  ;;  %v3128_v37 = vrot.slane %v3114_v17, %v9214_v25 }
 0x186   :  { %14449 = vst [vmem:[#allocation39_spill] sm:$0xff] %v11697_v46  ;;  %v5822_v31 = vmul.f32 7.5, %v5790_v18  ;;  %v5776_v23 = vsub.f32 %v5712_v19, %v5744_v43  ;;  %v5759_v44 = vmul.f32 0.25, %v11286_v30  ;;  %3209 = vperm.xlu0 %8758, %v10951_v29   ;;  %v14451_v22 = vrot.slane %v14450_v39, %v9157_v48  ;;  %3194 = vperm.xlu1 %8757, %v10970_v63  }
 0x187   :  { %v4633_v60 = vcombine.low %v14448_v34, %v14447_v24  ;;  %v4640_v11 = vrot.slane %v4632_v40, %v9214_v25  ;;  %v14452_v54 = vrot.slane %v14450_v39, %v9139_v26  ;;  %v14453_v30 = vrot.slane %v14450_v39, %v9163_v50  ;;  %v11728_v19 = vpop.xlane.xlu1 %5638  ;;  %v11746_v63 = vpop.xlane.xlu0 %5683 }
 0x188   :  { %v14454_v29 = vrot.slane %v14450_v39, %v9160_v49  ;;  %v14455_v24 = vrot.slane %v11055_v62, %v9157_v48  ;;  %v14456_v34 = vrot.slane %v11055_v62, %v9139_v26  ;;  %v14457_v39 = vrot.slane %v11055_v62, %v9163_v50 }
 0x189   :  { %v3147_v17 = vcombine.low %v14452_v54, %v14451_v22  ;;  %v14458_v54 = vrot.slane %v11055_v62, %v9160_v49  ;;  %v5745_v52 = vmul.f32 0.25, %v11372_v61  ;;  %v11748_v40 = vcombine.low %v3121_v6, %v3128_v37 }
 0x18a   :  { %v3148_v18 = vcombine.low %v14454_v29, %v14453_v30  ;;  %v4870_v22 = vcombine.low %v14456_v34, %v14455_v24  ;;  %v4647_v0 = vrot.slane %v4633_v60, %v9214_v25  ;;  %v11753_v34 = vadd.f32 %v5822_v31, %v5758_v56  ;;  %3215 = vperm.xlu0 %8758, %v11008_v38   ;;  %v14460_v56 = vld [vmem:[#allocation42_spill] sm:$0xff] }
 0x18b   :  { %v4871_v30 = vcombine.low %v14458_v54, %v14457_v39  ;;  %v5808_v57 = vmul.f32 7.5, %v5776_v23  ;;  %v5791_v14 = vsub.f32 %v5727_v47, %v5759_v44  ;;  %v5713_v61 = vmul.f32 0.25, %v11322_v33  ;;  %v11763_v60 = vpop.xlane.xlu1 %5545  ;;  %3200 = vperm.xlu1 %8757, %v11045_v2   ;;  %v11776_v62 = vpop.xlane.xlu0 %5590 }
 0x18c   :  { %14459 = vst [vmem:[#allocation44_spill] sm:$0xff] %v11753_v34  ;;  %v3155_v39 = vrot.slane %v3147_v17, %v9214_v25  ;;  %v3162_v37 = vrot.slane %v3148_v18, %v9214_v25  ;;  %v4878_v23 = vrot.slane %v4870_v22, %v9214_v25  ;;  %v14461_v47 = vrot.slane %v14460_v56, %v9157_v48 }
 0x18d   :  { %v4885_v38 = vrot.slane %v4871_v30, %v9214_v25  ;;  %v14462_v33 = vrot.slane %v14460_v56, %v9139_v26  ;;  %v5777_v17 = vsub.f32 %v5713_v61, %v5745_v52  ;;  %v5728_v18 = vmul.f32 0.25, %v11346_v7 }
 0x18e   :  { %v5760_v54 = vmul.f32 0.25, %v11380_v1  ;;  %v14463_v2 = vrot.slane %v14460_v56, %v9163_v50  ;;  %v14464_v22 = vrot.slane %v14460_v56, %v9160_v49  ;;  %v11786_v29 = vadd.f32 %v5808_v57, %v5744_v43  ;;  %3221 = vperm.xlu0 %8758, %v11106_v15   ;;  %v14481_v1 = vld [vmem:[#allocation32_spill] sm:$0xff] }
 0x18f   :  { %v4598_v31 = vcombine.low %v14462_v33, %v14461_v47  ;;  %v5823_v47 = vmul.f32 7.5, %v5791_v14  ;;  %v11789_v7 = vcombine.low %v4640_v11, %v4647_v0  ;;  %v11797_v33 = vcombine.low %v3155_v39, %v3162_v37  ;;  %3206 = vperm.xlu1 %8757, %v11139_v41  }
 0x190   :  { %v4599_v30 = vcombine.low %v14464_v22, %v14463_v2  ;;  %14465 = vst [vmem:[#allocation36_spill] sm:$0xff] %v11786_v29  ;;  %v11799_v2 = vpop.xlane.xlu1 %5641  ;;  %v11802_v14 = vcombine.low %v4878_v23, %v4885_v38  ;;  %v14466_v43 = vrot.slane %v11177_v10, %v9157_v48  ;;  %v14467_v11 = vrot.slane %v11177_v10, %v9139_v26  ;;  %v11817_v23 = vpop.xlane.xlu0 %5686 }
 0x191   :  { %v4606_v15 = vrot.slane %v4598_v31, %v9214_v25  ;;  %v14468_v57 = vrot.slane %v11177_v10, %v9163_v50  ;;  %v14469_v39 = vrot.slane %v11177_v10, %v9160_v49  ;;  %v5809_v22 = vmul.f32 7.5, %v5777_v17  ;;  %v14478_v17 = vld [vmem:[#allocation29_spill] sm:$0xff] }
 0x192   :  { %v4921_v0 = vcombine.low %v14467_v11, %v14466_v43  ;;  %v5792_v41 = vsub.f32 %v5728_v18, %v5760_v54  ;;  %v4613_v38 = vrot.slane %v4599_v30, %v9214_v25  ;;  %v14470_v31 = vlaneseq  ;;  %3227 = vperm.xlu0 %8758, %v11184_v27   ;;  %v14473_v30 = vld [vmem:[#allocation46_spill] sm:$0xff]  ;;  %v14479_v18 = vld [vmem:[#allocation16_spill] sm:$0xff] }
 0x193   :  { %v4922_v37 = vcombine.low %v14469_v39, %v14468_v57  ;;  %v11827_v11 = vadd.f32 %v5823_v47, %v5759_v44  ;;  %v5746_v10 = vmul.f32 0.25, %v11479_v13  ;;  %v14474_v57 = vrot.slane %v14473_v30, %v9157_v48  ;;  %3212 = vperm.xlu1 %8757, %v14479_v18  }
 0x194   :  { %v11821_v24 = vand.u32 127, %v14470_v31  ;;  %v14475_v39 = vrot.slane %v14473_v30, %v9139_v26  ;;  %v14476_v44 = vrot.slane %v14473_v30, %v9163_v50  ;;  %v14477_v13 = vrot.slane %v14473_v30, %v9160_v49  ;;  %v11849_v43 = vpop.xlane.xlu1 %5548  ;;  %v11857_v46 = vpop.xlane.xlu0 %5593 }
 0x195   :  { %14472 = vst [vmem:[#allocation15_spill] sm:$0xff] %v11827_v11  ;;  %v5714_v47 = vmul.f32 0.25, %v11417_v3  ;;  %v5729_v61 = vmul.f32 0.25, %v14478_v17  ;;  %v4929_v56 = vrot.slane %v4921_v0, %v9214_v25  ;;  %v4936_v6 = vrot.slane %v4922_v37, %v9214_v25  ;;  %v14492_v11 = vld [vmem:[#allocation9_spill] sm:$0xff] }
 0x196   :  { %14471 = vst [vmem:[#allocation41_spill] sm:$0xff] %v11821_v24  ;;  %v4615_v31 = vcombine.low %v14475_v39, %v14474_v57  ;;  %v4616_v27 = vcombine.low %v14477_v13, %v14476_v44  ;;  %v11854_v57 = vadd.f32 %v5809_v22, %v5745_v52  ;;  %v5824_v39 = vmul.f32 7.5, %v5792_v41  ;;  %v14482_v44 = vld [vmem:[#allocation56_spill] sm:$0xff]  ;;  %v14484_v13 = vld [vmem:[#allocation22_spill] sm:$0xff] }
 0x197   :  { %v5761_v29 = vmul.f32 0.25, %v14481_v1  ;;  %v484_v30 = vadd.s32 4294967288, %v11821_v24  ;;  %v5778_v18 = vsub.f32 %v5714_v47, %v5746_v10  ;;  %3233 = vperm.xlu0 %8758, %v14482_v44   ;;  %v11865_v0 = vcombine.low %v4606_v15, %v4613_v38  ;;  %3218 = vperm.xlu1 %8757, %v14484_v13   ;;  %v14486_v47 = vld [vmem:[#allocation14_spill] sm:$0xff] }
 0x198   :  { %14480 = vst [vmem:[#allocation11_spill] sm:$0xff] %v11854_v57  ;;  %v4623_v37 = vrot.slane %v4615_v31, %v9214_v25  ;;  %v4630_v22 = vrot.slane %v4616_v27, %v9214_v25  ;;  %v11873_v41 = vpop.xlane.xlu1 %5644  ;;  %v11876_v3 = vcombine.low %v4929_v56, %v4936_v6  ;;  %v14487_v15 = vrot.slane %v14486_v47, %v9157_v48  ;;  %v11895_v17 = vpop.xlane.xlu0 %5689 }
 0x199   :  { %14483 = vst [vmem:[#allocation38_spill] sm:$0xff] %v11865_v0  ;;  %v14488_v38 = vrot.slane %v14486_v47, %v9139_v26  ;;  %v14489_v52 = vrot.slane %v14486_v47, %v9163_v50  ;;  %v14490_v31 = vrot.slane %v14486_v47, %v9160_v49  ;;  %v491_v1 = vadd.s32 4294967280, %v11821_v24 }
 0x19a   :  { %14485 = vst [vmem:[#allocation45_spill] sm:$0xff] %v11876_v3  ;;  %v11893_v56 = vadd.f32 %v5824_v39, %v5760_v54  ;;  %v5793_v13 = vsub.f32 %v5729_v61, %v5761_v29  ;;  %v11898_v34 = vsub.s32 %v484_v30, %v14492_v11  ;;  %v11908_v61 = vcombine.low %v4623_v37, %v4630_v22  ;;  %v14496_v39 = vld [vmem:[#allocation10_spill] sm:$0xff]  ;;  %v14502_v37 = vld [vmem:[#allocation25_spill] sm:$0xff] }
 0x19b   :  { %v4938_v44 = vcombine.low %v14488_v38, %v14487_v15  ;;  %v4939_v27 = vcombine.low %v14490_v31, %v14489_v52  ;;  %v5810_v52 = vmul.f32 7.5, %v5778_v18  ;;  %v5747_v38 = vmul.f32 0.25, %v11553_v12  ;;  %v14494_v31 = vld [vmem:[#allocation27_spill] sm:$0xff]  ;;  %3224 = vperm.xlu1 %8757, %v14502_v37  }
 0x19c   :  { %14491 = vst [vmem:[#allocation40_spill] sm:$0xff] %v11893_v56  ;;  %14493 = vst [vmem:[#allocation42_spill] sm:$0xff] %v11898_v34  ;;  %3239 = vperm.xlu0 %8758, %v14494_v31   ;;  %v14497_v30 = vrot.slane %v14496_v39, %v9157_v48  ;;  %v14498_v6 = vrot.slane %v14496_v39, %v9139_v26  ;;  %v14499_v47 = vrot.slane %v14496_v39, %v9163_v50  ;;  %v11923_v34 = vpop.xlane.xlu1 %5551 }
 0x19d   :  { %14495 = vst [vmem:[#allocation46_spill] sm:$0xff] %v11908_v61  ;;  %v14500_v12 = vrot.slane %v14496_v39, %v9160_v49  ;;  %v5715_v31 = vmul.f32 0.25, %v11522_v45  ;;  %14501 = vst [vmem:[#allocation29_spill] sm:$0xff] %v11923_v34  ;;  %v4946_v22 = vrot.slane %v4938_v44, %v9214_v25  ;;  %v4953_v54 = vrot.slane %v4939_v27, %v9214_v25  ;;  %v14505_v45 = vld [vmem:[#allocation19_spill] sm:$0xff]  ;;  %v14510_v61 = vld [vmem:[#allocation60_spill] sm:$0xff] }
 0x19e   :  { %v4649_v15 = vcombine.low %v14498_v6, %v14497_v30  ;;  %v11929_v57 = vsub.s32 %v491_v1, %v14492_v11  ;;  %v11935_v30 = vpop.xlane.xlu0 %5596  ;;  %v14507_v44 = vrot.slane %v14505_v45, %v9139_v26  ;;  %v11943_v27 = vadd.f32 %v5810_v52, %v5746_v10  ;;  %v14512_v10 = vld [vmem:[#allocation61_spill] sm:$0xff] }
 0x19f   :  { %v4650_v18 = vcombine.low %v14500_v12, %v14499_v47  ;;  %v5825_v47 = vmul.f32 7.5, %v5793_v13  ;;  %14504 = vst [vmem:[#allocation32_spill] sm:$0xff] %v11935_v30  ;;  %v14506_v12 = vrot.slane %v14505_v45, %v9157_v48  ;;  %v5779_v1 = vsub.f32 %v5715_v31, %v5747_v38  ;;  %3230 = vperm.xlu1 %8757, %v14512_v10   ;;  %v14515_v31 = vld [vmem:[#allocation50_spill] sm:$0xff] }
 0x1a0   :  { %14503 = vst [vmem:[#allocation16_spill] sm:$0xff] %v11929_v57  ;;  %14508 = vst [vmem:[#allocation56_spill] sm:$0xff] %v11943_v27  ;;  %v14509_v57 = vld [vmem:[#allocation33_spill] sm:$0xff]  ;;  %v5762_v6 = vmul.f32 0.25, %v11581_v21  ;;  %3245 = vperm.xlu0 %8758, %v14510_v61   ;;  %v4657_v30 = vrot.slane %v4649_v15, %v9214_v25  ;;  %v14514_v21 = vrot.slane %v14505_v45, %v9160_v49  ;;  %v498_v61 = vadd.s32 4294967272, %v11821_v24 }
 0x1a1   :  { %v4955_v37 = vcombine.low %v14507_v44, %v14506_v12  ;;  %v5730_v59 = vmul.f32 0.25, %v14509_v57  ;;  %v4664_v34 = vrot.slane %v4650_v18, %v9214_v25  ;;  %v11954_v12 = vpop.xlane.xlu1 %5647  ;;  %v14513_v57 = vrot.slane %v14505_v45, %v9163_v50 }
 0x1a2   :  { %14511 = vst [vmem:[#allocation22_spill] sm:$0xff] %v11954_v12  ;;  %v14516_v44 = vrot.slane %v14515_v31, %v9157_v48  ;;  %v14517_v15 = vrot.slane %v14515_v31, %v9139_v26  ;;  %v14518_v13 = vrot.slane %v14515_v31, %v9163_v50  ;;  %v14519_v10 = vrot.slane %v14515_v31, %v9160_v49  ;;  %v14520_v31 = vld [vmem:[#allocation30_spill] sm:$0xff] }
 0x1a3   :  { %v4956_v52 = vcombine.low %v14514_v21, %v14513_v57  ;;  %v11976_v56 = vadd.f32 %v5825_v47, %v5761_v29  ;;  %v5748_v45 = vmul.f32 0.25, %v11643_v4  ;;  %v11979_v57 = vpop.xlane.xlu0 %5692  ;;  %v11981_v21 = vcombine.low %v4946_v22, %v4953_v54  ;;  %3236 = vperm.xlu1 %8757, %v11544_v42  }
 0x1a4   :  { %v4853_v18 = vcombine.low %v14517_v15, %v14516_v44  ;;  %v4854_v39 = vcombine.low %v14519_v10, %v14518_v13  ;;  %v4963_v3 = vrot.slane %v4955_v37, %v9214_v25  ;;  %v5811_v12 = vmul.f32 7.5, %v5779_v1  ;;  %3251 = vperm.xlu0 %8758, %v14520_v31  }
 0x1a5   :  { %v5794_v0 = vsub.f32 %v5730_v59, %v5762_v6  ;;  %v5716_v54 = vmul.f32 0.25, %v11606_v16  ;;  %v11994_v22 = vcombine.low %v4657_v30, %v4664_v34  ;;  %v11996_v47 = vpop.xlane.xlu1 %5554  ;;  %v4970_v37 = vrot.slane %v4956_v52, %v9214_v25  ;;  %v14521_v34 = vld [vmem:[#allocation18_spill] sm:$0xff] }
 0x1a6   :  { %v12001_v59 = vsub.s32 %v498_v61, %v14492_v11  ;;  %v4861_v1 = vrot.slane %v4853_v18, %v9214_v25  ;;  %v4868_v13 = vrot.slane %v4854_v39, %v9214_v25  ;;  %v14522_v30 = vrot.slane %v14521_v34, %v9157_v48 }
 0x1a7   :  { %v5780_v31 = vsub.f32 %v5716_v54, %v5748_v45  ;;  %v12007_v16 = vpop.xlane.xlu0 %5599  ;;  %v14523_v42 = vrot.slane %v14521_v34, %v9139_v26  ;;  %v14524_v61 = vrot.slane %v14521_v34, %v9163_v50  ;;  %v14525_v18 = vrot.slane %v14521_v34, %v9160_v49  ;;  %v14527_v34 = vld [vmem:[#allocation13_spill] sm:$0xff]  ;;  %3242 = vperm.xlu1 %8757, %v11550_v5  }
 0x1a8   :  { %v12021_v29 = vadd.f32 %v5811_v12, %v5747_v38  ;;  %v5826_v4 = vmul.f32 7.5, %v5794_v0  ;;  %v5731_v54 = vmul.f32 0.25, %v11613_v28  ;;  %v5763_v44 = vmul.f32 0.25, %v11656_v55  ;;  %3257 = vperm.xlu0 %8758, %v11546_v58  }
 0x1a9   :  { %v4972_v52 = vcombine.low %v14523_v42, %v14522_v30  ;;  %v4973_v39 = vcombine.low %v14525_v18, %v14524_v61  ;;  %v14528_v38 = vrot.slane %v14527_v34, %v9157_v48  ;;  %v14529_v0 = vrot.slane %v14527_v34, %v9139_v26  ;;  %v12038_v12 = vpop.xlane.xlu1 %5650 }
 0x1aa   :  { %14526 = vst [vmem:[#allocation14_spill] sm:$0xff] %v12021_v29  ;;  %v12041_v58 = vcombine.low %v4963_v3, %v4970_v37  ;;  %v12043_v55 = vcombine.low %v4861_v1, %v4868_v13  ;;  %v12047_v61 = vsub.s32 %v11821_v24, %v14492_v11  ;;  %v14531_v18 = vrot.slane %v14527_v34, %v9163_v50 }
 0x1ab   :  { %v4887_v28 = vcombine.low %v14529_v0, %v14528_v38  ;;  %v14532_v30 = vrot.slane %v14527_v34, %v9160_v49  ;;  %v5812_v38 = vmul.f32 7.5, %v5780_v31  ;;  %v5749_v0 = vmul.f32 0.25, %v11728_v19  ;;  %v12056_v10 = vpop.xlane.xlu0 %5695  ;;  %v14534_v34 = vld [vmem:[#allocation35_spill] sm:$0xff]  ;;  %3248 = vperm.xlu1 %8757, %v11604_v32  }
 0x1ac   :  { %14530 = vst [vmem:[#allocation27_spill] sm:$0xff] %v12047_v61  ;;  %v4980_v5 = vrot.slane %v4972_v52, %v9214_v25  ;;  %v4987_v3 = vrot.slane %v4973_v39, %v9214_v25  ;;  %v12064_v13 = vadd.f32 %v5826_v4, %v5762_v6  ;;  %v5795_v15 = vsub.f32 %v5731_v54, %v5763_v44  ;;  %v14535_v4 = vld [vmem:[#allocation21_spill] sm:$0xff] }
 0x1ad   :  { %v4888_v42 = vcombine.low %v14532_v30, %v14531_v18  ;;  %3263 = vperm.xlu0 %8758, %v14534_v34   ;;  %v5717_v31 = vmul.f32 0.25, %v11687_v36  ;;  %v5732_v52 = vmul.f32 0.25, %v11700_v53  ;;  %v4895_v39 = vrot.slane %v4887_v28, %v9214_v25  ;;  %v12073_v18 = vpop.xlane.xlu1 %5557 }
 0x1ae   :  { %14533 = vst [vmem:[#allocation10_spill] sm:$0xff] %v12064_v13  ;;  %v5764_v30 = vmul.f32 0.25, %v11746_v63  ;;  %v14536_v54 = vrot.slane %v14535_v4, %v9157_v48  ;;  %v14537_v34 = vrot.slane %v14535_v4, %v9139_v26  ;;  %v14538_v53 = vrot.slane %v14535_v4, %v9163_v50 }
 0x1af   :  { %v4902_v6 = vrot.slane %v4888_v42, %v9214_v25  ;;  %v14539_v36 = vrot.slane %v14535_v4, %v9160_v49  ;;  %v12091_v32 = vadd.f32 %v5812_v38, %v5748_v45  ;;  %v5781_v42 = vsub.f32 %v5717_v31, %v5749_v0  ;;  %v12093_v37 = vpop.xlane.xlu0 %5602  ;;  %v14541_v38 = vld [vmem:[#allocation12_spill] sm:$0xff]  ;;  %3254 = vperm.xlu1 %8757, %v11646_v20  }
 0x1b0   :  { %v4989_v19 = vcombine.low %v14537_v34, %v14536_v54  ;;  %v12095_v1 = vcombine.low %v4980_v5, %v4987_v3  ;;  %v14542_v31 = vrot.slane %v14541_v38, %v9157_v48  ;;  %v14543_v5 = vrot.slane %v14541_v38, %v9139_v26 }
 0x1b1   :  { %v4990_v63 = vcombine.low %v14539_v36, %v14538_v53  ;;  %14540 = vst [vmem:[#allocation25_spill] sm:$0xff] %v12091_v32  ;;  %v5827_v53 = vmul.f32 7.5, %v5795_v15  ;;  %3269 = vperm.xlu0 %8758, %v11615_v9   ;;  %v14544_v36 = vrot.slane %v14541_v38, %v9163_v50  ;;  %v14545_v28 = vrot.slane %v14541_v38, %v9160_v49  ;;  %v14546_v15 = vld [vmem:[#allocation20_spill] sm:$0xff]  ;;  %v12124_v29 = vpop.xlane.xlu1 %5653 }
 0x1b2   :  { %v4904_v3 = vcombine.low %v14543_v5, %v14542_v31  ;;  %v14547_v9 = vrot.slane %v14546_v15, %v9157_v48  ;;  %v14548_v45 = vrot.slane %v14546_v15, %v9139_v26  ;;  %v5796_v34 = vsub.f32 %v5732_v52, %v5764_v30 }
 0x1b3   :  { %v4905_v4 = vcombine.low %v14545_v28, %v14544_v36  ;;  %v12127_v31 = vcombine.low %v4895_v39, %v4902_v6  ;;  %v4997_v5 = vrot.slane %v4989_v19, %v9214_v25  ;;  %v5004_v27 = vrot.slane %v4990_v63, %v9214_v25  ;;  %v12134_v13 = vpop.xlane.xlu0 %5698  ;;  %3260 = vperm.xlu1 %8757, %v11668_v8   ;;  %v14559_v8 = vld [vmem:[#allocation23_spill] sm:$0xff] }
 0x1b4   :  { %v5006_v54 = vcombine.low %v14548_v45, %v14547_v9  ;;  %v5813_v38 = vmul.f32 7.5, %v5781_v42  ;;  %v5750_v36 = vmul.f32 0.25, %v11799_v2  ;;  %v14549_v52 = vrot.slane %v14546_v15, %v9163_v50  ;;  %v14552_v9 = vld [vmem:[#allocation47_spill] sm:$0xff] }
 0x1b5   :  { %v14550_v20 = vrot.slane %v14546_v15, %v9160_v49  ;;  %v12146_v63 = vadd.f32 %v5827_v53, %v5763_v44  ;;  %v5718_v42 = vmul.f32 0.25, %v11763_v60  ;;  %3275 = vperm.xlu0 %8758, %v11648_v51   ;;  %v5733_v2 = vmul.f32 0.25, %v11776_v62  ;;  %v12166_v53 = vpop.xlane.xlu1 %5560 }
 0x1b6   :  { %v5765_v45 = vmul.f32 0.25, %v11817_v23  ;;  %v14553_v15 = vrot.slane %v14552_v9, %v9157_v48  ;;  %v14555_v6 = vrot.slane %v14552_v9, %v9163_v50  ;;  %v14556_v44 = vrot.slane %v14552_v9, %v9160_v49 }
 0x1b7   :  { %v5007_v39 = vcombine.low %v14550_v20, %v14549_v52  ;;  %14551 = vst [vmem:[#allocation19_spill] sm:$0xff] %v12146_v63  ;;  %v14554_v52 = vrot.slane %v14552_v9, %v9139_v26  ;;  %v5828_v62 = vmul.f32 7.5, %v5796_v34  ;;  %v4912_v23 = vrot.slane %v4904_v3, %v9214_v25  ;;  %v12173_v19 = vpop.xlane.xlu0 %5605  ;;  %3266 = vperm.xlu1 %8757, %v11748_v40   ;;  %v14564_v34 = vld [vmem:[#allocation49_spill] sm:$0xff] }
 0x1b8   :  { %v4667_v60 = vcombine.low %v14556_v44, %v14555_v6  ;;  %v4919_v28 = vrot.slane %v4905_v4, %v9214_v25  ;;  %v5014_v9 = vrot.slane %v5006_v54, %v9214_v25  ;;  %v5797_v3 = vsub.f32 %v5733_v2, %v5765_v45 }
 0x1b9   :  { %v4666_v20 = vcombine.low %v14554_v52, %v14553_v15  ;;  %v12171_v15 = vadd.f32 %v5813_v38, %v5749_v0  ;;  %v5782_v52 = vsub.f32 %v5718_v42, %v5750_v36  ;;  %v5021_v6 = vrot.slane %v5007_v39, %v9214_v25  ;;  %5126 = vperm.xlu0 %8758, %v11702_v35   ;;  %v12193_v51 = vpop.xlane.xlu1 %5656 }
 0x1ba   :  { %v12184_v0 = vcombine.low %v4997_v5, %v5004_v27  ;;  %v4681_v38 = vrot.slane %v4667_v60, %v9214_v25  ;;  %v12190_v39 = vadd.f32 %v5828_v62, %v5764_v30  ;;  %v5751_v42 = vmul.f32 0.25, %v11873_v41 }
 0x1bb   :  { %14557 = vst [vmem:[#allocation33_spill] sm:$0xff] %v12171_v15  ;;  %v4674_v54 = vrot.slane %v4666_v20, %v9214_v25  ;;  %v14560_v35 = vrot.slane %v14559_v8, %v9157_v48  ;;  %v14561_v27 = vrot.slane %v14559_v8, %v9139_v26  ;;  %v14562_v2 = vrot.slane %v14559_v8, %v9163_v50  ;;  %v12210_v62 = vpop.xlane.xlu0 %5701 }
 0x1bc   :  { %14558 = vst [vmem:[#allocation60_spill] sm:$0xff] %v12190_v39  ;;  %v14563_v30 = vrot.slane %v14559_v8, %v9160_v49  ;;  %v5814_v60 = vmul.f32 7.5, %v5782_v52  ;;  %v12212_v40 = vcombine.low %v4912_v23, %v4919_v28  ;;  %v12214_v4 = vcombine.low %v5014_v9, %v5021_v6  ;;  %3272 = vperm.xlu1 %8757, %v11797_v33  }
 0x1bd   :  { %v5023_v5 = vcombine.low %v14561_v27, %v14560_v35  ;;  %v5719_v27 = vmul.f32 0.25, %v11849_v43  ;;  %5135 = vperm.xlu0 %8758, %v11789_v7   ;;  %v14565_v8 = vrot.slane %v14564_v34, %v9157_v48  ;;  %v14567_v28 = vrot.slane %v14564_v34, %v9163_v50 }
 0x1be   :  { %v5024_v20 = vcombine.low %v14563_v30, %v14562_v2  ;;  %v14566_v2 = vrot.slane %v14564_v34, %v9139_v26  ;;  %v14568_v23 = vrot.slane %v14564_v34, %v9160_v49  ;;  %v5829_v43 = vmul.f32 7.5, %v5797_v3 }
 0x1bf   :  { %v12236_v30 = vcombine.low %v4674_v54, %v4681_v38  ;;  %v5031_v34 = vrot.slane %v5023_v5, %v9214_v25  ;;  %v5734_v6 = vmul.f32 0.25, %v11857_v46  ;;  %v5766_v3 = vmul.f32 0.25, %v11895_v17  ;;  %v12249_v54 = vpop.xlane.xlu0 %5608  ;;  %v14576_v46 = vld [vmem:[#allocation38_spill] sm:$0xff] }
 0x1c0   :  { %v4683_v52 = vcombine.low %v14566_v2, %v14565_v8  ;;  %v4684_v9 = vcombine.low %v14568_v23, %v14567_v28  ;;  %v5783_v8 = vsub.f32 %v5719_v27, %v5751_v42  ;;  %v12240_v2 = vpop.xlane.xlu1 %5563  ;;  %v5038_v28 = vrot.slane %v5024_v20, %v9214_v25  ;;  %v14571_v20 = vld [vmem:[#allocation57_spill] sm:$0xff]  ;;  %5129 = vperm.xlu1 %8757, %v14576_v46  }
 0x1c1   :  { %v12245_v23 = vadd.f32 %v5814_v60, %v5750_v36  ;;  %v1444_v38 = vadd.s32 4294967256, %v11821_v24  ;;  %5177 = vperm.xlu0 %8758, %v11802_v14   ;;  %v12261_v17 = vadd.f32 %v5829_v43, %v5765_v45  ;;  %v14572_v60 = vrot.slane %v14571_v20, %v9157_v48  ;;  %v14577_v43 = vld [vmem:[#allocation17_spill] sm:$0xff] }
 0x1c2   :  { %v4691_v5 = vrot.slane %v4683_v52, %v9214_v25  ;;  %v4698_v36 = vrot.slane %v4684_v9, %v9214_v25  ;;  %v14573_v7 = vrot.slane %v14571_v20, %v9139_v26  ;;  %v14574_v33 = vrot.slane %v14571_v20, %v9163_v50 }
 0x1c3   :  { %14569 = vst [vmem:[#allocation61_spill] sm:$0xff] %v12245_v23  ;;  %14570 = vst [vmem:[#allocation50_spill] sm:$0xff] %v12261_v17  ;;  %v14575_v14 = vrot.slane %v14571_v20, %v9160_v49  ;;  %v5815_v9 = vmul.f32 7.5, %v5783_v8  ;;  %v12278_v45 = vcombine.low %v5031_v34, %v5038_v28  ;;  %v14578_v27 = vrot.slane %v14577_v43, %v9157_v48  ;;  %v14582_v34 = vld [vmem:[#allocation22_spill] sm:$0xff]  ;;  %v14588_v23 = vld [vmem:[#allocation32_spill] sm:$0xff] }
 0x1c4   :  { %v5040_v35 = vcombine.low %v14573_v7, %v14572_v60  ;;  %v12275_v41 = vpop.xlane.xlu1 %5659  ;;  %v14579_v7 = vrot.slane %v14577_v43, %v9139_v26  ;;  %v14580_v44 = vrot.slane %v14577_v43, %v9163_v50  ;;  %v5798_v46 = vsub.f32 %v5734_v6, %v5766_v3 }
 0x1c5   :  { %v5041_v52 = vcombine.low %v14575_v14, %v14574_v33  ;;  %v14581_v33 = vrot.slane %v14577_v43, %v9160_v49  ;;  %v5752_v28 = vmul.f32 0.25, %v14582_v34  ;;  %v12295_v14 = vpop.xlane.xlu0 %5704  ;;  %v12298_v15 = vsub.s32 %v1444_v38, %v14492_v11  ;;  %v14584_v43 = vld [vmem:[#allocation45_spill] sm:$0xff] }
 0x1c6   :  { %v4700_v60 = vcombine.low %v14579_v7, %v14578_v27  ;;  %5186 = vperm.xlu0 %8758, %v14584_v43   ;;  %v14585_v34 = vld [vmem:[#allocation29_spill] sm:$0xff]  ;;  %v5048_v38 = vrot.slane %v5040_v35, %v9214_v25  ;;  %v12314_v27 = vadd.f32 %v5815_v9, %v5751_v42  ;;  %v14587_v7 = vld [vmem:[#allocation46_spill] sm:$0xff]  ;;  %v5830_v43 = vmul.f32 7.5, %v5798_v46  ;;  %v14594_v42 = vld [vmem:[#allocation51_spill] sm:$0xff] }
 0x1c7   :  { %v4701_v8 = vcombine.low %v14581_v33, %v14580_v44  ;;  %14583 = vst [vmem:[#allocation30_spill] sm:$0xff] %v12298_v15  ;;  %v12307_v33 = vcombine.low %v4691_v5, %v4698_v36  ;;  %v5720_v20 = vmul.f32 0.25, %v14585_v34  ;;  %v5055_v32 = vrot.slane %v5041_v52, %v9214_v25  ;;  %5132 = vperm.xlu1 %8757, %v14587_v7  }
 0x1c8   :  { %14586 = vst [vmem:[#allocation18_spill] sm:$0xff] %v12314_v27  ;;  %v12316_v39 = vpop.permute.xlu1 %458  ;;  %v4708_v44 = vrot.slane %v4700_v60, %v9214_v25  ;;  %v1458_v36 = vadd.s32 4294967240, %v11821_v24  ;;  %v5735_v34 = vmul.f32 0.25, %v14588_v23  ;;  %v5767_v35 = vmul.f32 0.25, %v11979_v57  ;;  %v14589_v60 = vld [vmem:[#allocation58_spill] sm:$0xff] }
 0x1c9   :  { %v4715_v5 = vrot.slane %v4701_v8, %v9214_v25  ;;  %v5784_v6 = vsub.f32 %v5720_v20, %v5752_v28  ;;  %v12324_v63 = vpop.xlane.xlu0 %5611  ;;  %v14590_v8 = vrot.slane %v14589_v60, %v9157_v48  ;;  %v14591_v23 = vrot.slane %v14589_v60, %v9139_v26 }
 0x1ca   :  { %5189 = vperm.xlu0 %8758, %v11981_v21   ;;  %v5753_v20 = vmul.f32 0.25, %v12038_v12  ;;  %v12340_v46 = vcombine.low %v5048_v38, %v5055_v32  ;;  %v14592_v7 = vrot.slane %v14589_v60, %v9163_v50  ;;  %v14593_v52 = vrot.slane %v14589_v60, %v9160_v49 }
 0x1cb   :  { %v5057_v57 = vcombine.low %v14591_v23, %v14590_v8  ;;  %v14595_v21 = vrot.slane %v14594_v42, %v9157_v48  ;;  %v14596_v17 = vrot.slane %v14594_v42, %v9139_v26  ;;  %5138 = vperm.xlu1 %8757, %v11994_v22   ;;  %v12359_v32 = vcombine.low %v4708_v44, %v4715_v5  ;;  %v14606_v22 = vld [vmem:[#allocation26_spill] sm:$0xff] }
 0x1cc   :  { %v5058_v9 = vcombine.low %v14593_v52, %v14592_v7  ;;  %v12356_v12 = vpop.permute.xlu1 %461  ;;  %v12362_v38 = vsub.s32 %v1458_v36, %v14492_v11  ;;  %v14597_v52 = vrot.slane %v14594_v42, %v9163_v50  ;;  %v14598_v60 = vrot.slane %v14594_v42, %v9160_v49 }
 0x1cd   :  { %v4717_v15 = vcombine.low %v14596_v17, %v14595_v21  ;;  %v12370_v17 = vadd.f32 %v5830_v43, %v5766_v3  ;;  %v5816_v7 = vmul.f32 7.5, %v5784_v6  ;;  %v5721_v21 = vmul.f32 0.25, %v11996_v47  ;;  %v12381_v3 = vpop.xlane.xlu0 %5707  ;;  %v14600_v43 = vld [vmem:[#allocation24_spill] sm:$0xff] }
 0x1ce   :  { %v4718_v23 = vcombine.low %v14598_v60, %v14597_v52  ;;  %v5799_v8 = vsub.f32 %v5735_v34, %v5767_v35  ;;  %5192 = vperm.xlu0 %8758, %v12041_v58   ;;  %v5065_v36 = vrot.slane %v5057_v57, %v9214_v25  ;;  %v5072_v6 = vrot.slane %v5058_v9, %v9214_v25 }
 0x1cf   :  { %14599 = vst [vmem:[#allocation13_spill] sm:$0xff] %v12370_v17  ;;  %v5785_v42 = vsub.f32 %v5721_v21, %v5753_v20  ;;  %v4725_v47 = vrot.slane %v4717_v15, %v9214_v25  ;;  %v14601_v34 = vrot.slane %v14600_v43, %v9157_v48  ;;  %v14602_v52 = vrot.slane %v14600_v43, %v9139_v26 }
 0x1d0   :  { %v5736_v44 = vmul.f32 0.25, %v12007_v16  ;;  %v5768_v58 = vmul.f32 0.25, %v12056_v10  ;;  %v12393_v5 = vpop.permute.xlu1 %464  ;;  %5174 = vperm.xlu1 %8757, %v12043_v55   ;;  %v4732_v57 = vrot.slane %v4718_v23, %v9214_v25  ;;  %v14603_v15 = vrot.slane %v14600_v43, %v9163_v50 }
 0x1d1   :  { %v5074_v60 = vcombine.low %v14602_v52, %v14601_v34  ;;  %v14604_v9 = vrot.slane %v14600_v43, %v9160_v49  ;;  %v12407_v10 = vadd.f32 %v5816_v7, %v5752_v28  ;;  %v5831_v52 = vmul.f32 7.5, %v5799_v8 }
 0x1d2   :  { %5195 = vperm.xlu0 %8758, %v12095_v1   ;;  %v14607_v43 = vrot.slane %v14606_v22, %v9157_v48  ;;  %v14609_v28 = vrot.slane %v14606_v22, %v9163_v50  ;;  %v14610_v8 = vrot.slane %v14606_v22, %v9160_v49  ;;  %v5817_v55 = vmul.f32 7.5, %v5785_v42 }
 0x1d3   :  { %v5075_v21 = vcombine.low %v14604_v9, %v14603_v15  ;;  %14605 = vst [vmem:[#allocation35_spill] sm:$0xff] %v12407_v10  ;;  %v14608_v15 = vrot.slane %v14606_v22, %v9139_v26  ;;  %v12426_v34 = vcombine.low %v5065_v36, %v5072_v6  ;;  %v5082_v23 = vrot.slane %v5074_v60, %v9214_v25  ;;  %v14612_v60 = vld [vmem:[#allocation59_spill] sm:$0xff] }
 0x1d4   :  { %v4735_v7 = vcombine.low %v14610_v8, %v14609_v28  ;;  %v1437_v1 = vadd.s32 4294967264, %v11821_v24  ;;  %v5800_v16 = vsub.f32 %v5736_v44, %v5768_v58  ;;  %v5754_v27 = vmul.f32 0.25, %v12124_v29  ;;  %v12431_v17 = vpop.permute.xlu1 %467  ;;  %5180 = vperm.xlu1 %8757, %v12127_v31   ;;  %v12445_v29 = vpop.permute.xlu0 %455 }
 0x1d5   :  { %v4734_v9 = vcombine.low %v14608_v15, %v14607_v43  ;;  %v12434_v43 = vcombine.low %v4725_v47, %v4732_v57  ;;  %v5089_v15 = vrot.slane %v5075_v21, %v9214_v25  ;;  %v12443_v44 = vadd.f32 %v5831_v52, %v5767_v35 }
 0x1d6   :  { %v5722_v6 = vmul.f32 0.25, %v12073_v18  ;;  %5198 = vperm.xlu0 %8758, %v12184_v0   ;;  %v4749_v47 = vrot.slane %v4735_v7, %v9214_v25  ;;  %v14613_v57 = vrot.slane %v14612_v60, %v9157_v48  ;;  %v14614_v21 = vrot.slane %v14612_v60, %v9139_v26 }
 0x1d7   :  { %14611 = vst [vmem:[#allocation21_spill] sm:$0xff] %v12443_v44  ;;  %v4742_v31 = vrot.slane %v4734_v9, %v9214_v25  ;;  %v12457_v8 = vadd.f32 %v5817_v55, %v5753_v20  ;;  %v5737_v35 = vmul.f32 0.25, %v12093_v37  ;;  %v5769_v52 = vmul.f32 0.25, %v12134_v13 }
 0x1d8   :  { %v5091_v28 = vcombine.low %v14614_v21, %v14613_v57  ;;  %v14616_v18 = vrot.slane %v14612_v60, %v9163_v50  ;;  %v14617_v0 = vrot.slane %v14612_v60, %v9160_v49  ;;  %v5832_v42 = vmul.f32 7.5, %v5800_v16  ;;  %v12469_v36 = vpop.permute.xlu1 %470  ;;  %5183 = vperm.xlu1 %8757, %v12212_v40   ;;  %v12480_v60 = vpop.permute.xlu0 %1371 }
 0x1d9   :  { %14615 = vst [vmem:[#allocation12_spill] sm:$0xff] %v12457_v8  ;;  %v5786_v22 = vsub.f32 %v5722_v6, %v5754_v27  ;;  %v12472_v20 = vcombine.low %v5082_v23, %v5089_v15  ;;  %v12483_v16 = vsub.s32 %v1437_v1, %v14492_v11  ;;  %v12488_v40 = vcombine.low %v4742_v31, %v4749_v47  ;;  %v14652_v8 = vld [vmem:[#allocation43_spill] sm:$0xff] }
 0x1da   :  { %v5092_v9 = vcombine.low %v14617_v0, %v14616_v18  ;;  %5201 = vperm.xlu0 %8758, %v12214_v4   ;;  %v5099_v23 = vrot.slane %v5091_v28, %v9214_v25  ;;  %v1451_v15 = vadd.s32 4294967248, %v11821_v24  ;;  %v5801_v21 = vsub.f32 %v5737_v35, %v5769_v52  ;;  %v14619_v4 = vld [vmem:[#allocation53_spill] sm:$0xff] }
 0x1db   :  { %v5755_v18 = vmul.f32 0.25, %v12193_v51  ;;  %v12496_v0 = vadd.f32 %v5832_v42, %v5768_v58  ;;  %v5818_v7 = vmul.f32 7.5, %v5786_v22  ;;  %v14620_v31 = vrot.slane %v14619_v4, %v9157_v48 }
 0x1dc   :  { %v5106_v1 = vrot.slane %v5092_v9, %v9214_v25  ;;  %v12498_v55 = vpop.permute.xlu1 %473  ;;  %5141 = vperm.xlu1 %8757, %v12236_v30   ;;  %v14621_v47 = vrot.slane %v14619_v4, %v9139_v26  ;;  %v14622_v35 = vrot.slane %v14619_v4, %v9163_v50  ;;  %v14623_v51 = vrot.slane %v14619_v4, %v9160_v49  ;;  %v12516_v30 = vpop.permute.xlu0 %1380  ;;  %v14624_v9 = vld [vmem:[#allocation28_spill] sm:$0xff] }
 0x1dd   :  { %14618 = vst [vmem:[#allocation20_spill] sm:$0xff] %v12496_v0  ;;  %v5723_v42 = vmul.f32 0.25, %v12166_v53  ;;  %v14625_v57 = vrot.slane %v14624_v9, %v9157_v48  ;;  %v14627_v6 = vrot.slane %v14624_v9, %v9163_v50  ;;  %v14628_v4 = vrot.slane %v14624_v9, %v9160_v49 }
 0x1de   :  { %v4751_v28 = vcombine.low %v14621_v47, %v14620_v31  ;;  %v4752_v58 = vcombine.low %v14623_v51, %v14622_v35  ;;  %v14626_v31 = vrot.slane %v14624_v9, %v9139_v26  ;;  %v5738_v22 = vmul.f32 0.25, %v12173_v19  ;;  %5204 = vperm.xlu0 %8758, %v12278_v45  }
 0x1df   :  { %v5109_v35 = vcombine.low %v14628_v4, %v14627_v6  ;;  %v5770_v37 = vmul.f32 0.25, %v12210_v62  ;;  %v12537_v13 = vcombine.low %v5099_v23, %v5106_v1  ;;  %v12540_v10 = vsub.s32 %v1451_v15, %v14492_v11  ;;  %v14630_v1 = vld [vmem:[#allocation52_spill] sm:$0xff] }
 0x1e0   :  { %v5108_v47 = vcombine.low %v14626_v31, %v14625_v57  ;;  %v5833_v57 = vmul.f32 7.5, %v5801_v21  ;;  %v5787_v31 = vsub.f32 %v5723_v42, %v5755_v18  ;;  %v12544_v9 = vadd.f32 %v5818_v7, %v5754_v27  ;;  %v12546_v4 = vpop.permute.xlu1 %476  ;;  %5144 = vperm.xlu1 %8757, %v12307_v33   ;;  %v12555_v15 = vpop.permute.xlu0 %1386 }
 0x1e1   :  { %v4759_v19 = vrot.slane %v4751_v28, %v9214_v25  ;;  %v4766_v62 = vrot.slane %v4752_v58, %v9214_v25  ;;  %v5123_v27 = vrot.slane %v5109_v35, %v9214_v25  ;;  %v5802_v33 = vsub.f32 %v5738_v22, %v5770_v37  ;;  %v14636_v22 = vld [vmem:[#allocation34_spill] sm:$0xff] }
 0x1e2   :  { %14629 = vst [vmem:[#allocation47_spill] sm:$0xff] %v12544_v9  ;;  %v5116_v21 = vrot.slane %v5108_v47, %v9214_v25  ;;  %5207 = vperm.xlu0 %8758, %v12340_v46   ;;  %v14631_v28 = vrot.slane %v14630_v1, %v9157_v48  ;;  %v14632_v58 = vrot.slane %v14630_v1, %v9139_v26  ;;  %v5819_v23 = vmul.f32 7.5, %v5787_v31 }
 0x1e3   :  { %v14633_v51 = vrot.slane %v14630_v1, %v9163_v50  ;;  %v14634_v47 = vrot.slane %v14630_v1, %v9160_v49  ;;  %v12574_v53 = vadd.f32 %v5833_v57, %v5769_v52  ;;  %v14637_v46 = vrot.slane %v14636_v22, %v9157_v48  ;;  %v14662_v52 = vld [vmem:[#allocation55_spill] sm:$0xff] }
 0x1e4   :  { %v4768_v42 = vcombine.low %v14632_v58, %v14631_v28  ;;  %v14638_v7 = vrot.slane %v14636_v22, %v9139_v26  ;;  %v14639_v28 = vrot.slane %v14636_v22, %v9163_v50  ;;  %v14640_v58 = vrot.slane %v14636_v22, %v9160_v49  ;;  %v12594_v31 = vpop.permute.xlu1 %1374  ;;  %5147 = vperm.xlu1 %8757, %v12359_v32  }
 0x1e5   :  { %v4769_v35 = vcombine.low %v14634_v47, %v14633_v51  ;;  %14635 = vst [vmem:[#allocation23_spill] sm:$0xff] %v12574_v53  ;;  %v12599_v47 = vpop.permute.xlu0 %1392  ;;  %v12601_v22 = vcombine.low %v5116_v21, %v5123_v27  ;;  %v5756_v1 = vmul.f32 0.25, %v12275_v41  ;;  %v14673_v53 = vld [vmem:[#allocation48_spill] sm:$0xff] }
 0x1e6   :  { %v6814_v6 = vcombine.low %v14638_v7, %v14637_v46  ;;  %v6815_v45 = vcombine.low %v14640_v58, %v14639_v28  ;;  %v4767_v7 = vcombine.low %v4759_v19, %v4766_v62  ;;  %v14641_v46 = vld [vmem:[#allocation54_spill] sm:$0xff]  ;;  %v5834_v62 = vmul.f32 7.5, %v5802_v33  ;;  %5210 = vperm.xlu0 %8758, %v12426_v34  }
 0x1e7   :  { %v14642_v28 = vrot.slane %v14641_v46, %v9157_v48  ;;  %v14643_v58 = vrot.slane %v14641_v46, %v9139_v26  ;;  %v14644_v57 = vrot.slane %v14641_v46, %v9163_v50  ;;  %v14645_v32 = vrot.slane %v14641_v46, %v9160_v49 }
 0x1e8   :  { %v4776_v21 = vrot.slane %v4768_v42, %v9214_v25  ;;  %v4783_v27 = vrot.slane %v4769_v35, %v9214_v25  ;;  %v6829_v9 = vrot.slane %v6815_v45, %v9214_v25  ;;  %v5724_v42 = vmul.f32 0.25, %v12240_v2  ;;  %v12632_v35 = vpop.permute.xlu1 %1377  ;;  %5150 = vperm.xlu1 %8757, %v12434_v43  }
 0x1e9   :  { %v4785_v51 = vcombine.low %v14643_v58, %v14642_v28  ;;  %v4786_v19 = vcombine.low %v14645_v32, %v14644_v57  ;;  %v12621_v28 = vadd.f32 %v5819_v23, %v5755_v18  ;;  %v6822_v58 = vrot.slane %v6814_v6, %v9214_v25  ;;  %v12638_v6 = vpop.permute.xlu0 %1398  ;;  %v14647_v57 = vld [vmem:[#allocation44_spill] sm:$0xff] }
 0x1ea   :  { %v12636_v18 = vmul.f32 0.25, %v12249_v54  ;;  %v14648_v46 = vrot.slane %v14647_v57, %v9157_v48  ;;  %v14649_v32 = vrot.slane %v14647_v57, %v9139_v26  ;;  %v12648_v41 = vadd.f32 %v5834_v62, %v5770_v37  ;;  %5213 = vperm.xlu0 %8758, %v12472_v20  }
 0x1eb   :  { %14646 = vst [vmem:[#allocation49_spill] sm:$0xff] %v12621_v28  ;;  %v4793_v45 = vrot.slane %v4785_v51, %v9214_v25  ;;  %v4800_v23 = vrot.slane %v4786_v19, %v9214_v25  ;;  %v5788_v34 = vsub.f32 %v5724_v42, %v5756_v1  ;;  %v4784_v54 = vcombine.low %v4776_v21, %v4783_v27 }
 0x1ec   :  { %v7086_v2 = vcombine.low %v14649_v32, %v14648_v46  ;;  %v14650_v43 = vrot.slane %v14647_v57, %v9163_v50  ;;  %v14651_v51 = vrot.slane %v14647_v57, %v9160_v49  ;;  %v6830_v33 = vcombine.low %v6822_v58, %v6829_v9  ;;  %v12680_v32 = vpop.permute.xlu1 %1383  ;;  %5153 = vperm.xlu1 %8757, %v12488_v40  }
 0x1ed   :  { %v14653_v46 = vrot.slane %v14652_v8, %v9157_v48  ;;  %v14654_v37 = vrot.slane %v14652_v8, %v9139_v26  ;;  %v14655_v20 = vrot.slane %v14652_v8, %v9163_v50  ;;  %v14656_v21 = vrot.slane %v14652_v8, %v9160_v49 }
 0x1ee   :  { %v7087_v19 = vcombine.low %v14651_v51, %v14650_v43  ;;  %v12678_v57 = vmul.f32 0.25, %v12295_v14  ;;  %v12683_v43 = vpop.permute.xlu0 %1404  ;;  %v4801_v8 = vcombine.low %v4793_v45, %v4800_v23  ;;  %v7094_v51 = vrot.slane %v7086_v2, %v9214_v25  ;;  %5216 = vperm.xlu0 %8758, %v12537_v13   ;;  %v14668_v45 = vld [vmem:[#allocation40_spill] sm:$0xff] }
 0x1ef   :  { %v4802_v62 = vcombine.low %v14654_v37, %v14653_v46  ;;  %v4803_v27 = vcombine.low %v14656_v21, %v14655_v20  ;;  %v14657_v46 = vld [vmem:[#allocation15_spill] sm:$0xff]  ;;  %v5820_v23 = vmul.f32 7.5, %v5788_v34  ;;  %v14665_v42 = vrot.slane %v14662_v52, %v9163_v50 }
 0x1f0   :  { %v14658_v37 = vrot.slane %v14657_v46, %v9157_v48  ;;  %v14659_v20 = vrot.slane %v14657_v46, %v9139_v26  ;;  %v14660_v14 = vrot.slane %v14657_v46, %v9163_v50  ;;  %v14661_v9 = vrot.slane %v14657_v46, %v9160_v49  ;;  %v12722_v40 = vpop.permute.xlu1 %1389  ;;  %5156 = vperm.xlu1 %8757, %v4767_v7  }
 0x1f1   :  { %v7101_v2 = vrot.slane %v7087_v19, %v9214_v25  ;;  %v14663_v46 = vrot.slane %v14662_v52, %v9157_v48  ;;  %v14666_v13 = vrot.slane %v14662_v52, %v9160_v49  ;;  %v14674_v24 = vrot.slane %v14673_v53, %v9157_v48  ;;  %v14678_v19 = vld [vmem:[#allocation16_spill] sm:$0xff] }
 0x1f2   :  { %v7103_v21 = vcombine.low %v14659_v20, %v14658_v37  ;;  %v7104_v58 = vcombine.low %v14661_v9, %v14660_v14  ;;  %v4810_v37 = vrot.slane %v4802_v62, %v9214_v25  ;;  %v4817_v20 = vrot.slane %v4803_v27, %v9214_v25  ;;  %v14667_v62 = vld [vmem:[#allocation42_spill] sm:$0xff]  ;;  %v12738_v27 = vpop.permute.xlu0 %1410  ;;  %5219 = vperm.xlu0 %8758, %v12601_v22  }
 0x1f3   :  { %v14664_v9 = vrot.slane %v14662_v52, %v9139_v26  ;;  %v4820_v34 = vcombine.low %v14666_v13, %v14665_v42  ;;  %v14671_v52 = vrot.slane %v14668_v45, %v9163_v50  ;;  %v14672_v42 = vrot.slane %v14668_v45, %v9160_v49 }
 0x1f4   :  { %v7111_v7 = vrot.slane %v7103_v21, %v9214_v25  ;;  %v7118_v11 = vrot.slane %v7104_v58, %v9214_v25  ;;  %v12748_v0 = vadd.f32 %v5820_v23, %v5756_v1  ;;  %v14676_v21 = vrot.slane %v14673_v53, %v9163_v50  ;;  %v1396_v23 = vpop.permute.xlu1 %1395  ;;  %5159 = vperm.xlu1 %8757, %v4784_v54  }
 0x1f5   :  { %v4819_v14 = vcombine.low %v14664_v9, %v14663_v46  ;;  %v14669_v46 = vrot.slane %v14668_v45, %v9157_v48  ;;  %v14670_v9 = vrot.slane %v14668_v45, %v9139_v26  ;;  %v7121_v13 = vcombine.low %v14672_v42, %v14671_v52 }
 0x1f6   :  { %v12751_v45 = vmul.f32 0.25, %v12324_v63  ;;  %v7102_v52 = vcombine.low %v7094_v51, %v7101_v2  ;;  %v14677_v58 = vrot.slane %v14673_v53, %v9160_v49  ;;  %v495_v44 = vrot.slane %v12356_v12, %v14678_v19  ;;  %7345 = vperm.xlu0 %8758, %v6830_v33  }
 0x1f7   :  { %v7120_v28 = vcombine.low %v14670_v9, %v14669_v46  ;;  %v14675_v46 = vrot.slane %v14673_v53, %v9139_v26  ;;  %v4827_v1 = vrot.slane %v4819_v14, %v9214_v25  ;;  %v4834_v63 = vrot.slane %v4820_v34, %v9214_v25 }
 0x1f8   :  { %v4837_v42 = vcombine.low %v14677_v58, %v14676_v21  ;;  %v502_v22 = vrot.slane %v12393_v5, %v12001_v59  ;;  %v1425_v51 = vrot.slane %v12594_v31, %v14667_v62  ;;  %v7135_v2 = vrot.slane %v7121_v13, %v9214_v25  ;;  %5162 = vperm.xlu1 %8757, %v4801_v8  }
 0x1f9   :  { %v4836_v9 = vcombine.low %v14675_v46, %v14674_v24  ;;  %v4818_v24 = vcombine.low %v4810_v37, %v4817_v20  ;;  %v7128_v53 = vrot.slane %v7120_v28, %v9214_v25  ;;  %v1430_v46 = vrot.slane %v12632_v35, %v14678_v19  ;;  %v12772_v37 = vpop.permute.xlu0 %1416 }
 0x1fa   :  { %v7119_v20 = vcombine.low %v7111_v7, %v7118_v11  ;;  %v14679_v34 = vrot.slane %v11976_v56, %v9157_v48  ;;  %v14680_v31 = vrot.slane %v11976_v56, %v9139_v26  ;;  %v1421_v28 = vrot.slane %v12480_v60, %v12047_v61  ;;  %7393 = vperm.xlu0 %8758, %v7102_v52   ;;  %v8761_v52 = vld [vmem:[%s13876_s5 + $0xc0] sm:$0xff]  }
 0x1fb   :  { %v4844_v14 = vrot.slane %v4836_v9, %v9214_v25  ;;  %v1468_v13 = vrot.slane %v1396_v23, %v12047_v61  ;;  %v4851_v35 = vrot.slane %v4837_v42, %v9214_v25  ;;  %v14681_v11 = vrot.slane %v11976_v56, %v9163_v50  ;;  %8667 = vmatprep.subr.bf16.mxu1 %v8761_v52 }
 0x1fc   :  { %v7137_v54 = vcombine.low %v14680_v31, %v14679_v34  ;;  %v14682_v7 = vrot.slane %v11976_v56, %v9160_v49  ;;  %v508_v21 = vrot.slane %v12431_v17, %v12047_v61  ;;  %v483_v58 = vrot.slane %v12445_v29, %v12047_v61  ;;  %v14683_v34 = vld [vmem:[#allocation31_spill] sm:$0xff]  ;;  %5165 = vperm.xlu1 %8757, %v4818_v24  }
 0x1fd   :  { %v4835_v60 = vcombine.low %v4827_v1, %v4834_v63  ;;  %v14684_v23 = vrot.slane %v14683_v34, %v9157_v48  ;;  %v14685_v33 = vrot.slane %v14683_v34, %v9139_v26  ;;  %v8759_v56 = vld [vmem:[%s13876_s5 + $0x40] sm:$0xff]   ;;  %v1426_v31 = vsel %vm489_vm3, %v1425_v51, %v1421_v28  ;;  %v12821_v28 = vpop.permute.xlu0 %3182 }
 0x1fe   :  { %v7138_v9 = vcombine.low %v14682_v7, %v14681_v11  ;;  %v1472_v17 = vrot.slane %v12638_v6, %v14667_v62  ;;  %v1402_v11 = vpop.permute.xlu1 %1401  ;;  %v7136_v29 = vcombine.low %v7128_v53, %v7135_v2  ;;  %v14686_v1 = vrot.slane %v14683_v34, %v9163_v50  ;;  %8645 = vmatprep.subr.bf16.mxu0 %v8759_v56 }
 0x1ff   :  { %v12801_v42 = vcombine.low %v14685_v33, %v14684_v23  ;;  %v14687_v63 = vrot.slane %v14683_v34, %v9160_v49  ;;  %v1431_v23 = vsel %vm496_vm4, %v1430_v46, %v1426_v31  ;;  %v1441_v51 = vrot.slane %v12680_v32, %v12483_v16  ;;  %7396 = vperm.xlu0 %8758, %v7119_v20   ;;  %v8763_v20 = vld [vmem:[%s13876_s5 + $0x48] sm:$0xff]  }
 0x200   :  { %v1477_v6 = vrot.slane %v1402_v11, %v14678_v19  ;;  %v7145_v8 = vrot.slane %v7137_v54, %v9214_v25  ;;  %v1435_v53 = vrot.slane %v12516_v30, %v12001_v59  ;;  %v1473_v2 = vsel %vm489_vm3, %v1472_v17, %v1468_v13  ;;  %v8760_v30 = vld [vmem:[%s13876_s5] sm:$0xff]   ;;  %5168 = vperm.xlu1 %8757, %v4835_v60  }
 0x201   :  { %v12815_v7 = vcombine.low %v14687_v63, %v14686_v1  ;;  %v4852_v34 = vcombine.low %v4844_v14, %v4851_v35  ;;  %v7152_v46 = vrot.slane %v7138_v9, %v9214_v25  ;;  %v14688_v32 = vrot.slane %v12316_v39, %v14667_v62  ;;  %v12856_v11 = vpop.permute.xlu0 %3191  ;;  %8646 = vmatpush3.bf16.msra.mxu0 %v8760_v30 }
 0x202   :  { %v512_v31 = vrot.slane %v12469_v36, %v14667_v62  ;;  %v1478_v54 = vsel %vm496_vm4, %v1477_v6, %v1473_v2  ;;  %v6805_v56 = vrot.slane %v12801_v42, %v9214_v25  ;;  %v517_v39 = vrot.slane %v12498_v55, %v14678_v19  ;;  %v1408_v13 = vpop.permute.xlu1 %1407  ;;  %8647 = vmatprep.subr.bf16.mxu0 %v8763_v20 }
 0x203   :  { %v490_v33 = vsel %vm489_vm3, %v14688_v32, %v483_v58  ;;  %v1436_v14 = vsel %vm503_vm6, %v1435_v53, %v1431_v23  ;;  %v1482_v36 = vrot.slane %v12683_v43, %v12001_v59  ;;  %v6812_v35 = vrot.slane %v12815_v7, %v9214_v25  ;;  %v8762_v43 = vld [vmem:[%s13876_s5 + $0x80] sm:$0xff]   ;;  %7399 = vperm.xlu0 %8758, %v7136_v29   ;;  %v8765_v29 = vld [vmem:[%s13876_s5 + $0xc8] sm:$0xff]  }
 0x204   :  { %v522_v9 = vrot.slane %v12546_v4, %v12001_v59  ;;  %v1443_v58 = vsel %vm1442_vm5, %v1441_v51, %v1436_v14  ;;  %v1455_v17 = vrot.slane %v12722_v40, %v12540_v10  ;;  %v1487_v55 = vrot.slane %v1408_v13, %v12483_v16  ;;  %v14689_v4 = vld [vmem:[#allocation30_spill] sm:$0xff]  ;;  %8668 = vmatpush3.bf16.msra.mxu1 %v8762_v43 }
 0x205   :  { %v497_v24 = vsel %vm496_vm4, %v495_v44, %v490_v33  ;;  %v1448_v1 = vrot.slane %v12555_v15, %v14689_v4  ;;  %v1483_v63 = vsel %vm503_vm6, %v1482_v36, %v1478_v54  ;;  %v7153_v40 = vcombine.low %v7145_v8, %v7152_v46  ;;  %v14690_v51 = vld [vmem:[#allocation10_spill] sm:$0xff]  ;;  %v14695_v33 = vld [vmem:[#allocation37_spill] sm:$0xff]  ;;  %v12900_v36 = vpop.permute.xlu0 %3197  ;;  %5171 = vperm.xlu1 %8757, %v4852_v34  }
 0x206   :  { %v513_v7 = vsel %vm489_vm3, %v512_v31, %v508_v21  ;;  %v1488_v23 = vsel %vm1442_vm5, %v1487_v55, %v1483_v63  ;;  %v14691_v6 = vrot.slane %v14690_v51, %v9157_v48  ;;  %v14692_v53 = vrot.slane %v14690_v51, %v9139_v26  ;;  %v1414_v32 = vpop.permute.xlu1 %1413  ;;  %8669 = vmatprep.subr.bf16.mxu1 %v8765_v29 }
 0x207   :  { %v14693_v44 = vrot.slane %v14690_v51, %v9163_v50  ;;  %v14694_v15 = vrot.slane %v14690_v51, %v9160_v49  ;;  %v518_v21 = vsel %vm496_vm4, %v517_v39, %v513_v7  ;;  %v1450_v8 = vsel %vm1449_vm7, %v1448_v1, %v1443_v58  ;;  %v8764_v58 = vld [vmem:[%s13876_s5 + $0x8] sm:$0xff]   ;;  %v14700_v1 = vld [vmem:[#allocation19_spill] sm:$0xff]  ;;  %7402 = vperm.xlu0 %8758, %v7153_v40  }
 0x208   :  { %v7154_v12 = vcombine.low %v14692_v53, %v14691_v6  ;;  %v1492_v46 = vrot.slane %v12738_v27, %v14689_v4  ;;  %v14696_v31 = vrot.slane %v14695_v33, %v9157_v48  ;;  %v14697_v54 = vrot.slane %v14695_v33, %v9139_v26  ;;  %8648 = vmatpush3.bf16.msra.mxu0 %v8764_v58 }
 0x209   :  { %v7155_v2 = vcombine.low %v14694_v15, %v14693_v44  ;;  %v523_v52 = vsel %vm503_vm6, %v522_v9, %v518_v21  ;;  %v1457_v14 = vsel %vm1456_vm8, %v1455_v17, %v1450_v8  ;;  %v1497_v39 = vrot.slane %v1414_v32, %v12540_v10  ;;  %v8766_v15 = vld [vmem:[%s13876_s5 + $0x88] sm:$0xff]   ;;  %v12952_v21 = vpop.permute.xlu0 %3203  ;;  %v14705_v8 = vld [vmem:[#allocation39_spill] sm:$0xff] }
 0x20a   :  { %v12895_v30 = vcombine.low %v14697_v54, %v14696_v31  ;;  %v14698_v27 = vrot.slane %v14695_v33, %v9163_v50  ;;  %v14699_v60 = vrot.slane %v14695_v33, %v9160_v49  ;;  %v1462_v9 = vrot.slane %v12599_v47, %v12362_v38  ;;  %v12937_v5 = vpop.permute.xlu1 %3185  ;;  %8670 = vmatpush3.bf16.msra.mxu1 %v8766_v15 }
 0x20b   :  { %v1502_v17 = vrot.slane %v12772_v37, %v12362_v38  ;;  %v1493_v55 = vsel %vm1449_vm7, %v1492_v46, %v1488_v23  ;;  %v14701_v63 = vrot.slane %v14700_v1, %v9157_v48  ;;  %v14702_v7 = vrot.slane %v14700_v1, %v9139_v26 }
 0x20c   :  { %v7070_v13 = vcombine.low %v14699_v60, %v14698_v27  ;;  %v504_v51 = vsel %vm503_vm6, %v502_v22, %v497_v24  ;;  %v1498_v47 = vsel %vm1456_vm8, %v1497_v39, %v1493_v55  ;;  %v7162_v37 = vrot.slane %v7154_v12, %v9214_v25 }
 0x20d   :  { %v12922_v43 = vcombine.low %v14702_v7, %v14701_v63  ;;  %v7169_v23 = vrot.slane %v7155_v2, %v9214_v25  ;;  %v525_v6 = vsel %vm14031_vm9, %v523_v52, %v504_v51  ;;  %v1464_v53 = vsel %vm1463_vm10, %v1462_v9, %v1457_v14  ;;  %v8769_v52 = vld [vmem:[%s13876_s5 + $0xd0] sm:$0xff]   ;;  %v13006_v29 = vpop.permute.xlu0 %3209 }
 0x20e   :  { %v1503_v44 = vsel %vm1463_vm10, %v1502_v17, %v1498_v47  ;;  %v14703_v22 = vrot.slane %v14700_v1, %v9163_v50  ;;  %v14704_v24 = vrot.slane %v14700_v1, %v9160_v49  ;;  %v12949_v2 = vmul.f32 0.25, %v12381_v3  ;;  %v8767_v3 = vld [vmem:[%s13876_s5 + $0x50] sm:$0xff]   ;;  %v14710_v17 = vld [vmem:[#allocation60_spill] sm:$0xff]  ;;  %v12997_v1 = vpop.permute.xlu1 %3188  ;;  %8671 = vmatprep.subr.bf16.mxu1 %v8769_v52 }
 0x20f   :  { %v1504_v20 = vsel %vm14031_vm9, %v1503_v44, %v1464_v53  ;;  %v14706_v34 = vrot.slane %v14705_v8, %v9157_v48  ;;  %v14707_v46 = vrot.slane %v14705_v8, %v9139_v26  ;;  %v14708_v33 = vrot.slane %v14705_v8, %v9163_v50  ;;  %8649 = vmatprep.subr.bf16.mxu0 %v8767_v3 }
 0x210   :  { %v7172_v12 = vcombine.low %v14704_v24, %v14703_v22  ;;  %v14709_v31 = vrot.slane %v14705_v8, %v9160_v49  ;;  %v6813_v14 = vcombine.low %v6805_v56, %v6812_v35  ;;  %v7077_v39 = vrot.slane %v12895_v30, %v9214_v25  ;;  %v14716_v22 = vld [vmem:[#allocation36_spill] sm:$0xff] }
 0x211   :  { %v6831_v32 = vcombine.low %v14707_v46, %v14706_v34  ;;  %v7084_v27 = vrot.slane %v7070_v13, %v9214_v25  ;;  %v7179_v60 = vrot.slane %v12922_v43, %v9214_v25  ;;  %v532_v58 = vrot.slane %v525_v6, %v9214_v25  ;;  %v8768_v13 = vld [vmem:[%s13876_s5 + $0x10] sm:$0xff]  }
 0x212   :  { %v6832_v54 = vcombine.low %v14709_v31, %v14708_v33  ;;  %v1511_v9 = vrot.slane %v1504_v20, %v9214_v25  ;;  %v14711_v55 = vrot.slane %v14710_v17, %v9157_v48  ;;  %v14712_v40 = vrot.slane %v14710_v17, %v9139_v26  ;;  %7342 = vperm.xlu1 %8757, %v6813_v14   ;;  %v8770_v43 = vld [vmem:[%s13876_s5 + $0x90] sm:$0xff]  }
 0x213   :  { %v14713_v56 = vrot.slane %v14710_v17, %v9163_v50  ;;  %v14714_v35 = vrot.slane %v14710_v17, %v9160_v49  ;;  %v7170_v63 = vcombine.low %v7162_v37, %v7169_v23  ;;  %v7186_v7 = vrot.slane %v7172_v12, %v9214_v25  ;;  %v8771_v37 = vld [vmem:[%s13876_s5 + $0x58] sm:$0xff]   ;;  %8650 = vmatpush3.bf16.msra.mxu0 %v8768_v13  ;;  %v8777_v13 = vld [vmem:[%s13876_s5 + $0xe0] sm:$0xff]  }
 0x214   :  { %v7188_v42 = vcombine.low %v14712_v40, %v14711_v55  ;;  %v14715_v51 = vsub.f32 %v12636_v18, %v12678_v57  ;;  %v6839_v6 = vrot.slane %v6831_v32, %v9214_v25  ;;  %v6846_v53 = vrot.slane %v6832_v54, %v9214_v25  ;;  %v8773_v23 = vld [vmem:[%s13876_s5 + $0xd8] sm:$0xff]   ;;  %8672 = vmatpush3.bf16.msra.mxu1 %v8770_v43 }
 0x215   :  { %v7189_v30 = vcombine.low %v14714_v35, %v14713_v56  ;;  %7405 = vperm.xlu0 %8758, %v7170_v63   ;;  %v7085_v44 = vcombine.low %v7077_v39, %v7084_v27  ;;  %v14717_v24 = vrot.slane %v14716_v22, %v9157_v48  ;;  %v14718_v12 = vrot.slane %v14716_v22, %v9139_v26  ;;  %v14721_v54 = vld [vmem:[#allocation50_spill] sm:$0xff]  ;;  %v13049_v27 = vpop.permute.xlu1 %3194  ;;  %v13065_v35 = vpop.permute.xlu0 %3215  ;;  %v14757_v39 = vld [vmem:[#allocation25_spill] sm:$0xff] }
 0x216   :  { %v5835_v47 = vmul.f32 7.5, %v14715_v51  ;;  %v14719_v20 = vrot.slane %v14716_v22, %v9163_v50  ;;  %v14720_v8 = vrot.slane %v14716_v22, %v9160_v49  ;;  %v14026_v46 = vmov 0.0   ;;  %8651 = vmatprep.subr.bf16.mxu0 %v8771_v37  ;;  %8673 = vmatprep.subr.bf16.mxu1 %v8773_v23 }
 0x217   :  { %v6848_v15 = vcombine.low %v14718_v12, %v14717_v24  ;;  %34 = vst [vmem:[#allocation2] sm:$0xff] %v14026_v46  ;;  %35 = vst [vmem:[#allocation2 + $0x8] sm:$0x3] %v14026_v46  ;;  %v5804_v32 = vsub.f32 %v12751_v45, %v12949_v2  ;;  %v7196_v33 = vrot.slane %v7188_v42, %v9214_v25  ;;  %v8772_v45 = vld [vmem:[%s13876_s5 + $0x18] sm:$0xff]   ;;  %7390 = vperm.xlu1 %8757, %v7085_v44   ;;  %v8776_v12 = vld [vmem:[%s13876_s5 + $0x20] sm:$0xff]  }
 0x218   :  { %v6849_v34 = vcombine.low %v14720_v8, %v14719_v20  ;;  %v7203_v31 = vrot.slane %v7189_v30, %v9214_v25  ;;  %v14722_v3 = vrot.slane %v14721_v54, %v9157_v48  ;;  %v14723_v52 = vrot.slane %v14721_v54, %v9139_v26  ;;  %535 = vst.msk [vmem:[#allocation2] sm:$0x3] %vm534_vm11, %v532_v58  ;;  %v8775_v30 = vld [vmem:[%s13876_s5 + $0x60] sm:$0xff]   ;;  %v14731_v8 = vld [vmem:[#allocation13_spill] sm:$0xff] }
 0x219   :  { %1514 = vst.msk [vmem:[#allocation2 + $0x2] sm:$0x3] %vm1513_vm12, %v1511_v9  ;;  %v7187_v17 = vcombine.low %v7179_v60, %v7186_v7  ;;  %v14724_v55 = vrot.slane %v14721_v54, %v9163_v50  ;;  %v14725_v58 = vrot.slane %v14721_v54, %v9160_v49  ;;  %v8774_v9 = vld [vmem:[%s13876_s5 + $0x98] sm:$0xff]   ;;  %v13063_v56 = vadd.f32 %v5835_v47, %v12678_v57 }
 0x21a   :  { %v7205_v14 = vcombine.low %v14723_v52, %v14722_v3  ;;  %v6847_v60 = vcombine.low %v6839_v6, %v6846_v53  ;;  %v6856_v63 = vrot.slane %v6848_v15, %v9214_v25  ;;  %v6863_v7 = vrot.slane %v6849_v34, %v9214_v25  ;;  %v14726_v57 = vld [vmem:[#allocation11_spill] sm:$0xff]  ;;  %8652 = vmatpush3.bf16.msra.mxu0 %v8772_v45  ;;  %v13093_v15 = vpop.permute.xlu1 %3200  ;;  %v13113_v45 = vpop.permute.xlu0 %3221 }
 0x21b   :  { %v7206_v40 = vcombine.low %v14725_v58, %v14724_v55  ;;  %7408 = vperm.xlu0 %8758, %v7187_v17   ;;  %v14727_v43 = vrot.slane %v14726_v57, %v9157_v48  ;;  %v14728_v51 = vrot.slane %v14726_v57, %v9139_v26  ;;  %v14729_v6 = vrot.slane %v14726_v57, %v9163_v50  ;;  %v8778_v52 = vld [vmem:[%s13876_s5 + $0xa0] sm:$0xff]  }
 0x21c   :  { %v14730_v53 = vrot.slane %v14726_v57, %v9160_v49  ;;  %v5836_v44 = vmul.f32 7.5, %v5804_v32  ;;  %v7204_v22 = vcombine.low %v7196_v33, %v7203_v31  ;;  %v7213_v24 = vrot.slane %v7205_v14, %v9214_v25  ;;  %7348 = vperm.xlu1 %8757, %v6847_v60   ;;  %8674 = vmatpush3.bf16.msra.mxu1 %v8774_v9  ;;  %v14736_v17 = vld [vmem:[#allocation56_spill] sm:$0xff] }
 0x21d   :  { %v6865_v47 = vcombine.low %v14728_v51, %v14727_v43  ;;  %v7220_v20 = vrot.slane %v7206_v40, %v9214_v25  ;;  %v14732_v34 = vrot.slane %v14731_v8, %v9157_v48  ;;  %v14733_v54 = vrot.slane %v14731_v8, %v9139_v26  ;;  %8653 = vmatprep.subr.bf16.mxu0 %v8775_v30  ;;  %v8779_v43 = vld [vmem:[%s13876_s5 + $0x68] sm:$0xff]  }
 0x21e   :  { %v6866_v37 = vcombine.low %v14730_v53, %v14729_v6  ;;  %v14734_v33 = vrot.slane %v14731_v8, %v9163_v50  ;;  %v14735_v31 = vrot.slane %v14731_v8, %v9160_v49  ;;  %v14737_v55 = vrot.slane %v14736_v17, %v9157_v48  ;;  %8675 = vmatprep.subr.bf16.mxu1 %v8777_v13  ;;  %v14741_v30 = vld [vmem:[#allocation21_spill] sm:$0xff] }
 0x21f   :  { %v7222_v32 = vcombine.low %v14733_v54, %v14732_v34  ;;  %v14738_v58 = vrot.slane %v14736_v17, %v9139_v26  ;;  %v14739_v60 = vrot.slane %v14736_v17, %v9163_v50  ;;  %v14740_v9 = vrot.slane %v14736_v17, %v9160_v49  ;;  %7411 = vperm.xlu0 %8758, %v7204_v22   ;;  %v8780_v17 = vld [vmem:[%s13876_s5 + $0x28] sm:$0xff]  }
 0x220   :  { %v7223_v3 = vcombine.low %v14735_v31, %v14734_v33  ;;  %v6864_v6 = vcombine.low %v6856_v63, %v6863_v7  ;;  %v6873_v53 = vrot.slane %v6865_v47, %v9214_v25  ;;  %v6880_v8 = vrot.slane %v6866_v37, %v9214_v25  ;;  %8654 = vmatpush3.bf16.msra.mxu0 %v8776_v12  ;;  %v13151_v37 = vpop.permute.xlu1 %3206  ;;  %v8782_v12 = vld [vmem:[%s13876_s5 + $0xa8] sm:$0xff]  }
 0x221   :  { %v6882_v40 = vcombine.low %v14738_v58, %v14737_v55  ;;  %v6883_v57 = vcombine.low %v14740_v9, %v14739_v60  ;;  %v13137_v54 = vadd.f32 %v5836_v44, %v12949_v2  ;;  %v14742_v13 = vrot.slane %v14741_v30, %v9157_v48  ;;  %8676 = vmatpush3.bf16.msra.mxu1 %v8778_v52  ;;  %v8781_v55 = vld [vmem:[%s13876_s5 + $0xe8] sm:$0xff]   ;;  %v8783_v58 = vld [vmem:[%s13876_s5 + $0x70] sm:$0xff]  }
 0x222   :  { %v14743_v33 = vrot.slane %v14741_v30, %v9139_v26  ;;  %v14744_v63 = vrot.slane %v14741_v30, %v9163_v50  ;;  %v14745_v7 = vrot.slane %v14741_v30, %v9160_v49  ;;  %7351 = vperm.xlu1 %8757, %v6864_v6   ;;  %v7221_v2 = vcombine.low %v7213_v24, %v7220_v20  ;;  %v8785_v60 = vld [vmem:[%s13876_s5 + $0xf0] sm:$0xff]  }
 0x223   :  { %v7230_v44 = vrot.slane %v7222_v32, %v9214_v25  ;;  %v7237_v22 = vrot.slane %v7223_v3, %v9214_v25  ;;  %v13168_v32 = vpop.permute.xlu0 %3227  ;;  %v6890_v3 = vrot.slane %v6882_v40, %v9214_v25  ;;  %v6897_v52 = vrot.slane %v6883_v57, %v9214_v25  ;;  %8655 = vmatprep.subr.bf16.mxu0 %v8779_v43  ;;  %v14746_v6 = vld [vmem:[#allocation14_spill] sm:$0xff]  ;;  %v14768_v20 = vld [vmem:[#allocation33_spill] sm:$0xff] }
 0x224   :  { %v7239_v31 = vcombine.low %v14743_v33, %v14742_v13  ;;  %v7240_v47 = vcombine.low %v14745_v7, %v14744_v63  ;;  %7414 = vperm.xlu0 %8758, %v7221_v2   ;;  %v6881_v9 = vcombine.low %v6873_v53, %v6880_v8  ;;  %v14747_v30 = vrot.slane %v14746_v6, %v9157_v48  ;;  %v14751_v7 = vld [vmem:[#allocation20_spill] sm:$0xff]  ;;  %v8788_v63 = vld [vmem:[%s13876_s5 + $0x38] sm:$0xff]  }
 0x225   :  { %v14748_v13 = vrot.slane %v14746_v6, %v9139_v26  ;;  %v14749_v57 = vrot.slane %v14746_v6, %v9163_v50  ;;  %v14750_v43 = vrot.slane %v14746_v6, %v9160_v49  ;;  %8677 = vmatprep.subr.bf16.mxu1 %v8781_v55  ;;  %v14752_v2 = vrot.slane %v14751_v7, %v9157_v48  ;;  %v8784_v6 = vld [vmem:[%s13876_s5 + $0x30] sm:$0xff]   ;;  %v14762_v55 = vld [vmem:[#allocation23_spill] sm:$0xff] }
 0x226   :  { %v7247_v53 = vrot.slane %v7239_v31, %v9214_v25  ;;  %v7254_v8 = vrot.slane %v7240_v47, %v9214_v25  ;;  %8656 = vmatpush3.bf16.msra.mxu0 %v8780_v17  ;;  %7354 = vperm.xlu1 %8757, %v6881_v9   ;;  %v7238_v31 = vcombine.low %v7230_v44, %v7237_v22  ;;  %v8786_v17 = vld [vmem:[%s13876_s5 + $0xb0] sm:$0xff]   ;;  %vm3363_vm11 = vcmask 982912  }
 0x227   :  { %v6899_v40 = vcombine.low %v14748_v13, %v14747_v30  ;;  %v6900_v33 = vcombine.low %v14750_v43, %v14749_v57  ;;  %v14753_v30 = vrot.slane %v14751_v7, %v9139_v26  ;;  %v13205_v57 = vpop.permute.xlu1 %3212  ;;  %v14754_v47 = vrot.slane %v14751_v7, %v9163_v50  ;;  %8678 = vmatpush3.bf16.msra.mxu1 %v8782_v12  ;;  %v14756_v9 = vld [vmem:[#allocation41_spill] sm:$0xff]  ;;  %v13221_v22 = vpop.permute.xlu0 %3233  ;;  %v8787_v12 = vld [vmem:[%s13876_s5 + $0x78] sm:$0xff]  }
 0x228   :  { %v14755_v43 = vrot.slane %v14751_v7, %v9160_v49  ;;  %v3323_v44 = vadd.s32 4294967224, %v14756_v9  ;;  %v6898_v14 = vcombine.low %v6890_v3, %v6897_v52  ;;  %8657 = vmatprep.subr.bf16.mxu0 %v8783_v58  ;;  %8679 = vmatprep.subr.bf16.mxu1 %v8785_v60  ;;  %v8789_v7 = vld [vmem:[%s13876_s5 + $0xf8] sm:$0xff]   ;;  %v14758_v42 = vrot.slane %v14757_v39, %v9157_v48 }
 0x229   :  { %v7256_v13 = vcombine.low %v14753_v30, %v14752_v2  ;;  %7417 = vperm.xlu0 %8758, %v7238_v31   ;;  %v14759_v3 = vrot.slane %v14757_v39, %v9139_v26  ;;  %v14760_v58 = vrot.slane %v14757_v39, %v9163_v50  ;;  %v14761_v60 = vrot.slane %v14757_v39, %v9160_v49 }
 0x22a   :  { %v7257_v23 = vcombine.low %v14755_v43, %v14754_v47  ;;  %v6907_v47 = vrot.slane %v6899_v40, %v9214_v25  ;;  %v6914_v43 = vrot.slane %v6900_v33, %v9214_v25  ;;  %v3337_v31 = vadd.s32 4294967208, %v14756_v9  ;;  %8658 = vmatpush3.bf16.msra.mxu0 %v8784_v6  ;;  %7357 = vperm.xlu1 %8757, %v6898_v14   ;;  %v8790_v14 = vld [vmem:[%s13876_s5 + $0xb8] sm:$0xff]  }
 0x22b   :  { %v6916_v52 = vcombine.low %v14759_v3, %v14758_v42  ;;  %v6917_v2 = vcombine.low %v14761_v60, %v14760_v58  ;;  %v3351_v40 = vadd.s32 4294967192, %v14756_v9  ;;  %v7255_v30 = vcombine.low %v7247_v53, %v7254_v8  ;;  %v13249_v42 = vpop.permute.xlu1 %3218  ;;  %8680 = vmatpush3.bf16.msra.mxu1 %v8786_v17  ;;  %v13270_v24 = vpop.permute.xlu0 %3239  ;;  %8659 = vmatprep.subr.bf16.mxu0 %v8787_v12 }
 0x22c   :  { %v7264_v33 = vrot.slane %v7256_v13, %v9214_v25  ;;  %v7271_v3 = vrot.slane %v7257_v23, %v9214_v25  ;;  %v14763_v39 = vrot.slane %v14762_v55, %v9157_v48  ;;  %v14764_v58 = vrot.slane %v14762_v55, %v9139_v26  ;;  %v14767_v23 = vld [vmem:[#allocation9_spill] sm:$0xff]  ;;  %8681 = vmatprep.subr.bf16.mxu1 %v8789_v7 }
 0x22d   :  { %v14765_v53 = vrot.slane %v14762_v55, %v9163_v50  ;;  %v14766_v8 = vrot.slane %v14762_v55, %v9160_v49  ;;  %v13268_v6 = vsub.s32 %v3323_v44, %v14767_v23  ;;  %v14771_v55 = vrot.slane %v14768_v20, %v9163_v50  ;;  %7420 = vperm.xlu0 %8758, %v7255_v30  }
 0x22e   :  { %v7273_v60 = vcombine.low %v14764_v58, %v14763_v39  ;;  %v14769_v39 = vrot.slane %v14768_v20, %v9157_v48  ;;  %v14770_v58 = vrot.slane %v14768_v20, %v9139_v26  ;;  %v14772_v17 = vrot.slane %v14768_v20, %v9160_v49  ;;  %8660 = vmatpush3.bf16.msra.mxu0 %v8788_v63 }
 0x22f   :  { %v7274_v13 = vcombine.low %v14766_v8, %v14765_v53  ;;  %v3316_v44 = vadd.s32 4294967232, %v14756_v9  ;;  %v6915_v8 = vcombine.low %v6907_v47, %v6914_v43  ;;  %v6924_v34 = vrot.slane %v6916_v52, %v9214_v25  ;;  %v13305_v43 = vpop.permute.xlu1 %3224  ;;  %8682 = vmatpush3.bf16.msra.mxu1 %v8790_v14 }
 0x230   :  { %v6933_v51 = vcombine.low %v14770_v58, %v14769_v39  ;;  %v6934_v53 = vcombine.low %v14772_v17, %v14771_v55  ;;  %v6931_v46 = vrot.slane %v6917_v2, %v9214_v25  ;;  %v13288_v18 = vsub.s32 %v3337_v31, %v14767_v23  ;;  %v13309_v58 = vpop.permute.xlu0 %3245 }
 0x231   :  { %v13291_v39 = vsub.s32 %v3351_v40, %v14767_v23  ;;  %v14773_v20 = vrot.slane %v12648_v41, %v9157_v48  ;;  %v14774_v12 = vrot.slane %v12648_v41, %v9139_v26  ;;  %v14775_v30 = vrot.slane %v12648_v41, %v9163_v50  ;;  %7360 = vperm.xlu1 %8757, %v6915_v8  }
 0x232   :  { %v14776_v47 = vrot.slane %v12648_v41, %v9160_v49  ;;  %v7272_v52 = vcombine.low %v7264_v33, %v7271_v3  ;;  %v7281_v31 = vrot.slane %v7273_v60, %v9214_v25  ;;  %v7288_v40 = vrot.slane %v7274_v13, %v9214_v25 }
 0x233   :  { %v7290_v7 = vcombine.low %v14774_v12, %v14773_v20  ;;  %v6941_v55 = vrot.slane %v6933_v51, %v9214_v25  ;;  %v6948_v17 = vrot.slane %v6934_v53, %v9214_v25  ;;  %v14777_v20 = vld [vmem:[#allocation61_spill] sm:$0xff]  ;;  %v14780_v8 = vmov 0.0  }
 0x234   :  { %v7291_v2 = vcombine.low %v14776_v47, %v14775_v30  ;;  %v14778_v41 = vrot.slane %v14777_v20, %v9157_v48  ;;  %v14779_v63 = vrot.slane %v14777_v20, %v9139_v26  ;;  %8727 = vmatprep.subr.bf16.mxu1 %v14780_v8  ;;  %8707 = vmatprep.subr.bf16.mxu0 %v14780_v8  ;;  %v13325_v3 = vadd.s32 4294967176, %v14756_v9 }
 0x235   :  { %v13322_v33 = vsub.s32 %v3316_v44, %v14767_v23  ;;  %7423 = vperm.xlu0 %8758, %v7272_v52   ;;  %v6932_v51 = vcombine.low %v6924_v34, %v6931_v46  ;;  %v14781_v60 = vrot.slane %v14777_v20, %v9163_v50  ;;  %v14782_v13 = vrot.slane %v14777_v20, %v9160_v49 }
 0x236   :  { %v6950_v12 = vcombine.low %v14779_v63, %v14778_v41  ;;  %v7298_v53 = vrot.slane %v7290_v7, %v9214_v25  ;;  %v7305_v30 = vrot.slane %v7291_v2, %v9214_v25  ;;  %v14783_v44 = vrot.slane %v13063_v56, %v9157_v48  ;;  %v3231_v63 = vpop.permute.xlu1 %3230 }
 0x237   :  { %v6951_v14 = vcombine.low %v14782_v13, %v14781_v60  ;;  %v14784_v47 = vrot.slane %v13063_v56, %v9139_v26  ;;  %v14785_v46 = vrot.slane %v13063_v56, %v9163_v50  ;;  %v14786_v34 = vrot.slane %v13063_v56, %v9160_v49  ;;  %7363 = vperm.xlu1 %8757, %v6932_v51  }
 0x238   :  { %v3280_v20 = vrot.slane %v12821_v28, %v12047_v61  ;;  %v3284_v7 = vrot.slane %v12937_v5, %v14667_v62  ;;  %v3330_v2 = vadd.s32 4294967216, %v14756_v9  ;;  %v7289_v60 = vcombine.low %v7281_v31, %v7288_v40 }
 0x239   :  { %v7307_v41 = vcombine.low %v14784_v47, %v14783_v44  ;;  %v7308_v52 = vcombine.low %v14786_v34, %v14785_v46  ;;  %v3294_v13 = vrot.slane %v12856_v11, %v12001_v59  ;;  %v3289_v44 = vrot.slane %v12997_v1, %v14678_v19  ;;  %v13356_v47 = vpop.permute.xlu0 %3251  ;;  %v14787_v34 = vld [vmem:[#allocation18_spill] sm:$0xff] }
 0x23a   :  { %v6949_v56 = vcombine.low %v6941_v55, %v6948_v17  ;;  %v6958_v46 = vrot.slane %v6950_v12, %v9214_v25  ;;  %v3375_v28 = vrot.slane %v3231_v63, %v12047_v61  ;;  %7426 = vperm.xlu0 %8758, %v7289_v60   ;;  %v6965_v5 = vrot.slane %v6951_v14, %v9214_v25  ;;  %v3237_v61 = vpop.permute.xlu1 %3236 }
 0x23b   :  { %v14788_v51 = vrot.slane %v14787_v34, %v9157_v48  ;;  %v14789_v31 = vrot.slane %v14787_v34, %v9139_v26  ;;  %v14790_v1 = vrot.slane %v14787_v34, %v9163_v50  ;;  %v14791_v40 = vrot.slane %v14787_v34, %v9160_v49 }
 0x23c   :  { %v7306_v17 = vcombine.low %v7298_v53, %v7305_v30  ;;  %v7315_v12 = vrot.slane %v7307_v41, %v9214_v25  ;;  %v7322_v63 = vrot.slane %v7308_v52, %v9214_v25  ;;  %v14792_v14 = vrot.slane %v13137_v54, %v9157_v48  ;;  %7366 = vperm.xlu1 %8757, %v6949_v56   ;;  %v14796_v52 = vld [vmem:[#allocation35_spill] sm:$0xff] }
 0x23d   :  { %v6967_v11 = vcombine.low %v14789_v31, %v14788_v51  ;;  %v6968_v55 = vcombine.low %v14791_v40, %v14790_v1  ;;  %v14793_v60 = vrot.slane %v13137_v54, %v9139_v26  ;;  %v3285_v51 = vsel %vm489_vm3, %v3284_v7, %v3280_v20  ;;  %v13400_v56 = vpop.permute.xlu0 %3257 }
 0x23e   :  { %v3379_v31 = vrot.slane %v13221_v22, %v14667_v62  ;;  %v14794_v53 = vrot.slane %v13137_v54, %v9163_v50  ;;  %v14795_v30 = vrot.slane %v13137_v54, %v9160_v49  ;;  %v14797_v34 = vrot.slane %v14796_v52, %v9157_v48  ;;  %7429 = vperm.xlu0 %8758, %v7306_v17  }
 0x23f   :  { %v7324_v8 = vcombine.low %v14793_v60, %v14792_v14  ;;  %v14798_v1 = vrot.slane %v14796_v52, %v9139_v26  ;;  %v3290_v20 = vsel %vm496_vm4, %v3289_v44, %v3285_v51  ;;  %v3299_v22 = vrot.slane %v13049_v27, %v12483_v16 }
 0x240   :  { %v7325_v41 = vcombine.low %v14795_v30, %v14794_v53  ;;  %v3384_v7 = vrot.slane %v3237_v61, %v14678_v19  ;;  %v14799_v54 = vrot.slane %v14796_v52, %v9163_v50  ;;  %v14800_v14 = vrot.slane %v14796_v52, %v9160_v49 }
 0x241   :  { %v6984_v40 = vcombine.low %v14798_v1, %v14797_v34  ;;  %v3380_v53 = vsel %vm489_vm3, %v3379_v31, %v3375_v28  ;;  %v6966_v30 = vcombine.low %v6958_v46, %v6965_v5  ;;  %v6975_v44 = vrot.slane %v6967_v11, %v9214_v25  ;;  %v3243_v28 = vpop.permute.xlu1 %3242 }
 0x242   :  { %v6985_v60 = vcombine.low %v14800_v14, %v14799_v54  ;;  %v6982_v27 = vrot.slane %v6968_v55, %v9214_v25  ;;  %v3304_v61 = vrot.slane %v12900_v36, %v14689_v4  ;;  %v3385_v51 = vsel %vm496_vm4, %v3384_v7, %v3380_v53 }
 0x243   :  { %v7323_v34 = vcombine.low %v7315_v12, %v7322_v63  ;;  %v7332_v1 = vrot.slane %v7324_v8, %v9214_v25  ;;  %v3295_v52 = vsel %vm503_vm6, %v3294_v13, %v3290_v20  ;;  %v3389_v54 = vrot.slane %v13270_v24, %v12001_v59  ;;  %7369 = vperm.xlu1 %8757, %v6966_v30   ;;  %v13424_v8 = vpop.permute.xlu0 %3263  ;;  %v14801_v12 = vld [vmem:[#allocation12_spill] sm:$0xff] }
 0x244   :  { %v7339_v46 = vrot.slane %v7325_v41, %v9214_v25  ;;  %v6992_v5 = vrot.slane %v6984_v40, %v9214_v25  ;;  %v3300_v11 = vsel %vm1442_vm5, %v3299_v22, %v3295_v52  ;;  %v3309_v36 = vrot.slane %v13093_v15, %v12540_v10 }
 0x245   :  { %v3394_v55 = vrot.slane %v3243_v28, %v12483_v16  ;;  %v6999_v13 = vrot.slane %v6985_v60, %v9214_v25  ;;  %v3390_v24 = vsel %vm503_vm6, %v3389_v54, %v3385_v51  ;;  %7432 = vperm.xlu0 %8758, %v7323_v34   ;;  %v6983_v17 = vcombine.low %v6975_v44, %v6982_v27  ;;  %v3249_v44 = vpop.permute.xlu1 %3248  ;;  %v14806_v51 = vld [vmem:[#allocation47_spill] sm:$0xff] }
 0x246   :  { %v14802_v63 = vrot.slane %v14801_v12, %v9157_v48  ;;  %v14803_v31 = vrot.slane %v14801_v12, %v9139_v26  ;;  %v14804_v15 = vrot.slane %v14801_v12, %v9163_v50  ;;  %v14805_v40 = vrot.slane %v14801_v12, %v9160_v49 }
 0x247   :  { %v3314_v22 = vrot.slane %v12952_v21, %v12362_v38  ;;  %v13443_v7 = vsub.s32 %v3330_v2, %v14767_v23  ;;  %v3344_v14 = vadd.s32 4294967200, %v14756_v9  ;;  %v3395_v60 = vsel %vm1442_vm5, %v3394_v55, %v3390_v24  ;;  %7372 = vperm.xlu1 %8757, %v6983_v17   ;;  %v13460_v28 = vpop.permute.xlu0 %3269 }
 0x248   :  { %v7001_v41 = vcombine.low %v14803_v31, %v14802_v63  ;;  %v7002_v20 = vcombine.low %v14805_v40, %v14804_v15  ;;  %v3305_v53 = vsel %vm1449_vm7, %v3304_v61, %v3300_v11  ;;  %v3399_v30 = vrot.slane %v13309_v58, %v14689_v4 }
 0x249   :  { %v7340_v27 = vcombine.low %v7332_v1, %v7339_v46  ;;  %v14807_v34 = vrot.slane %v14806_v51, %v9157_v48  ;;  %v14808_v21 = vrot.slane %v14806_v51, %v9139_v26  ;;  %v3310_v52 = vsel %vm1456_vm8, %v3309_v36, %v3305_v53  ;;  %v3255_v63 = vpop.permute.xlu1 %3254 }
 0x24a   :  { %v3320_v54 = vrot.slane %v13151_v37, %v13322_v33  ;;  %v3404_v61 = vrot.slane %v3249_v44, %v12540_v10  ;;  %v7000_v58 = vcombine.low %v6992_v5, %v6999_v13  ;;  %v3400_v11 = vsel %vm1449_vm7, %v3399_v30, %v3395_v60 }
 0x24b   :  { %v7018_v2 = vcombine.low %v14808_v21, %v14807_v34  ;;  %7435 = vperm.xlu0 %8758, %v7340_v27   ;;  %v7009_v1 = vrot.slane %v7001_v41, %v9214_v25  ;;  %v7016_v46 = vrot.slane %v7002_v20, %v9214_v25  ;;  %v14809_v55 = vrot.slane %v14806_v51, %v9163_v50  ;;  %v14811_v41 = vld [vmem:[#allocation49_spill] sm:$0xff]  ;;  %v3276_v60 = vpop.permute.xlu0 %3275 }
 0x24c   :  { %v14810_v36 = vrot.slane %v14806_v51, %v9160_v49  ;;  %v13472_v37 = vsub.s32 %v3344_v14, %v14767_v23  ;;  %v3358_v5 = vadd.s32 4294967184, %v14756_v9  ;;  %v3405_v13 = vsel %vm1456_vm8, %v3404_v61, %v3400_v11  ;;  %7375 = vperm.xlu1 %8757, %v7000_v58  }
 0x24d   :  { %v3315_v17 = vsel %vm1463_vm10, %v3314_v22, %v3310_v52  ;;  %v3409_v12 = vrot.slane %v13356_v47, %v12362_v38  ;;  %v7026_v31 = vrot.slane %v7018_v2, %v9214_v25  ;;  %v14812_v15 = vrot.slane %v14811_v41, %v9157_v48  ;;  %v3261_v52 = vpop.permute.xlu1 %3260 }
 0x24e   :  { %v7019_v24 = vcombine.low %v14810_v36, %v14809_v55  ;;  %v14813_v40 = vrot.slane %v14811_v41, %v9139_v26  ;;  %v3327_v9 = vrot.slane %v13006_v29, %v13268_v6  ;;  %v3322_v14 = vsel %vm3321_vm13, %v3320_v54, %v3315_v17 }
 0x24f   :  { %v3334_v22 = vrot.slane %v13205_v57, %v13443_v7  ;;  %v3414_v47 = vrot.slane %v3255_v63, %v13322_v33  ;;  %v3410_v53 = vsel %vm1463_vm10, %v3409_v12, %v3405_v13  ;;  %v7017_v30 = vcombine.low %v7009_v1, %v7016_v46  ;;  %v13518_v36 = vpop.permute.xlu0 %5126 }
 0x250   :  { %v7035_v20 = vcombine.low %v14813_v40, %v14812_v15  ;;  %v7033_v44 = vrot.slane %v7019_v24, %v9214_v25  ;;  %v14814_v27 = vrot.slane %v14811_v41, %v9163_v50  ;;  %v14815_v51 = vrot.slane %v14811_v41, %v9160_v49 }
 0x251   :  { %v13501_v34 = vsub.s32 %v3358_v5, %v14767_v23  ;;  %v3415_v57 = vsel %vm3321_vm13, %v3414_v47, %v3410_v53  ;;  %v3329_v21 = vsel %vm3328_vm14, %v3327_v9, %v3322_v14  ;;  %v3419_v2 = vrot.slane %v13400_v56, %v13268_v6  ;;  %7378 = vperm.xlu1 %8757, %v7017_v30  }
 0x252   :  { %v7036_v29 = vcombine.low %v14815_v51, %v14814_v27  ;;  %v7043_v54 = vrot.slane %v7035_v20, %v9214_v25  ;;  %v14816_v61 = vrot.slane %v12748_v0, %v9157_v48  ;;  %v14817_v58 = vrot.slane %v12748_v0, %v9139_v26 }
 0x253   :  { %v3336_v1 = vsel %vm3335_vm15, %v3334_v22, %v3329_v21  ;;  %v3348_v46 = vrot.slane %v13249_v42, %v13472_v37  ;;  %v3424_v55 = vrot.slane %v3261_v52, %v13443_v7  ;;  %v14818_v56 = vrot.slane %v12748_v0, %v9163_v50 }
 0x254   :  { %v7052_v11 = vcombine.low %v14817_v58, %v14816_v61  ;;  %v14819_v24 = vrot.slane %v12748_v0, %v9160_v49  ;;  %v3341_v26 = vrot.slane %v13065_v35, %v13288_v18  ;;  %v3420_v5 = vsel %vm3328_vm14, %v3419_v2, %v3415_v57  ;;  %v3267_v0 = vpop.permute.xlu1 %3266 }
 0x255   :  { %v7034_v13 = vcombine.low %v7026_v31, %v7033_v44  ;;  %v7050_v17 = vrot.slane %v7036_v29, %v9214_v25  ;;  %v13532_v42 = vsub.s32 %v13325_v3, %v14767_v23  ;;  %v3425_v12 = vsel %vm3335_vm15, %v3424_v55, %v3420_v5  ;;  %v13542_v23 = vpop.permute.xlu0 %5135 }
 0x256   :  { %v7053_v48 = vcombine.low %v14819_v24, %v14818_v56  ;;  %v3343_v50 = vsel %vm3342_vm0, %v3341_v26, %v3336_v1  ;;  %v3429_v49 = vrot.slane %v13424_v8, %v13288_v18  ;;  %v3362_v63 = vrot.slane %v13305_v43, %v13501_v34 }
 0x257   :  { %7381 = vperm.xlu1 %8757, %v7034_v13   ;;  %v3350_v35 = vsel %vm3349_vm1, %v3348_v46, %v3343_v50  ;;  %v3434_v31 = vrot.slane %v3267_v0, %v13472_v37  ;;  %v7060_v3 = vrot.slane %v7052_v11, %v9214_v25  ;;  %v3355_v41 = vrot.slane %v13113_v45, %v13291_v39  ;;  %v14820_v13 = vld [vmem:[#allocation27_spill] sm:$0xff] }
 0x258   :  { %v3430_v15 = vsel %vm3342_vm0, %v3429_v49, %v3425_v12  ;;  %v7051_v40 = vcombine.low %v7043_v54, %v7050_v17  ;;  %v7067_v8 = vrot.slane %v7053_v48, %v9214_v25  ;;  %v3439_v43 = vrot.slane %v13460_v28, %v13291_v39  ;;  %v3273_v14 = vpop.permute.xlu1 %3272 }
 0x259   :  { %v3435_v20 = vsel %vm3349_vm1, %v3434_v31, %v3430_v15  ;;  %v3357_v9 = vsel %vm3356_vm2, %v3355_v41, %v3350_v35  ;;  %vm3370_vm12 = vcmask 1048512   ;;  %v3444_v47 = vrot.slane %v3273_v14, %v13501_v34  ;;  %v5178_v45 = vpop.permute.xlu0 %5177 }
 0x25a   :  { %v3364_v22 = vsel %vm3363_vm11, %v3362_v63, %v3357_v9  ;;  %v3369_v53 = vrot.slane %v13168_v32, %v13532_v42  ;;  %v3449_v30 = vrot.slane %v3276_v60, %v13532_v42  ;;  %v3440_v44 = vsel %vm3356_vm2, %v3439_v43, %v3435_v20 }
 0x25b   :  { %7384 = vperm.xlu1 %8757, %v7051_v40   ;;  %v7068_v27 = vcombine.low %v7060_v3, %v7067_v8  ;;  %v3445_v51 = vsel %vm3363_vm11, %v3444_v47, %v3440_v44  ;;  %v5307_v49 = vrot.slane %v5178_v45, %v14667_v62 }
 0x25c   :  { %v3371_v28 = vsel %vm3370_vm12, %v3369_v53, %v3364_v22  ;;  %v3450_v29 = vsel %vm3370_vm12, %v3449_v30, %v3445_v51  ;;  %v5130_v57 = vpop.permute.xlu1 %5129 }
 0x25d   :  { %v3451_v21 = vsel %vm14031_vm9, %v3450_v29, %v3371_v28  ;;  %v5187_v2 = vpop.permute.xlu0 %5186  ;;  %v5228_v45 = vrot.slane %v5130_v57, %v14667_v62 }
 0x25e   :  { %8218 = vst.sshfl [vmem:[#allocation2 + $0x4] sm:$0x3 pattern:$0x76325410] %v3451_v21  ;;  %v5322_v15 = vrot.slane %v5187_v2, %v12483_v16 }
 0x25f   :  { %7387 = vperm.xlu1 %8757, %v7068_v27   ;;  %v5224_v27 = vrot.slane %v13518_v36, %v14820_v13 }
 0x260   :  { %v5133_v52 = vpop.permute.xlu1 %5132 }
 0x261   :  { %v5190_v54 = vpop.permute.xlu0 %5189  ;;  %v5233_v53 = vrot.slane %v5133_v52, %v14678_v19  ;;  %v5229_v29 = vsel %vm489_vm3, %v5228_v45, %v5224_v27 }
 0x262   :  { %v5327_v9 = vrot.slane %v5190_v54, %v14689_v4 }
 0x263   :  { %v5234_v2 = vsel %vm496_vm4, %v5233_v53, %v5229_v29 }
 0x264   :  { %v5139_v32 = vpop.permute.xlu1 %5138 }
 0x265   :  { %v5193_v61 = vpop.permute.xlu0 %5192  ;;  %v5243_v57 = vrot.slane %v5139_v32, %v12483_v16 }
 0x266   :  { %v5332_v47 = vrot.slane %v5193_v61, %v12540_v10  ;;  %v5238_v61 = vrot.slane %v13542_v23, %v12001_v59 }
 0x268   :  { %v5175_v60 = vpop.permute.xlu1 %5174 }
 0x269   :  { %v5196_v58 = vpop.permute.xlu0 %5195  ;;  %v5303_v17 = vrot.slane %v5175_v60, %v14820_v13 }
 0x26a   :  { %v5337_v51 = vrot.slane %v5196_v58, %v12362_v38 }
 0x26b   :  { %v5308_v63 = vsel %vm489_vm3, %v5307_v49, %v5303_v17 }
 0x26c   :  { %v5181_v11 = vpop.permute.xlu1 %5180 }
 0x26d   :  { %v5199_v1 = vpop.permute.xlu0 %5198  ;;  %v5312_v50 = vrot.slane %v5181_v11, %v14678_v19 }
 0x26e   :  { %v5342_v52 = vrot.slane %v5199_v1, %v13322_v33 }
 0x26f   :  { %v5313_v3 = vsel %vm496_vm4, %v5312_v50, %v5308_v63 }
 0x270   :  { %v5184_v46 = vpop.permute.xlu1 %5183 }
 0x271   :  { %v5202_v55 = vpop.permute.xlu0 %5201  ;;  %v5317_v0 = vrot.slane %v5184_v46, %v12001_v59  ;;  %v5239_v46 = vsel %vm503_vm6, %v5238_v61, %v5234_v2 }
 0x272   :  { %v5347_v17 = vrot.slane %v5202_v55, %v13268_v6  ;;  %v5244_v1 = vsel %vm1442_vm5, %v5243_v57, %v5239_v46 }
 0x273   :  { %v5318_v41 = vsel %vm503_vm6, %v5317_v0, %v5313_v3 }
 0x274   :  { %v5142_v56 = vpop.permute.xlu1 %5141  ;;  %v5323_v20 = vsel %vm1442_vm5, %v5322_v15, %v5318_v41 }
 0x275   :  { %v5205_v24 = vpop.permute.xlu0 %5204  ;;  %v5328_v14 = vsel %vm1449_vm7, %v5327_v9, %v5323_v20  ;;  %v5248_v36 = vrot.slane %v5142_v56, %v14689_v4 }
 0x276   :  { %v5333_v30 = vsel %vm1456_vm8, %v5332_v47, %v5328_v14 }
 0x277   :  { %v5338_v21 = vsel %vm1463_vm10, %v5337_v51, %v5333_v30  ;;  %v5249_v56 = vsel %vm1449_vm7, %v5248_v36, %v5244_v1 }
 0x278   :  { %v5145_v48 = vpop.permute.xlu1 %5144  ;;  %v5343_v58 = vsel %vm3321_vm13, %v5342_v52, %v5338_v21 }
 0x279   :  { %v13563_v26 = vpop.permute.xlu0 %5207  ;;  %v5253_v11 = vrot.slane %v5145_v48, %v12540_v10  ;;  %v5348_v23 = vsel %vm3328_vm14, %v5347_v17, %v5343_v58  ;;  %v5352_v48 = vrot.slane %v5205_v24, %v13443_v7 }
 0x27b   :  { %v5254_v3 = vsel %vm1456_vm8, %v5253_v11, %v5249_v56  ;;  %v5353_v15 = vsel %vm3335_vm15, %v5352_v48, %v5348_v23 }
 0x27c   :  { %v5148_v5 = vpop.permute.xlu1 %5147 }
 0x27d   :  { %v13566_v12 = vpop.permute.xlu0 %5210  ;;  %v5258_v32 = vrot.slane %v5148_v5, %v12362_v38  ;;  %v5357_v5 = vrot.slane %v13563_v26, %v13288_v18 }
 0x27f   :  { %v5358_v30 = vsel %vm3342_vm0, %v5357_v5, %v5353_v15 }
 0x280   :  { %v5151_v35 = vpop.permute.xlu1 %5150 }
 0x281   :  { %v13572_v31 = vpop.permute.xlu0 %5213  ;;  %v5263_v50 = vrot.slane %v5151_v35, %v13322_v33  ;;  %v5259_v35 = vsel %vm1463_vm10, %v5258_v32, %v5254_v3 }
 0x283   :  { %v5264_v20 = vsel %vm3321_vm13, %v5263_v50, %v5259_v35 }
 0x284   :  { %v5154_v40 = vpop.permute.xlu1 %5153 }
 0x285   :  { %v13577_v8 = vpop.permute.xlu0 %5216  ;;  %v5268_v0 = vrot.slane %v5154_v40, %v13268_v6  ;;  %v5362_v40 = vrot.slane %v13566_v12, %v13472_v37 }
 0x286   :  { %v5372_v45 = vrot.slane %v13577_v8, %v13501_v34 }
 0x287   :  { %v5269_v14 = vsel %vm3328_vm14, %v5268_v0, %v5264_v20  ;;  %v8792_v20 = vld [vmem:[%s13878_s7] sm:$0xff]  }
 0x288   :  { %v5157_v43 = vpop.permute.xlu1 %5156 }
 0x289   :  { %v5220_v22 = vpop.permute.xlu0 %5219  ;;  %v5273_v55 = vrot.slane %v5157_v43, %v13443_v7  ;;  %v5367_v43 = vrot.slane %v13572_v31, %v13291_v39  ;;  %v5363_v31 = vsel %vm3349_vm1, %v5362_v40, %v5358_v30  ;;  %v8799_v30 = vld [vmem:[%s13876_s5 + $0x118] sm:$0xff]  }
 0x28b   :  { %v5274_v53 = vsel %vm3335_vm15, %v5273_v55, %v5269_v14  ;;  %v5368_v21 = vsel %vm3356_vm2, %v5367_v43, %v5363_v31  ;;  %v8793_v55 = vld [vmem:[%s13876_s5 + $0x100] sm:$0xff]   ;;  %v8798_v31 = vld [vmem:[%s13878_s7 + $0x18] sm:$0xff]  }
 0x28c   :  { %v5160_v44 = vpop.permute.xlu1 %5159  ;;  %v5373_v52 = vsel %vm3363_vm11, %v5372_v45, %v5368_v21  ;;  %v8797_v45 = vld [vmem:[%s13876_s5 + $0x110] sm:$0xff]  }
 0x28d   :  { %v13589_v28 = vpop.permute.xlu0 %7345  ;;  %v5278_v41 = vrot.slane %v5160_v44, %v13288_v18  ;;  %v5377_v44 = vrot.slane %v5220_v22, %v13532_v42 }
 0x28f   :  { %v5279_v27 = vsel %vm3342_vm0, %v5278_v41, %v5274_v53  ;;  %v5378_v22 = vsel %vm3370_vm12, %v5377_v44, %v5373_v52 }
 0x290   :  { %v5163_v54 = vpop.permute.xlu1 %5162 }
 0x291   :  { %v13599_v60 = vpop.permute.xlu0 %7393  ;;  %v5283_v24 = vrot.slane %v5163_v54, %v13472_v37 }
 0x292   :  { %v7523_v52 = vrot.slane %v13599_v60, %v14667_v62  ;;  %v8802_v60 = vld [vmem:[%s13878_s7 + $0x28] sm:$0xff]  }
 0x293   :  { %v5284_v51 = vsel %vm3349_vm1, %v5283_v24, %v5279_v27 }
 0x294   :  { %v5166_v49 = vpop.permute.xlu1 %5165 }
 0x295   :  { %v13611_v63 = vpop.permute.xlu0 %7396  ;;  %v5288_v26 = vrot.slane %v5166_v49, %v13291_v39 }
 0x297   :  { %v5289_v2 = vsel %vm3356_vm2, %v5288_v26, %v5284_v51  ;;  %v8794_v26 = vld [vmem:[%s13878_s7 + $0x8] sm:$0xff]   ;;  %v8801_v51 = vld [vmem:[%s13876_s5 + $0x120] sm:$0xff]  }
 0x298   :  { %v5169_v9 = vpop.permute.xlu1 %5168 }
 0x299   :  { %v13629_v47 = vpop.permute.xlu0 %7399  ;;  %v5293_v12 = vrot.slane %v5169_v9, %v13501_v34  ;;  %v14821_v9 = vmov 0.0  }
 0x29b   :  { %v5294_v54 = vsel %vm3363_vm11, %v5293_v12, %v5289_v2  ;;  %v8796_v12 = vld [vmem:[%s13878_s7 + $0x10] sm:$0xff]  }
 0x29c   :  { %v5172_v29 = vpop.permute.xlu1 %5171 }
 0x29d   :  { %v5298_v8 = vrot.slane %v5172_v29, %v13532_v42  ;;  %v13643_v57 = vpop.permute.xlu0 %7402 }
 0x29f   :  { %v5299_v61 = vsel %vm3370_vm12, %v5298_v8, %v5294_v54  ;;  %v8800_v8 = vld [vmem:[%s13878_s7 + $0x20] sm:$0xff]   ;;  %v8803_v54 = vld [vmem:[%s13876_s5 + $0x128] sm:$0xff]  }
 0x2a0   :  { %v5379_v36 = vsel %vm14031_vm9, %v5378_v22, %v5299_v61  ;;  %v13650_v58 = vpop.permute.xlu1 %7342  ;;  %vm8863_vm9 = vmmov 0   ;;  %v7528_v61 = vrot.slane %v13611_v63, %v14678_v19  ;;  %v7533_v63 = vrot.slane %v13629_v47, %v12001_v59 }
 0x2a1   :  { %8219 = vst.sshfl [vmem:[#allocation2 + $0x6] sm:$0x3 pattern:$0x76325410] %v5379_v36  ;;  %v13652_v11 = vpop.permute.xlu0 %7405 }
 0x2a4   :  { %v13654_v46 = vpop.permute.xlu1 %7390 }
 0x2a5   :  { %v13656_v17 = vpop.permute.xlu0 %7408  ;;  %v7519_v29 = vrot.slane %v13654_v46, %v14820_v13  ;;  %v8805_v46 = vld [vmem:[%s13876_s5 + $0x130] sm:$0xff]  }
 0x2a7   :  { %v7524_v22 = vsel %vm489_vm3, %v7523_v52, %v7519_v29 }
 0x2a8   :  { %v13658_v32 = vpop.permute.xlu1 %7348  ;;  %v7605_v1 = vld [vmem:[#allocation2] sm:$0xff] }
 0x2a9   :  { %v13660_v50 = vpop.permute.xlu0 %7411  ;;  %v7616_v49 = vrot.slane %v7605_v1, %v9214_v25  ;;  %v7609_v23 = vcombine.high %v7605_v1, %v7605_v1  ;;  %v7529_v1 = vsel %vm496_vm4, %v7528_v61, %v7524_v22 }
 0x2ab   :  { %v7624_v56 = vcombine.high %v7616_v49, %v7616_v49  ;;  %v7623_v48 = vrot.slane %v7609_v23, %v9214_v25  ;;  %v7638_v35 = vpack.c.bf16 %v7616_v49, %v7616_v49  ;;  %v8795_v25 = vld [vmem:[%s13876_s5 + $0x108] sm:$0xff]  }
 0x2ac   :  { %v13663_v0 = vpop.permute.xlu1 %7351 }
 0x2ad   :  { %v7639_v3 = vpack.c.bf16 %v7624_v56, %v7624_v56  ;;  %v13669_v5 = vpop.permute.xlu0 %7414  ;;  %v7625_v41 = vcombine.high %v7623_v48, %v7623_v48  ;;  %v7640_v24 = vpack.c.bf16 %v7623_v48, %v7623_v48  ;;  %v8804_v56 = vld [vmem:[%s13878_s7 + $0x30] sm:$0xff]   ;;  %v7534_v48 = vsel %vm503_vm6, %v7533_v63, %v7529_v1 }
 0x2af   :  { %7995 = vmatprep.mubr.bf16.mxu0 %v7639_v3  ;;  %v7641_v40 = vpack.c.bf16 %v7625_v41, %v7625_v41  ;;  %v8807_v3 = vld [vmem:[%s13876_s5 + $0x138] sm:$0xff]  }
 0x2b0   :  { %v13671_v15 = vpop.permute.xlu1 %7354  ;;  %7996 = vmatmul.mubr.bf16.vlgmr.msra.gmra.mrb[0].mxu0 %v7638_v35 }
 0x2b1   :  { %8708 = vmatpush3.bf16.msra.mxu0 %v8793_v55  ;;  %8723 = vmatprep.mubr.msk.bf16.mxu0 %vm8863_vm9, %v14821_v9  ;;  %v13681_v43 = vpop.permute.xlu0 %7417  ;;  %v7538_v55 = vrot.slane %v13643_v57, %v12483_v16  ;;  %v7449_v57 = vrot.slane %v13658_v32, %v14678_v19  ;;  %v8084_v19 = vld [vmem:[%s13877_s6] sm:$0x1]  ;;  %s8864_s6 = smov [#allocation5]  }
 0x2b2   :  { %8035 = vmatprep.mubr.bf16.mxu1 %v7641_v40  ;;  %8709 = vmatprep.subr.bf16.mxu0 %v14821_v9  ;;  %v8806_v40 = vld [vmem:[%s13878_s7 + $0x38] sm:$0xff]   ;;  %s8206_s30 = sshll.u32 %s8864_s6, 4  ;;  %s8207_s30 = int_to_ptr.vmem [resolvable:$true] %s8206_s30 }
 0x2b3   :  { %8036 = vmatmul.mubr.bf16.vlgmr.msra.gmra.mrb[0].mxu1 %v7640_v24  ;;  %v7539_v47 = vsel %vm1442_vm5, %v7538_v55, %v7534_v48  ;;  %v7543_v24 = vrot.slane %v13652_v11, %v14689_v4  ;;  %s8808_s10 = scalar_lea.vmem %s8207_s30, 32  ;;  %p8813_p1 = scmp.lt.s32.totalorder %s8207_s30, %s8207_s30 }
 0x2b4   :  { %v13683_v14 = vpop.permute.xlu1 %7357  ;;  %8728 = vmatpush3.bf16.msra.mxu1 %v8792_v20  ;;  %8743 = vmatprep.mubr.msk.bf16.mxu1 %vm8863_vm9, %v14821_v9  ;;  %v7440_v20 = vrot.slane %v13650_v58, %v14820_v13  ;;  %v7548_v13 = vrot.slane %v13656_v17, %v12540_v10  ;;  %v7459_v58 = vrot.slane %v13671_v15, %v12483_v16  ;;  %p8809_p0 = scmp.ne.s32.totalorder %s8207_s30, %s8808_s10  ;;  %p8814_p2 = scmp.lt.s32.totalorder %s8808_s10, %s8808_s10 }
 0x2b5   :  { %8729 = vmatprep.subr.bf16.mxu1 %v14821_v9  ;;  %8710 = vmatpush3.bf16.msra.mxu0 %v8795_v25  ;;  %v13703_v44 = vpop.permute.xlu0 %7420  ;;  %v7444_v25 = vrot.slane %v13589_v28, %v14667_v62  ;;  %v7464_v62 = vrot.slane %v13683_v14, %v14689_v4  ;;  %v7553_v16 = vrot.slane %v13660_v50, %v12362_v38 }
 0x2b6   :  { %8711 = vmatprep.subr.bf16.mxu0 %v14821_v9  ;;  %v7558_v4 = vrot.slane %v13669_v5, %v13322_v33  ;;  %v7563_v50 = vrot.slane %v13681_v43, %v13268_v6  ;;  %p8815_p3 = por %p8814_p2, %p8813_p1 }
 0x2b7   :  { %v7445_v32 = vsel %vm489_vm3, %v7444_v25, %v7440_v20  ;;  %vm14822_vm3 = vcmask 1041409  }
 0x2b8   :  { %v13694_v53 = vpop.permute.xlu1 %7360  ;;  %8730 = vmatpush3.bf16.msra.mxu1 %v8794_v26  ;;  %v7544_v26 = vsel %vm1449_vm7, %v7543_v24, %v7539_v47  ;;  %p8816_p4 = pnand %p8815_p3, %p8809_p0 }
 0x2b9   :  { %8731 = vmatprep.subr.bf16.mxu1 %v14821_v9  ;;  %8712 = vmatpush3.bf16.msra.mxu0 %v8797_v45  ;;  %v13718_v21 = vpop.permute.xlu0 %7423  ;;  %v7454_v45 = vrot.slane %v13663_v0, %v12001_v59  ;;  %v7549_v28 = vsel %vm1456_vm8, %v7548_v13, %v7544_v26  ;;  %v7450_v59 = vsel %vm496_vm4, %v7449_v57, %v7445_v32 }
 0x2ba   :  { %8713 = vmatprep.subr.bf16.mxu0 %v14821_v9  ;;  %v7469_v17 = vrot.slane %v13694_v53, %v12540_v10  ;;  %v7554_v10 = vsel %vm1463_vm10, %v7553_v16, %v7549_v28 }
 0x2bb   :  { %v7455_v15 = vsel %vm503_vm6, %v7454_v45, %v7450_v59  ;;  %v7559_v29 = vsel %vm3321_vm13, %v7558_v4, %v7554_v10 }
 0x2bc   :  { %v13706_v27 = vpop.permute.xlu1 %7363  ;;  %8732 = vmatpush3.bf16.msra.mxu1 %v8796_v12  ;;  %v7460_v14 = vsel %vm1442_vm5, %v7459_v58, %v7455_v15 }
 0x2bd   :  { %8733 = vmatprep.subr.bf16.mxu1 %v14821_v9  ;;  %8714 = vmatpush3.bf16.msra.mxu0 %v8799_v30  ;;  %v13745_v49 = vpop.permute.xlu0 %7426  ;;  %v7465_v53 = vsel %vm1449_vm7, %v7464_v62, %v7460_v14 }
 0x2be   :  { %8715 = vmatprep.subr.bf16.mxu0 %v14821_v9  ;;  %v7470_v5 = vsel %vm1456_vm8, %v7469_v17, %v7465_v53 }
 0x2c0   :  { %v13720_v2 = vpop.permute.xlu1 %7366  ;;  %8734 = vmatpush3.bf16.msra.mxu1 %v8798_v31 }
 0x2c1   :  { %8735 = vmatprep.subr.bf16.mxu1 %v14821_v9  ;;  %8716 = vmatpush3.bf16.msra.mxu0 %v8801_v51  ;;  %v13764_v35 = vpop.permute.xlu0 %7429  ;;  %v7479_v12 = vrot.slane %v13720_v2, %v13322_v33  ;;  %v7573_v33 = vrot.slane %v13718_v21, %v13288_v18 }
 0x2c2   :  { %8717 = vmatprep.subr.bf16.mxu0 %v14821_v9  ;;  %v7583_v21 = vrot.slane %v13764_v35, %v13291_v39 }
 0x2c4   :  { %v13735_v36 = vpop.permute.xlu1 %7369  ;;  %8736 = vmatpush3.bf16.msra.mxu1 %v8800_v8 }
 0x2c5   :  { %8737 = vmatprep.subr.bf16.mxu1 %v14821_v9  ;;  %8718 = vmatpush3.bf16.msra.mxu0 %v8803_v54  ;;  %v7433_v0 = vpop.permute.xlu0 %7432 }
 0x2c6   :  { %8719 = vmatprep.subr.bf16.mxu0 %v14821_v9  ;;  %v7588_v61 = vrot.slane %v7433_v0, %v13501_v34 }
 0x2c8   :  { %v13750_v23 = vpop.permute.xlu1 %7372  ;;  %8738 = vmatpush3.bf16.msra.mxu1 %v8802_v60 }
 0x2c9   :  { %8739 = vmatprep.subr.bf16.mxu1 %v14821_v9  ;;  %8720 = vmatpush3.bf16.msra.mxu0 %v8805_v46  ;;  %v7489_v31 = vrot.slane %v13750_v23, %v13443_v7 }
 0x2ca   :  { %8721 = vmatprep.subr.bf16.mxu0 %v14821_v9 }
 0x2cc   :  { %v7376_v41 = vpop.permute.xlu1 %7375  ;;  %8740 = vmatpush3.bf16.msra.mxu1 %v8804_v56 }
 0x2cd   :  { %8741 = vmatprep.subr.bf16.mxu1 %v14821_v9  ;;  %8722 = vmatpush3.bf16.msra.mxu0 %v8807_v3  ;;  %v7474_v9 = vrot.slane %v13706_v27, %v12362_v38  ;;  %v7484_v38 = vrot.slane %v13735_v36, %v13268_v6  ;;  %v7568_v27 = vrot.slane %v13703_v44, %v13443_v7  ;;  %v7436_v44 = vpop.permute.xlu0 %7435 }
 0x2ce   :  { %v7494_v43 = vrot.slane %v7376_v41, %v13288_v18  ;;  %v7578_v6 = vrot.slane %v13745_v49, %v13472_v37  ;;  %v7564_v7 = vsel %vm3328_vm14, %v7563_v50, %v7559_v29  ;;  %v7593_v46 = vrot.slane %v7436_v44, %v13532_v42 }
 0x2cf   :  { %v7475_v51 = vsel %vm1463_vm10, %v7474_v9, %v7470_v5  ;;  %v7569_v22 = vsel %vm3335_vm15, %v7568_v27, %v7564_v7 }
 0x2d0   :  { %v7379_v11 = vpop.permute.xlu1 %7378  ;;  %8742 = vmatpush3.bf16.msra.mxu1 %v8806_v40  ;;  %v7480_v2 = vsel %vm3321_vm13, %v7479_v12, %v7475_v51 }
 0x2d1   :  { %v7499_v8 = vrot.slane %v7379_v11, %v13472_v37  ;;  %v7485_v54 = vsel %vm3328_vm14, %v7484_v38, %v7480_v2  ;;  %v7574_v37 = vsel %vm3342_vm0, %v7573_v33, %v7569_v22 }
 0x2d2   :  { %v7490_v36 = vsel %vm3335_vm15, %v7489_v31, %v7485_v54  ;;  %v7579_v49 = vsel %vm3349_vm1, %v7578_v6, %v7574_v37 }
 0x2d3   :  { %8744 = vmatmul.mubr.bf16.vlgmr.msra.gmra.mrb[4].mxu1 %v8084_v19  ;;  %v7495_v1 = vsel %vm3342_vm0, %v7494_v43, %v7490_v36 }
 0x2d4   :  { %v7500_v63 = vsel %vm3349_vm1, %v7499_v8, %v7495_v1 }
 0x2d6   :  { %v7382_v30 = vpop.permute.xlu1 %7381 }
 0x2d7   :  { %v7504_v18 = vrot.slane %v7382_v30, %v13291_v39  ;;  %v7584_v39 = vsel %vm3356_vm2, %v7583_v21, %v7579_v49 }
 0x2d8   :  { %v7589_v3 = vsel %vm3363_vm11, %v7588_v61, %v7584_v39 }
 0x2d9   :  { %v7505_v56 = vsel %vm3356_vm2, %v7504_v18, %v7500_v63  ;;  %v7594_v55 = vsel %vm3370_vm12, %v7593_v46, %v7589_v3 }
 0x2da   :  { %v7385_v52 = vpop.permute.xlu1 %7384 }
 0x2db   :  { %v7509_v60 = vrot.slane %v7385_v52, %v13501_v34 }
 0x2dd   :  { %v7510_v34 = vsel %vm3363_vm11, %v7509_v60, %v7505_v56 }
 0x2de   :  { %v7388_v23 = vpop.permute.xlu1 %7387 }
 0x2df   :  { %v7514_v48 = vrot.slane %v7388_v23, %v13532_v42 }
 0x2e1   :  { %v7515_v47 = vsel %vm3370_vm12, %v7514_v48, %v7510_v34 }
 0x2e2   :  { %v7595_v35 = vsel %vm14822_vm3, %v7594_v55, %v7515_v47 }
 0x2e3   :  { %8220 = vst.sshfl [vmem:[#allocation2 + $0x8] sm:$0x3 pattern:$0x76325410] %v7595_v35 }
 0x2ea   :  { %v8221_v41 = vld.sshfl [vmem:[#allocation2 + $0x8] sm:$0x3 pattern:$0x76325410] }
 0x2eb   :  { %v7642_v40 = vpack.c.bf16 %v8221_v41, %v8221_v41 }
 0x2ed   :  { %8724 = vmatmul.mubr.bf16.vlgmr.msra.gmra.mrb[4].mxu0 %v7642_v40 }
 0x383   :  { %v8661_v20 = vpop.f32.mrb[0].mxu0 }
 0x384   :  { %v8662_v24 = vpop.f32.mrb[1].mxu0 }
 0x385   :  { %v8663_v57 = vadd.f32 %v8662_v24, %v8661_v20  ;;  %v8664_v25 = vpop.f32.mrb[2].mxu0 }
 0x386   :  { %v8683_v26 = vpop.f32.mrb[0].mxu1  ;;  %v8665_v42 = vpop.f32.mrb[3].mxu0 }
 0x387   :  { %v8684_v45 = vpop.f32.mrb[1].mxu1 }
 0x388   :  { %v8685_v13 = vadd.f32 %v8684_v45, %v8683_v26  ;;  %v8686_v58 = vpop.f32.mrb[2].mxu1 }
 0x389   :  { %v8687_v11 = vpop.f32.mrb[3].mxu1 }
 0x38a   :  { %v8038_v19 = vadd.f32 %v8685_v13, %v8663_v57 }
 0x3a6   :  { %v8183_v32 = vpop.f32.mrb[4].mxu1 }
 0x3a7   :  { %8189 = vst [vmem:[#allocation5] sm:$0x3] %v8183_v32  ;;  %v8745_v62 = vpop.f32.mrb[5].mxu1 }
 0x3a8   :  { %v8186_v28 = vpop.f32.mrb[6].mxu1 }
 0x3a9   :  { %8819 = shalt.err (!%p8816_p4)
}
 0x3aa   :  { %s8820_s1 = scalar_lea.hbm %s13880_s9, 32 }
 0x3ab   :  { %p8821_p5 = scmp.ne.s32.totalorder %s13880_s9, %s8820_s1  ;;  %p8824_p6 = scmp.lt.u32.totalorder %s8820_s1, %s13880_s9 }
 0x3ad   :  { %p8826_p7 = pnand %p8824_p6, %p8821_p5 }
 0x3af   :  { %8829 = shalt.err (!%p8826_p7)
}
 0x3b0   :  { %8209 = dma.vmem_to_hbm [thread:$0]  %s8207_s30, 32, %s13880_s9, [#allocation6]   ;;  %v8746_v59 = vpop.f32.mrb[7].mxu1 }
 0x3b1   :  { %s8865_s18 = smov [#allocation3]  }
 0x3b2   :  { %s8196_s0 = sshll.u32 %s8865_s18, 4  ;;  %s8197_s0 = int_to_ptr.vmem [resolvable:$true] %s8196_s0 }
 0x3b3   :  { %s8830_s19 = scalar_lea.vmem %s8197_s0, 32  ;;  %p8835_p9 = scmp.lt.s32.totalorder %s8197_s0, %s8197_s0 }
 0x3b4   :  { %p8831_p8 = scmp.ne.s32.totalorder %s8197_s0, %s8830_s19  ;;  %p8836_p10 = scmp.lt.s32.totalorder %s8830_s19, %s8830_s19 }
 0x3b6   :  { %p8837_p11 = por %p8836_p10, %p8835_p9 }
 0x3b8   :  { %p8838_p12 = pnand %p8837_p11, %p8831_p8 }
 0x3c0   :  { %v8077_v17 = vpop.f32.mrb[4].mxu0 }
 0x3c1   :  { %v8078_v0 = vadd.f32 %v8077_v17, %v8038_v19  ;;  %v8725_v16 = vpop.f32.mrb[5].mxu0 }
 0x3c2   :  { %v8080_v15 = vpop.f32.mrb[6].mxu0 }
 0x3c3   :  { %8083 = vst [vmem:[#allocation3] sm:$0x3] %v8078_v0  ;;  %v8726_v9 = vpop.f32.mrb[7].mxu0 }
 0x3c4   :  { %8841 = shalt.err (!%p8838_p12)
}
 0x3c5   :  { %s8842_s9 = scalar_lea.hbm %s13879_s8, 32 }
 0x3c6   :  { %p8843_p13 = scmp.ne.s32.totalorder %s13879_s8, %s8842_s9  ;;  %p8846_p0 = scmp.lt.u32.totalorder %s8842_s9, %s13879_s8 }
 0x3c8   :  { %p8848_p1 = pnand %p8846_p0, %p8843_p13 }
 0x3ca   :  { %8851 = shalt.err (!%p8848_p1)
}
 0x3cb   :  { %8199 = dma.vmem_to_hbm [thread:$0]  %s8197_s0, 32, %s13879_s8, [#allocation4]  }
 0x3cc   :  { %8852 = dma.done.wait [#allocation4], 32  }
 0x3cd   :  { %8853 = vsyncadd [#allocation4], 4294967264 }
 0x3ce   :  { %8854 = dma.done.wait [#allocation6], 32  }
 0x3cf   :  { %8855 = vsyncadd [#allocation6], 4294967264 }
 0x3d0   :  { %8216 = vsyncpa [#allocation4], 1 }
 0x3d1   :  { %8217 = vsyncpa [#allocation6], 1 }

</bundles_post_ra>
